<compile_context>
chip_gen: v6e
topology: v6e:2x2x1
jax: 0.10.0
libtpu: 0.0.40
codegen_flags: <defaults>
</compile_context>

<pallas_src>
import functools

import numpy as np
import jax
import jax.numpy as jnp
from jax.experimental import pallas as pl
from jax.experimental.pallas import tpu as pltpu


# ----------------------------------------------------------------------------
# Fused forward kernel (everything in VMEM)
# ----------------------------------------------------------------------------
def _lenet_kernel(a0_ref, w1_ref, b1_ref, w2_ref, b2_ref,
                  wf1_ref, bf1_ref, wf2_ref, bf2_ref, wf3_ref, bf3_ref,
                  out_ref, s1, sp1, s2, sfc, *, n_img):
    f32 = jnp.float32
    bf16 = jnp.bfloat16
    M1 = n_img * 32     # conv1 rows: (n, h) on the 32-row grid per image
    M2 = n_img * 16     # conv2 rows: (n, ph) on a 16-row grid per image

    # Scratch rows/lanes that are read (shift padding) but never written must
    # hold finite values -> zero-init once (cheap, a few hundred KB).
    s1[...] = jnp.zeros_like(s1)
    sp1[...] = jnp.zeros_like(sp1)
    s2[...] = jnp.zeros_like(s2)
    sfc[...] = jnp.zeros_like(sfc)

    # ---------------- conv1 (+bias, ReLU) ------------------------------------
    # input lanes:  w*4 + cin   (W=32, cin padded to 4)   -> 128 lanes
    # output lanes: wo*8 + cout (cout padded to 8)        -> 256 lanes
    acc1 = jnp.dot(a0_ref[pl.ds(0, M1), :].astype(bf16), w1_ref[0],
                   preferred_element_type=f32)
    for i in range(1, 5):
        acc1 = acc1 + jnp.dot(a0_ref[pl.ds(i, M1), :].astype(bf16), w1_ref[i],
                              preferred_element_type=f32)
    s1[pl.ds(0, M1), :] = jnp.maximum(acc1 + b1_ref[...], 0.0)

    # ---------------- maxpool 2x2 / 2 ----------------------------------------
    # max over rows {h, h+1} and lane blocks {w, w+1} (block = 8 lanes), then
    # compact the 14 pooled rows of each image onto a 16-row grid.
    p1 = jnp.maximum(
        jnp.maximum(s1[pl.ds(0, M1), pl.ds(0, 248)],
                    s1[pl.ds(1, M1), pl.ds(0, 248)]),
        jnp.maximum(s1[pl.ds(0, M1), pl.ds(8, 248)],
                    s1[pl.ds(1, M1), pl.ds(8, 248)]))
    for n in range(n_img):
        for ph in range(14):
            src = n * 32 + 2 * ph
            sp1[pl.ds(n * 16 + ph, 1), pl.ds(0, 248)] = p1[src:src + 1, :]

    # ---------------- conv2 (+bias, ReLU) ------------------------------------
    # input lanes:  (2*pw)*8 + cin  (pooled 14-grid kept on the 28-grid)
    # output lanes: wo*16 + cout    (wo grid padded to 16) -> 256 lanes
    acc2 = jnp.dot(sp1[pl.ds(0, M2), :].astype(bf16), w2_ref[0],
                   preferred_element_type=f32)
    for i in range(1, 5):
        acc2 = acc2 + jnp.dot(sp1[pl.ds(i, M2), :].astype(bf16), w2_ref[i],
                              preferred_element_type=f32)
    s2[pl.ds(0, M2), :] = jnp.maximum(acc2 + b2_ref[...], 0.0)

    # ---------------- maxpool 2x2 / 2 + flatten -------------------------------
    p2 = jnp.maximum(
        jnp.maximum(s2[pl.ds(0, M2), pl.ds(0, 240)],
                    s2[pl.ds(1, M2), pl.ds(0, 240)]),
        jnp.maximum(s2[pl.ds(0, M2), pl.ds(16, 240)],
                    s2[pl.ds(1, M2), pl.ds(16, 240)]))
    # scatter the 5 pooled rows of each image into one fc row (aligned 256-lane
    # blocks); the torch flatten permutation lives in the pre-permuted wf1.
    for n in range(n_img):
        for ph in range(5):
            src = n * 16 + 2 * ph
            sfc[pl.ds(n, 1), pl.ds(ph * 256, 240)] = p2[src:src + 1, :]

    # ---------------- fully connected head ------------------------------------
    h = jnp.dot(sfc[...].astype(bf16), wf1_ref[...],
                preferred_element_type=f32) + bf1_ref[...]
    h = jnp.maximum(h, 0.0)
    h = jnp.dot(h.astype(bf16), wf2_ref[...],
                preferred_element_type=f32) + bf2_ref[...]
    h = jnp.maximum(h, 0.0)
    h = jnp.dot(h.astype(bf16), wf3_ref[...],
                preferred_element_type=f32) + bf3_ref[...]
    out_ref[...] = h


def _build_call(n_img):
    M1 = n_img * 32
    M2 = n_img * 16
    nfc = ((n_img + 7) // 8) * 8
    vmem = pl.BlockSpec(memory_space=pltpu.MemorySpace.VMEM)
    return pl.pallas_call(
        functools.partial(_lenet_kernel, n_img=n_img),
        out_shape=jax.ShapeDtypeStruct((nfc, 128), jnp.float32),
        in_specs=[vmem] * 11,
        out_specs=vmem,
        scratch_shapes=[
            pltpu.VMEM((M1 + 8, 256), jnp.float32),   # s1 : conv1 output
            pltpu.VMEM((M2 + 8, 256), jnp.float32),   # sp1: pooled 14x14
            pltpu.VMEM((M2 + 8, 256), jnp.float32),   # s2 : conv2 output
            pltpu.VMEM((nfc, 1280), jnp.float32),     # sfc: flattened fc input
        ],
    )


# ----------------------------------------------------------------------------
# One-time host-side parameter preparation (folds im2col / flatten / transpose
# and zero-padding into the weight matrices; runs once, outside the hot path).
# ----------------------------------------------------------------------------
def prepare_params(params):
    w1 = np.asarray(params["conv1_w"], np.float32)   # (6, 3, 5, 5)
    b1 = np.asarray(params["conv1_b"], np.float32)
    w2 = np.asarray(params["conv2_w"], np.float32)   # (16, 6, 5, 5)
    b2 = np.asarray(params["conv2_b"], np.float32)
    f1 = np.asarray(params["fc1_w"], np.float32)     # (120, 400)
    f2 = np.asarray(params["fc2_w"], np.float32)     # (84, 120)
    f3 = np.asarray(params["fc3_w"], np.float32)     # (10, 84)

    # conv1 banded matrices: [i, win*4+ci, wo*8+co] = w1[co, ci, i, win-wo]
    W1 = np.zeros((5, 128, 256), np.float32)
    for i in range(5):
        for wo in range(28):
            for j in range(5):
                win = wo + j
                W1[i, win * 4:win * 4 + 3, wo * 8:wo * 8 + 6] = w1[:, :, i, j].T
    B1 = np.zeros((1, 256), np.float32)
    for wo in range(28):
        B1[0, wo * 8:wo * 8 + 6] = b1

    # conv2 banded matrices: [i, (2*win)*8+ci, wo*16+co] = w2[co, ci, i, win-wo]
    W2 = np.zeros((5, 256, 256), np.float32)
    for i in range(5):
        for wo in range(10):
            for j in range(5):
                win = wo + j
                W2[i, 16 * win:16 * win + 6, wo * 16:wo * 16 + 16] = w2[:, :, i, j].T
    B2 = np.zeros((1, 256), np.float32)
    for wo in range(10):
        B2[0, wo * 16:wo * 16 + 16] = b2

    # fc1: kernel lane ph*256 + (2*pw)*16 + c  <->  torch index c*25 + ph*5 + pw
    f1r = f1.reshape(120, 16, 5, 5)
    WF1 = np.zeros((1280, 128), np.float32)
    for ph in range(5):
        for pw in range(5):
            r0 = ph * 256 + (2 * pw) * 16
            WF1[r0:r0 + 16, :120] = f1r[:, :, ph, pw].T
    BF1 = np.zeros((1, 128), np.float32)
    BF1[0, :120] = np.asarray(params["fc1_b"], np.float32)
    WF2 = np.zeros((128, 128), np.float32)
    WF2[:120, :84] = f2.T
    BF2 = np.zeros((1, 128), np.float32)
    BF2[0, :84] = np.asarray(params["fc2_b"], np.float32)
    WF3 = np.zeros((128, 128), np.float32)
    WF3[:84, :10] = f3.T
    BF3 = np.zeros((1, 128), np.float32)
    BF3[0, :10] = np.asarray(params["fc3_b"], np.float32)

    bf = lambda a: jnp.asarray(a, jnp.bfloat16)
    fl = lambda a: jnp.asarray(a, jnp.float32)
    return {"w1": bf(W1), "b1": fl(B1), "w2": bf(W2), "b2": fl(B2),
            "wf1": bf(WF1), "bf1": fl(BF1), "wf2": bf(WF2), "bf2": fl(BF2),
            "wf3": bf(WF3), "bf3": fl(BF3)}


# ----------------------------------------------------------------------------
# Forward pass (mirrors Net.forward)
# ----------------------------------------------------------------------------
@jax.jit
def net_forward(prep, x):
    n_img, c, h, w = x.shape
    # NCHW -> rows (n, h), lanes (w*4 + c); +8 zero rows for the row shifts.
    a0 = jnp.transpose(x, (0, 2, 3, 1))                       # (N, 32, 32, 3)
    a0 = jnp.pad(a0, ((0, 0), (0, 0), (0, 0), (0, 1)))        # cin -> 4
    a0 = a0.reshape(n_img * 32, 128)
    a0 = jnp.pad(a0, ((0, 8), (0, 0)))
    out = _build_call(n_img)(
        a0, prep["w1"], prep["b1"], prep["w2"], prep["b2"],
        prep["wf1"], prep["bf1"], prep["wf2"], prep["bf2"],
        prep["wf3"], prep["bf3"])
    return out[:n_img, :10]


# ----------------------------------------------------------------------------
# Parameters (deterministic, PyTorch-default-style uniform init)
# ----------------------------------------------------------------------------
def init_params(key):
    ks = jax.random.split(key, 10)

    def u(k, shape, fan_in):
        bound = 1.0 / (fan_in ** 0.5)
        return jax.random.uniform(k, shape, jnp.float32, -bound, bound)

    return {
        "conv1_w": u(ks[0], (6, 3, 5, 5), 3 * 25),
        "conv1_b": u(ks[1], (6,), 3 * 25),
        "conv2_w": u(ks[2], (16, 6, 5, 5), 6 * 25),
        "conv2_b": u(ks[3], (16,), 6 * 25),
        "fc1_w": u(ks[4], (120, 16 * 5 * 5), 16 * 5 * 5),
        "fc1_b": u(ks[5], (120,), 16 * 5 * 5),
        "fc2_w": u(ks[6], (84, 120), 120),
        "fc2_b": u(ks[7], (84,), 120),
        "fc3_w": u(ks[8], (10, 84), 84),
        "fc3_b": u(ks[9], (10,), 84),
    }


# Plain-JAX reference (for a numerical sanity check only).
def net_reference(params, x):
    dn = ("NCHW", "OIHW", "NCHW")
    y = jax.lax.conv_general_dilated(x, params["conv1_w"], (1, 1), "VALID",
                                     dimension_numbers=dn)
    y = jax.nn.relu(y + params["conv1_b"][None, :, None, None])
    y = jax.lax.reduce_window(y, -jnp.inf, jax.lax.max,
                              (1, 1, 2, 2), (1, 1, 2, 2), "VALID")
    y = jax.lax.conv_general_dilated(y, params["conv2_w"], (1, 1), "VALID",
                                     dimension_numbers=dn)
    y = jax.nn.relu(y + params["conv2_b"][None, :, None, None])
    y = jax.lax.reduce_window(y, -jnp.inf, jax.lax.max,
                              (1, 1, 2, 2), (1, 1, 2, 2), "VALID")
    y = y.reshape(y.shape[0], -1)
    y = jax.nn.relu(y @ params["fc1_w"].T + params["fc1_b"])
    y = jax.nn.relu(y @ params["fc2_w"].T + params["fc2_b"])
    return y @ params["fc3_w"].T + params["fc3_b"]


if __name__ == "__main__":
    key = jax.random.PRNGKey(0)
    pkey, xkey = jax.random.split(key)
    params = init_params(pkey)
    prep = prepare_params(params)
    # Net's fc1 = 16*5*5 implies 32x32 spatial input (CIFAR-10 size), NCHW.
    x = jax.random.normal(xkey, (2, 3, 32, 32), dtype=jnp.float32)

    out = net_forward(prep, x)
    jax.block_until_ready(out)
    assert out.shape == (2, 10), out.shape

    # Sanity check vs. plain-JAX reference (loose tol: bf16 matmul operands).
    ref = net_reference(params, x)
    np.testing.assert_allclose(np.asarray(out), np.asarray(ref),
                               rtol=5e-2, atol=5e-2)
    print("KERNEL_OK")
</pallas_src>

<mosaic_0001>
module attributes {stable_mosaic.version = 11 : i64} {
  func.func @_lenet_kernel(%arg0: memref<72x128xf32, #tpu.memory_space<vmem>>, %arg1: memref<5x128x256xbf16, #tpu.memory_space<vmem>>, %arg2: memref<1x256xf32, #tpu.memory_space<vmem>>, %arg3: memref<5x256x256xbf16, #tpu.memory_space<vmem>>, %arg4: memref<1x256xf32, #tpu.memory_space<vmem>>, %arg5: memref<1280x128xbf16, #tpu.memory_space<vmem>>, %arg6: memref<1x128xf32, #tpu.memory_space<vmem>>, %arg7: memref<128x128xbf16, #tpu.memory_space<vmem>>, %arg8: memref<1x128xf32, #tpu.memory_space<vmem>>, %arg9: memref<128x128xbf16, #tpu.memory_space<vmem>>, %arg10: memref<1x128xf32, #tpu.memory_space<vmem>>, %arg11: memref<8x128xf32, #tpu.memory_space<vmem>>, %arg12: memref<72x256xf32, #tpu.memory_space<vmem>>, %arg13: memref<40x256xf32, #tpu.memory_space<vmem>>, %arg14: memref<40x256xf32, #tpu.memory_space<vmem>>, %arg15: memref<8x1280xf32, #tpu.memory_space<vmem>>) attributes {dimension_semantics = [], scalar_prefetch = 0 : i64, scratch_operands = 4 : i64, tpu.core_type = #tpu.core_type<tc>} {
    %cst = arith.constant 0.000000e+00 : f32
    %0 = vector.broadcast %cst : f32 to vector<72x256xf32>
    %c0 = arith.constant 0 : index
    %c0_0 = arith.constant 0 : index
    %1 = vector.load %arg12[%c0, %c0_0] : memref<72x256xf32, #tpu.memory_space<vmem>>, vector<72x256xf32>
    tpu.vector_store %arg12[%c0, %c0_0], %0 {strides = array<i32>} : memref<72x256xf32, #tpu.memory_space<vmem>>, vector<72x256xf32>,
    %cst_1 = arith.constant 0.000000e+00 : f32
    %2 = vector.broadcast %cst_1 : f32 to vector<40x256xf32>
    %c0_2 = arith.constant 0 : index
    %c0_3 = arith.constant 0 : index
    %3 = vector.load %arg13[%c0_2, %c0_3] : memref<40x256xf32, #tpu.memory_space<vmem>>, vector<40x256xf32>
    tpu.vector_store %arg13[%c0_2, %c0_3], %2 {strides = array<i32>} : memref<40x256xf32, #tpu.memory_space<vmem>>, vector<40x256xf32>,
    %cst_4 = arith.constant 0.000000e+00 : f32
    %4 = vector.broadcast %cst_4 : f32 to vector<40x256xf32>
    %c0_5 = arith.constant 0 : index
    %c0_6 = arith.constant 0 : index
    %5 = vector.load %arg14[%c0_5, %c0_6] : memref<40x256xf32, #tpu.memory_space<vmem>>, vector<40x256xf32>
    tpu.vector_store %arg14[%c0_5, %c0_6], %4 {strides = array<i32>} : memref<40x256xf32, #tpu.memory_space<vmem>>, vector<40x256xf32>,
    %cst_7 = arith.constant 0.000000e+00 : f32
    %6 = vector.broadcast %cst_7 : f32 to vector<8x1280xf32>
    %c0_8 = arith.constant 0 : index
    %c0_9 = arith.constant 0 : index
    %7 = vector.load %arg15[%c0_8, %c0_9] : memref<8x1280xf32, #tpu.memory_space<vmem>>, vector<8x1280xf32>
    tpu.vector_store %arg15[%c0_8, %c0_9], %6 {strides = array<i32>} : memref<8x1280xf32, #tpu.memory_space<vmem>>, vector<8x1280xf32>,
    %c0_10 = arith.constant 0 : index
    %c0_11 = arith.constant 0 : index
    %8 = vector.load %arg0[%c0_10, %c0_11] : memref<72x128xf32, #tpu.memory_space<vmem>>, vector<64x128xf32>
    %9 = arith.truncf %8 : vector<64x128xf32> to vector<64x128xbf16>
    %c0_12 = arith.constant 0 : index
    %c0_13 = arith.constant 0 : index
    %c0_14 = arith.constant 0 : index
    %10 = vector.load %arg1[%c0_12, %c0_13, %c0_14] : memref<5x128x256xbf16, #tpu.memory_space<vmem>>, vector<1x128x256xbf16>
    %11 = vector.shape_cast %10 : vector<1x128x256xbf16> to vector<128x256xbf16>
    %cst_15 = arith.constant dense<0.000000e+00> : vector<64x256xf32>
    %12 = tpu.matmul %9, %11, %cst_15 {dimension_numbers = #tpu.dot_dimension_numbers<[1], [0], [0], [1], [0, 0, 1, 1], [], []>} : vector<64x128xbf16>, vector<128x256xbf16>, vector<64x256xf32> -> vector<64x256xf32>
    %c1 = arith.constant 1 : index
    %c0_16 = arith.constant 0 : index
    %13 = vector.load %arg0[%c1, %c0_16] : memref<72x128xf32, #tpu.memory_space<vmem>>, vector<64x128xf32>
    %14 = arith.truncf %13 : vector<64x128xf32> to vector<64x128xbf16>
    %c1_17 = arith.constant 1 : index
    %c0_18 = arith.constant 0 : index
    %c0_19 = arith.constant 0 : index
    %15 = vector.load %arg1[%c1_17, %c0_18, %c0_19] : memref<5x128x256xbf16, #tpu.memory_space<vmem>>, vector<1x128x256xbf16>
    %16 = vector.shape_cast %15 : vector<1x128x256xbf16> to vector<128x256xbf16>
    %cst_20 = arith.constant dense<0.000000e+00> : vector<64x256xf32>
    %17 = tpu.matmul %14, %16, %cst_20 {dimension_numbers = #tpu.dot_dimension_numbers<[1], [0], [0], [1], [0, 0, 1, 1], [], []>} : vector<64x128xbf16>, vector<128x256xbf16>, vector<64x256xf32> -> vector<64x256xf32>
    %18 = arith.addf %12, %17 : vector<64x256xf32>
    %c2 = arith.constant 2 : index
    %c0_21 = arith.constant 0 : index
    %19 = vector.load %arg0[%c2, %c0_21] : memref<72x128xf32, #tpu.memory_space<vmem>>, vector<64x128xf32>
    %20 = arith.truncf %19 : vector<64x128xf32> to vector<64x128xbf16>
    %c2_22 = arith.constant 2 : index
    %c0_23 = arith.constant 0 : index
    %c0_24 = arith.constant 0 : index
    %21 = vector.load %arg1[%c2_22, %c0_23, %c0_24] : memref<5x128x256xbf16, #tpu.memory_space<vmem>>, vector<1x128x256xbf16>
    %22 = vector.shape_cast %21 : vector<1x128x256xbf16> to vector<128x256xbf16>
    %cst_25 = arith.constant dense<0.000000e+00> : vector<64x256xf32>
    %23 = tpu.matmul %20, %22, %cst_25 {dimension_numbers = #tpu.dot_dimension_numbers<[1], [0], [0], [1], [0, 0, 1, 1], [], []>} : vector<64x128xbf16>, vector<128x256xbf16>, vector<64x256xf32> -> vector<64x256xf32>
    %24 = arith.addf %18, %23 : vector<64x256xf32>
    %c3 = arith.constant 3 : index
    %c0_26 = arith.constant 0 : index
    %25 = vector.load %arg0[%c3, %c0_26] : memref<72x128xf32, #tpu.memory_space<vmem>>, vector<64x128xf32>
    %26 = arith.truncf %25 : vector<64x128xf32> to vector<64x128xbf16>
    %c3_27 = arith.constant 3 : index
    %c0_28 = arith.constant 0 : index
    %c0_29 = arith.constant 0 : index
    %27 = vector.load %arg1[%c3_27, %c0_28, %c0_29] : memref<5x128x256xbf16, #tpu.memory_space<vmem>>, vector<1x128x256xbf16>
    %28 = vector.shape_cast %27 : vector<1x128x256xbf16> to vector<128x256xbf16>
    %cst_30 = arith.constant dense<0.000000e+00> : vector<64x256xf32>
    %29 = tpu.matmul %26, %28, %cst_30 {dimension_numbers = #tpu.dot_dimension_numbers<[1], [0], [0], [1], [0, 0, 1, 1], [], []>} : vector<64x128xbf16>, vector<128x256xbf16>, vector<64x256xf32> -> vector<64x256xf32>
    %30 = arith.addf %24, %29 : vector<64x256xf32>
    %c4 = arith.constant 4 : index
    %c0_31 = arith.constant 0 : index
    %31 = vector.load %arg0[%c4, %c0_31] : memref<72x128xf32, #tpu.memory_space<vmem>>, vector<64x128xf32>
    %32 = arith.truncf %31 : vector<64x128xf32> to vector<64x128xbf16>
    %c4_32 = arith.constant 4 : index
    %c0_33 = arith.constant 0 : index
    %c0_34 = arith.constant 0 : index
    %33 = vector.load %arg1[%c4_32, %c0_33, %c0_34] : memref<5x128x256xbf16, #tpu.memory_space<vmem>>, vector<1x128x256xbf16>
    %34 = vector.shape_cast %33 : vector<1x128x256xbf16> to vector<128x256xbf16>
    %cst_35 = arith.constant dense<0.000000e+00> : vector<64x256xf32>
    %35 = tpu.matmul %32, %34, %cst_35 {dimension_numbers = #tpu.dot_dimension_numbers<[1], [0], [0], [1], [0, 0, 1, 1], [], []>} : vector<64x128xbf16>, vector<128x256xbf16>, vector<64x256xf32> -> vector<64x256xf32>
    %36 = arith.addf %30, %35 : vector<64x256xf32>
    %c0_36 = arith.constant 0 : index
    %c0_37 = arith.constant 0 : index
    %37 = vector.load %arg2[%c0_36, %c0_37] : memref<1x256xf32, #tpu.memory_space<vmem>>, vector<1x256xf32>
    %38 = vector.broadcast %37 : vector<1x256xf32> to vector<64x256xf32>
    %39 = arith.addf %36, %38 : vector<64x256xf32>
    %cst_38 = arith.constant 0.000000e+00 : f32
    %40 = vector.broadcast %cst_38 : f32 to vector<64x256xf32>
    %41 = arith.maximumf %39, %40 : vector<64x256xf32>
    %c0_39 = arith.constant 0 : index
    %c0_40 = arith.constant 0 : index
    %42 = vector.load %arg12[%c0_39, %c0_40] : memref<72x256xf32, #tpu.memory_space<vmem>>, vector<64x256xf32>
    tpu.vector_store %arg12[%c0_39, %c0_40], %41 {strides = array<i32>} : memref<72x256xf32, #tpu.memory_space<vmem>>, vector<64x256xf32>,
    %c0_41 = arith.constant 0 : index
    %c0_42 = arith.constant 0 : index
    %43 = vector.load %arg12[%c0_41, %c0_42] : memref<72x256xf32, #tpu.memory_space<vmem>>, vector<64x248xf32>
    %c1_43 = arith.constant 1 : index
    %c0_44 = arith.constant 0 : index
    %44 = vector.load %arg12[%c1_43, %c0_44] : memref<72x256xf32, #tpu.memory_space<vmem>>, vector<64x248xf32>
    %45 = arith.maximumf %43, %44 : vector<64x248xf32>
    %c0_45 = arith.constant 0 : index
    %c8 = arith.constant 8 : index
    %46 = vector.load %arg12[%c0_45, %c8] : memref<72x256xf32, #tpu.memory_space<vmem>>, vector<64x248xf32>
    %c1_46 = arith.constant 1 : index
    %c8_47 = arith.constant 8 : index
    %47 = vector.load %arg12[%c1_46, %c8_47] : memref<72x256xf32, #tpu.memory_space<vmem>>, vector<64x248xf32>
    %48 = arith.maximumf %46, %47 : vector<64x248xf32>
    %49 = arith.maximumf %45, %48 : vector<64x248xf32>
    %50 = vector.extract_strided_slice %49 {offsets = [0, 0], sizes = [1, 248], strides = [1, 1]} : vector<64x248xf32> to vector<1x248xf32>
    %c0_48 = arith.constant 0 : index
    %c0_49 = arith.constant 0 : index
    %51 = vector.load %arg13[%c0_48, %c0_49] : memref<40x256xf32, #tpu.memory_space<vmem>>, vector<1x248xf32>
    tpu.vector_store %arg13[%c0_48, %c0_49], %50 {strides = array<i32>} : memref<40x256xf32, #tpu.memory_space<vmem>>, vector<1x248xf32>,
    %52 = vector.extract_strided_slice %49 {offsets = [2, 0], sizes = [1, 248], strides = [1, 1]} : vector<64x248xf32> to vector<1x248xf32>
    %c1_50 = arith.constant 1 : index
    %c0_51 = arith.constant 0 : index
    %53 = vector.load %arg13[%c1_50, %c0_51] : memref<40x256xf32, #tpu.memory_space<vmem>>, vector<1x248xf32>
    tpu.vector_store %arg13[%c1_50, %c0_51], %52 {strides = array<i32>} : memref<40x256xf32, #tpu.memory_space<vmem>>, vector<1x248xf32>,
    %54 = vector.extract_strided_slice %49 {offsets = [4, 0], sizes = [1, 248], strides = [1, 1]} : vector<64x248xf32> to vector<1x248xf32>
    %c2_52 = arith.constant 2 : index
    %c0_53 = arith.constant 0 : index
    %55 = vector.load %arg13[%c2_52, %c0_53] : memref<40x256xf32, #tpu.memory_space<vmem>>, vector<1x248xf32>
    tpu.vector_store %arg13[%c2_52, %c0_53], %54 {strides = array<i32>} : memref<40x256xf32, #tpu.memory_space<vmem>>, vector<1x248xf32>,
    %56 = vector.extract_strided_slice %49 {offsets = [6, 0], sizes = [1, 248], strides = [1, 1]} : vector<64x248xf32> to vector<1x248xf32>
    %c3_54 = arith.constant 3 : index
    %c0_55 = arith.constant 0 : index
    %57 = vector.load %arg13[%c3_54, %c0_55] : memref<40x256xf32, #tpu.memory_space<vmem>>, vector<1x248xf32>
    tpu.vector_store %arg13[%c3_54, %c0_55], %56 {strides = array<i32>} : memref<40x256xf32, #tpu.memory_space<vmem>>, vector<1x248xf32>,
    %58 = vector.extract_strided_slice %49 {offsets = [8, 0], sizes = [1, 248], strides = [1, 1]} : vector<64x248xf32> to vector<1x248xf32>
    %c4_56 = arith.constant 4 : index
    %c0_57 = arith.constant 0 : index
    %59 = vector.load %arg13[%c4_56, %c0_57] : memref<40x256xf32, #tpu.memory_space<vmem>>, vector<1x248xf32>
    tpu.vector_store %arg13[%c4_56, %c0_57], %58 {strides = array<i32>} : memref<40x256xf32, #tpu.memory_space<vmem>>, vector<1x248xf32>,
    %60 = vector.extract_strided_slice %49 {offsets = [10, 0], sizes = [1, 248], strides = [1, 1]} : vector<64x248xf32> to vector<1x248xf32>
    %c5 = arith.constant 5 : index
    %c0_58 = arith.constant 0 : index
    %61 = vector.load %arg13[%c5, %c0_58] : memref<40x256xf32, #tpu.memory_space<vmem>>, vector<1x248xf32>
    tpu.vector_store %arg13[%c5, %c0_58], %60 {strides = array<i32>} : memref<40x256xf32, #tpu.memory_space<vmem>>, vector<1x248xf32>,
    %62 = vector.extract_strided_slice %49 {offsets = [12, 0], sizes = [1, 248], strides = [1, 1]} : vector<64x248xf32> to vector<1x248xf32>
    %c6 = arith.constant 6 : index
    %c0_59 = arith.constant 0 : index
    %63 = vector.load %arg13[%c6, %c0_59] : memref<40x256xf32, #tpu.memory_space<vmem>>, vector<1x248xf32>
    tpu.vector_store %arg13[%c6, %c0_59], %62 {strides = array<i32>} : memref<40x256xf32, #tpu.memory_space<vmem>>, vector<1x248xf32>,
    %64 = vector.extract_strided_slice %49 {offsets = [14, 0], sizes = [1, 248], strides = [1, 1]} : vector<64x248xf32> to vector<1x248xf32>
    %c7 = arith.constant 7 : index
    %c0_60 = arith.constant 0 : index
    %65 = vector.load %arg13[%c7, %c0_60] : memref<40x256xf32, #tpu.memory_space<vmem>>, vector<1x248xf32>
    tpu.vector_store %arg13[%c7, %c0_60], %64 {strides = array<i32>} : memref<40x256xf32, #tpu.memory_space<vmem>>, vector<1x248xf32>,
    %66 = vector.extract_strided_slice %49 {offsets = [16, 0], sizes = [1, 248], strides = [1, 1]} : vector<64x248xf32> to vector<1x248xf32>
    %c8_61 = arith.constant 8 : index
    %c0_62 = arith.constant 0 : index
    %67 = vector.load %arg13[%c8_61, %c0_62] : memref<40x256xf32, #tpu.memory_space<vmem>>, vector<1x248xf32>
    tpu.vector_store %arg13[%c8_61, %c0_62], %66 {strides = array<i32>} : memref<40x256xf32, #tpu.memory_space<vmem>>, vector<1x248xf32>,
    %68 = vector.extract_strided_slice %49 {offsets = [18, 0], sizes = [1, 248], strides = [1, 1]} : vector<64x248xf32> to vector<1x248xf32>
    %c9 = arith.constant 9 : index
    %c0_63 = arith.constant 0 : index
    %69 = vector.load %arg13[%c9, %c0_63] : memref<40x256xf32, #tpu.memory_space<vmem>>, vector<1x248xf32>
    tpu.vector_store %arg13[%c9, %c0_63], %68 {strides = array<i32>} : memref<40x256xf32, #tpu.memory_space<vmem>>, vector<1x248xf32>,
    %70 = vector.extract_strided_slice %49 {offsets = [20, 0], sizes = [1, 248], strides = [1, 1]} : vector<64x248xf32> to vector<1x248xf32>
    %c10 = arith.constant 10 : index
    %c0_64 = arith.constant 0 : index
    %71 = vector.load %arg13[%c10, %c0_64] : memref<40x256xf32, #tpu.memory_space<vmem>>, vector<1x248xf32>
    tpu.vector_store %arg13[%c10, %c0_64], %70 {strides = array<i32>} : memref<40x256xf32, #tpu.memory_space<vmem>>, vector<1x248xf32>,
    %72 = vector.extract_strided_slice %49 {offsets = [22, 0], sizes = [1, 248], strides = [1, 1]} : vector<64x248xf32> to vector<1x248xf32>
    %c11 = arith.constant 11 : index
    %c0_65 = arith.constant 0 : index
    %73 = vector.load %arg13[%c11, %c0_65] : memref<40x256xf32, #tpu.memory_space<vmem>>, vector<1x248xf32>
    tpu.vector_store %arg13[%c11, %c0_65], %72 {strides = array<i32>} : memref<40x256xf32, #tpu.memory_space<vmem>>, vector<1x248xf32>,
    %74 = vector.extract_strided_slice %49 {offsets = [24, 0], sizes = [1, 248], strides = [1, 1]} : vector<64x248xf32> to vector<1x248xf32>
    %c12 = arith.constant 12 : index
    %c0_66 = arith.constant 0 : index
    %75 = vector.load %arg13[%c12, %c0_66] : memref<40x256xf32, #tpu.memory_space<vmem>>, vector<1x248xf32>
    tpu.vector_store %arg13[%c12, %c0_66], %74 {strides = array<i32>} : memref<40x256xf32, #tpu.memory_space<vmem>>, vector<1x248xf32>,
    %76 = vector.extract_strided_slice %49 {offsets = [26, 0], sizes = [1, 248], strides = [1, 1]} : vector<64x248xf32> to vector<1x248xf32>
    %c13 = arith.constant 13 : index
    %c0_67 = arith.constant 0 : index
    %77 = vector.load %arg13[%c13, %c0_67] : memref<40x256xf32, #tpu.memory_space<vmem>>, vector<1x248xf32>
    tpu.vector_store %arg13[%c13, %c0_67], %76 {strides = array<i32>} : memref<40x256xf32, #tpu.memory_space<vmem>>, vector<1x248xf32>,
    %78 = vector.extract_strided_slice %49 {offsets = [32, 0], sizes = [1, 248], strides = [1, 1]} : vector<64x248xf32> to vector<1x248xf32>
    %c16 = arith.constant 16 : index
    %c0_68 = arith.constant 0 : index
    %79 = vector.load %arg13[%c16, %c0_68] : memref<40x256xf32, #tpu.memory_space<vmem>>, vector<1x248xf32>
    tpu.vector_store %arg13[%c16, %c0_68], %78 {strides = array<i32>} : memref<40x256xf32, #tpu.memory_space<vmem>>, vector<1x248xf32>,
    %80 = vector.extract_strided_slice %49 {offsets = [34, 0], sizes = [1, 248], strides = [1, 1]} : vector<64x248xf32> to vector<1x248xf32>
    %c17 = arith.constant 17 : index
    %c0_69 = arith.constant 0 : index
    %81 = vector.load %arg13[%c17, %c0_69] : memref<40x256xf32, #tpu.memory_space<vmem>>, vector<1x248xf32>
    tpu.vector_store %arg13[%c17, %c0_69], %80 {strides = array<i32>} : memref<40x256xf32, #tpu.memory_space<vmem>>, vector<1x248xf32>,
    %82 = vector.extract_strided_slice %49 {offsets = [36, 0], sizes = [1, 248], strides = [1, 1]} : vector<64x248xf32> to vector<1x248xf32>
    %c18 = arith.constant 18 : index
    %c0_70 = arith.constant 0 : index
    %83 = vector.load %arg13[%c18, %c0_70] : memref<40x256xf32, #tpu.memory_space<vmem>>, vector<1x248xf32>
    tpu.vector_store %arg13[%c18, %c0_70], %82 {strides = array<i32>} : memref<40x256xf32, #tpu.memory_space<vmem>>, vector<1x248xf32>,
    %84 = vector.extract_strided_slice %49 {offsets = [38, 0], sizes = [1, 248], strides = [1, 1]} : vector<64x248xf32> to vector<1x248xf32>
    %c19 = arith.constant 19 : index
    %c0_71 = arith.constant 0 : index
    %85 = vector.load %arg13[%c19, %c0_71] : memref<40x256xf32, #tpu.memory_space<vmem>>, vector<1x248xf32>
    tpu.vector_store %arg13[%c19, %c0_71], %84 {strides = array<i32>} : memref<40x256xf32, #tpu.memory_space<vmem>>, vector<1x248xf32>,
    %86 = vector.extract_strided_slice %49 {offsets = [40, 0], sizes = [1, 248], strides = [1, 1]} : vector<64x248xf32> to vector<1x248xf32>
    %c20 = arith.constant 20 : index
    %c0_72 = arith.constant 0 : index
    %87 = vector.load %arg13[%c20, %c0_72] : memref<40x256xf32, #tpu.memory_space<vmem>>, vector<1x248xf32>
    tpu.vector_store %arg13[%c20, %c0_72], %86 {strides = array<i32>} : memref<40x256xf32, #tpu.memory_space<vmem>>, vector<1x248xf32>,
    %88 = vector.extract_strided_slice %49 {offsets = [42, 0], sizes = [1, 248], strides = [1, 1]} : vector<64x248xf32> to vector<1x248xf32>
    %c21 = arith.constant 21 : index
    %c0_73 = arith.constant 0 : index
    %89 = vector.load %arg13[%c21, %c0_73] : memref<40x256xf32, #tpu.memory_space<vmem>>, vector<1x248xf32>
    tpu.vector_store %arg13[%c21, %c0_73], %88 {strides = array<i32>} : memref<40x256xf32, #tpu.memory_space<vmem>>, vector<1x248xf32>,
    %90 = vector.extract_strided_slice %49 {offsets = [44, 0], sizes = [1, 248], strides = [1, 1]} : vector<64x248xf32> to vector<1x248xf32>
    %c22 = arith.constant 22 : index
    %c0_74 = arith.constant 0 : index
    %91 = vector.load %arg13[%c22, %c0_74] : memref<40x256xf32, #tpu.memory_space<vmem>>, vector<1x248xf32>
    tpu.vector_store %arg13[%c22, %c0_74], %90 {strides = array<i32>} : memref<40x256xf32, #tpu.memory_space<vmem>>, vector<1x248xf32>,
    %92 = vector.extract_strided_slice %49 {offsets = [46, 0], sizes = [1, 248], strides = [1, 1]} : vector<64x248xf32> to vector<1x248xf32>
    %c23 = arith.constant 23 : index
    %c0_75 = arith.constant 0 : index
    %93 = vector.load %arg13[%c23, %c0_75] : memref<40x256xf32, #tpu.memory_space<vmem>>, vector<1x248xf32>
    tpu.vector_store %arg13[%c23, %c0_75], %92 {strides = array<i32>} : memref<40x256xf32, #tpu.memory_space<vmem>>, vector<1x248xf32>,
    %94 = vector.extract_strided_slice %49 {offsets = [48, 0], sizes = [1, 248], strides = [1, 1]} : vector<64x248xf32> to vector<1x248xf32>
    %c24 = arith.constant 24 : index
    %c0_76 = arith.constant 0 : index
    %95 = vector.load %arg13[%c24, %c0_76] : memref<40x256xf32, #tpu.memory_space<vmem>>, vector<1x248xf32>
    tpu.vector_store %arg13[%c24, %c0_76], %94 {strides = array<i32>} : memref<40x256xf32, #tpu.memory_space<vmem>>, vector<1x248xf32>,
    %96 = vector.extract_strided_slice %49 {offsets = [50, 0], sizes = [1, 248], strides = [1, 1]} : vector<64x248xf32> to vector<1x248xf32>
    %c25 = arith.constant 25 : index
    %c0_77 = arith.constant 0 : index
    %97 = vector.load %arg13[%c25, %c0_77] : memref<40x256xf32, #tpu.memory_space<vmem>>, vector<1x248xf32>
    tpu.vector_store %arg13[%c25, %c0_77], %96 {strides = array<i32>} : memref<40x256xf32, #tpu.memory_space<vmem>>, vector<1x248xf32>,
    %98 = vector.extract_strided_slice %49 {offsets = [52, 0], sizes = [1, 248], strides = [1, 1]} : vector<64x248xf32> to vector<1x248xf32>
    %c26 = arith.constant 26 : index
    %c0_78 = arith.constant 0 : index
    %99 = vector.load %arg13[%c26, %c0_78] : memref<40x256xf32, #tpu.memory_space<vmem>>, vector<1x248xf32>
    tpu.vector_store %arg13[%c26, %c0_78], %98 {strides = array<i32>} : memref<40x256xf32, #tpu.memory_space<vmem>>, vector<1x248xf32>,
    %100 = vector.extract_strided_slice %49 {offsets = [54, 0], sizes = [1, 248], strides = [1, 1]} : vector<64x248xf32> to vector<1x248xf32>
    %c27 = arith.constant 27 : index
    %c0_79 = arith.constant 0 : index
    %101 = vector.load %arg13[%c27, %c0_79] : memref<40x256xf32, #tpu.memory_space<vmem>>, vector<1x248xf32>
    tpu.vector_store %arg13[%c27, %c0_79], %100 {strides = array<i32>} : memref<40x256xf32, #tpu.memory_space<vmem>>, vector<1x248xf32>,
    %102 = vector.extract_strided_slice %49 {offsets = [56, 0], sizes = [1, 248], strides = [1, 1]} : vector<64x248xf32> to vector<1x248xf32>
    %c28 = arith.constant 28 : index
    %c0_80 = arith.constant 0 : index
    %103 = vector.load %arg13[%c28, %c0_80] : memref<40x256xf32, #tpu.memory_space<vmem>>, vector<1x248xf32>
    tpu.vector_store %arg13[%c28, %c0_80], %102 {strides = array<i32>} : memref<40x256xf32, #tpu.memory_space<vmem>>, vector<1x248xf32>,
    %104 = vector.extract_strided_slice %49 {offsets = [58, 0], sizes = [1, 248], strides = [1, 1]} : vector<64x248xf32> to vector<1x248xf32>
    %c29 = arith.constant 29 : index
    %c0_81 = arith.constant 0 : index
    %105 = vector.load %arg13[%c29, %c0_81] : memref<40x256xf32, #tpu.memory_space<vmem>>, vector<1x248xf32>
    tpu.vector_store %arg13[%c29, %c0_81], %104 {strides = array<i32>} : memref<40x256xf32, #tpu.memory_space<vmem>>, vector<1x248xf32>,
    %c0_82 = arith.constant 0 : index
    %c0_83 = arith.constant 0 : index
    %106 = vector.load %arg13[%c0_82, %c0_83] : memref<40x256xf32, #tpu.memory_space<vmem>>, vector<32x256xf32>
    %107 = arith.truncf %106 : vector<32x256xf32> to vector<32x256xbf16>
    %c0_84 = arith.constant 0 : index
    %c0_85 = arith.constant 0 : index
    %c0_86 = arith.constant 0 : index
    %108 = vector.load %arg3[%c0_84, %c0_85, %c0_86] : memref<5x256x256xbf16, #tpu.memory_space<vmem>>, vector<1x256x256xbf16>
    %109 = vector.shape_cast %108 : vector<1x256x256xbf16> to vector<256x256xbf16>
    %cst_87 = arith.constant dense<0.000000e+00> : vector<32x256xf32>
    %110 = tpu.matmul %107, %109, %cst_87 {dimension_numbers = #tpu.dot_dimension_numbers<[1], [0], [0], [1], [0, 0, 1, 1], [], []>} : vector<32x256xbf16>, vector<256x256xbf16>, vector<32x256xf32> -> vector<32x256xf32>
    %c1_88 = arith.constant 1 : index
    %c0_89 = arith.constant 0 : index
    %111 = vector.load %arg13[%c1_88, %c0_89] : memref<40x256xf32, #tpu.memory_space<vmem>>, vector<32x256xf32>
    %112 = arith.truncf %111 : vector<32x256xf32> to vector<32x256xbf16>
    %c1_90 = arith.constant 1 : index
    %c0_91 = arith.constant 0 : index
    %c0_92 = arith.constant 0 : index
    %113 = vector.load %arg3[%c1_90, %c0_91, %c0_92] : memref<5x256x256xbf16, #tpu.memory_space<vmem>>, vector<1x256x256xbf16>
    %114 = vector.shape_cast %113 : vector<1x256x256xbf16> to vector<256x256xbf16>
    %cst_93 = arith.constant dense<0.000000e+00> : vector<32x256xf32>
    %115 = tpu.matmul %112, %114, %cst_93 {dimension_numbers = #tpu.dot_dimension_numbers<[1], [0], [0], [1], [0, 0, 1, 1], [], []>} : vector<32x256xbf16>, vector<256x256xbf16>, vector<32x256xf32> -> vector<32x256xf32>
    %116 = arith.addf %110, %115 : vector<32x256xf32>
    %c2_94 = arith.constant 2 : index
    %c0_95 = arith.constant 0 : index
    %117 = vector.load %arg13[%c2_94, %c0_95] : memref<40x256xf32, #tpu.memory_space<vmem>>, vector<32x256xf32>
    %118 = arith.truncf %117 : vector<32x256xf32> to vector<32x256xbf16>
    %c2_96 = arith.constant 2 : index
    %c0_97 = arith.constant 0 : index
    %c0_98 = arith.constant 0 : index
    %119 = vector.load %arg3[%c2_96, %c0_97, %c0_98] : memref<5x256x256xbf16, #tpu.memory_space<vmem>>, vector<1x256x256xbf16>
    %120 = vector.shape_cast %119 : vector<1x256x256xbf16> to vector<256x256xbf16>
    %cst_99 = arith.constant dense<0.000000e+00> : vector<32x256xf32>
    %121 = tpu.matmul %118, %120, %cst_99 {dimension_numbers = #tpu.dot_dimension_numbers<[1], [0], [0], [1], [0, 0, 1, 1], [], []>} : vector<32x256xbf16>, vector<256x256xbf16>, vector<32x256xf32> -> vector<32x256xf32>
    %122 = arith.addf %116, %121 : vector<32x256xf32>
    %c3_100 = arith.constant 3 : index
    %c0_101 = arith.constant 0 : index
    %123 = vector.load %arg13[%c3_100, %c0_101] : memref<40x256xf32, #tpu.memory_space<vmem>>, vector<32x256xf32>
    %124 = arith.truncf %123 : vector<32x256xf32> to vector<32x256xbf16>
    %c3_102 = arith.constant 3 : index
    %c0_103 = arith.constant 0 : index
    %c0_104 = arith.constant 0 : index
    %125 = vector.load %arg3[%c3_102, %c0_103, %c0_104] : memref<5x256x256xbf16, #tpu.memory_space<vmem>>, vector<1x256x256xbf16>
    %126 = vector.shape_cast %125 : vector<1x256x256xbf16> to vector<256x256xbf16>
    %cst_105 = arith.constant dense<0.000000e+00> : vector<32x256xf32>
    %127 = tpu.matmul %124, %126, %cst_105 {dimension_numbers = #tpu.dot_dimension_numbers<[1], [0], [0], [1], [0, 0, 1, 1], [], []>} : vector<32x256xbf16>, vector<256x256xbf16>, vector<32x256xf32> -> vector<32x256xf32>
    %128 = arith.addf %122, %127 : vector<32x256xf32>
    %c4_106 = arith.constant 4 : index
    %c0_107 = arith.constant 0 : index
    %129 = vector.load %arg13[%c4_106, %c0_107] : memref<40x256xf32, #tpu.memory_space<vmem>>, vector<32x256xf32>
    %130 = arith.truncf %129 : vector<32x256xf32> to vector<32x256xbf16>
    %c4_108 = arith.constant 4 : index
    %c0_109 = arith.constant 0 : index
    %c0_110 = arith.constant 0 : index
    %131 = vector.load %arg3[%c4_108, %c0_109, %c0_110] : memref<5x256x256xbf16, #tpu.memory_space<vmem>>, vector<1x256x256xbf16>
    %132 = vector.shape_cast %131 : vector<1x256x256xbf16> to vector<256x256xbf16>
    %cst_111 = arith.constant dense<0.000000e+00> : vector<32x256xf32>
    %133 = tpu.matmul %130, %132, %cst_111 {dimension_numbers = #tpu.dot_dimension_numbers<[1], [0], [0], [1], [0, 0, 1, 1], [], []>} : vector<32x256xbf16>, vector<256x256xbf16>, vector<32x256xf32> -> vector<32x256xf32>
    %134 = arith.addf %128, %133 : vector<32x256xf32>
    %c0_112 = arith.constant 0 : index
    %c0_113 = arith.constant 0 : index
    %135 = vector.load %arg4[%c0_112, %c0_113] : memref<1x256xf32, #tpu.memory_space<vmem>>, vector<1x256xf32>
    %136 = vector.broadcast %135 : vector<1x256xf32> to vector<32x256xf32>
    %137 = arith.addf %134, %136 : vector<32x256xf32>
    %cst_114 = arith.constant 0.000000e+00 : f32
    %138 = vector.broadcast %cst_114 : f32 to vector<32x256xf32>
    %139 = arith.maximumf %137, %138 : vector<32x256xf32>
    %c0_115 = arith.constant 0 : index
    %c0_116 = arith.constant 0 : index
    %140 = vector.load %arg14[%c0_115, %c0_116] : memref<40x256xf32, #tpu.memory_space<vmem>>, vector<32x256xf32>
    tpu.vector_store %arg14[%c0_115, %c0_116], %139 {strides = array<i32>} : memref<40x256xf32, #tpu.memory_space<vmem>>, vector<32x256xf32>,
    %c0_117 = arith.constant 0 : index
    %c0_118 = arith.constant 0 : index
    %141 = vector.load %arg14[%c0_117, %c0_118] : memref<40x256xf32, #tpu.memory_space<vmem>>, vector<32x240xf32>
    %c1_119 = arith.constant 1 : index
    %c0_120 = arith.constant 0 : index
    %142 = vector.load %arg14[%c1_119, %c0_120] : memref<40x256xf32, #tpu.memory_space<vmem>>, vector<32x240xf32>
    %143 = arith.maximumf %141, %142 : vector<32x240xf32>
    %c0_121 = arith.constant 0 : index
    %c16_122 = arith.constant 16 : index
    %144 = vector.load %arg14[%c0_121, %c16_122] : memref<40x256xf32, #tpu.memory_space<vmem>>, vector<32x240xf32>
    %c1_123 = arith.constant 1 : index
    %c16_124 = arith.constant 16 : index
    %145 = vector.load %arg14[%c1_123, %c16_124] : memref<40x256xf32, #tpu.memory_space<vmem>>, vector<32x240xf32>
    %146 = arith.maximumf %144, %145 : vector<32x240xf32>
    %147 = arith.maximumf %143, %146 : vector<32x240xf32>
    %148 = vector.extract_strided_slice %147 {offsets = [0, 0], sizes = [1, 240], strides = [1, 1]} : vector<32x240xf32> to vector<1x240xf32>
    %c0_125 = arith.constant 0 : index
    %c0_126 = arith.constant 0 : index
    %149 = vector.load %arg15[%c0_125, %c0_126] : memref<8x1280xf32, #tpu.memory_space<vmem>>, vector<1x240xf32>
    tpu.vector_store %arg15[%c0_125, %c0_126], %148 {strides = array<i32>} : memref<8x1280xf32, #tpu.memory_space<vmem>>, vector<1x240xf32>,
    %150 = vector.extract_strided_slice %147 {offsets = [2, 0], sizes = [1, 240], strides = [1, 1]} : vector<32x240xf32> to vector<1x240xf32>
    %c0_127 = arith.constant 0 : index
    %c256 = arith.constant 256 : index
    %151 = vector.load %arg15[%c0_127, %c256] : memref<8x1280xf32, #tpu.memory_space<vmem>>, vector<1x240xf32>
    tpu.vector_store %arg15[%c0_127, %c256], %150 {strides = array<i32>} : memref<8x1280xf32, #tpu.memory_space<vmem>>, vector<1x240xf32>,
    %152 = vector.extract_strided_slice %147 {offsets = [4, 0], sizes = [1, 240], strides = [1, 1]} : vector<32x240xf32> to vector<1x240xf32>
    %c0_128 = arith.constant 0 : index
    %c512 = arith.constant 512 : index
    %153 = vector.load %arg15[%c0_128, %c512] : memref<8x1280xf32, #tpu.memory_space<vmem>>, vector<1x240xf32>
    tpu.vector_store %arg15[%c0_128, %c512], %152 {strides = array<i32>} : memref<8x1280xf32, #tpu.memory_space<vmem>>, vector<1x240xf32>,
    %154 = vector.extract_strided_slice %147 {offsets = [6, 0], sizes = [1, 240], strides = [1, 1]} : vector<32x240xf32> to vector<1x240xf32>
    %c0_129 = arith.constant 0 : index
    %c768 = arith.constant 768 : index
    %155 = vector.load %arg15[%c0_129, %c768] : memref<8x1280xf32, #tpu.memory_space<vmem>>, vector<1x240xf32>
    tpu.vector_store %arg15[%c0_129, %c768], %154 {strides = array<i32>} : memref<8x1280xf32, #tpu.memory_space<vmem>>, vector<1x240xf32>,
    %156 = vector.extract_strided_slice %147 {offsets = [8, 0], sizes = [1, 240], strides = [1, 1]} : vector<32x240xf32> to vector<1x240xf32>
    %c0_130 = arith.constant 0 : index
    %c1024 = arith.constant 1024 : index
    %157 = vector.load %arg15[%c0_130, %c1024] : memref<8x1280xf32, #tpu.memory_space<vmem>>, vector<1x240xf32>
    tpu.vector_store %arg15[%c0_130, %c1024], %156 {strides = array<i32>} : memref<8x1280xf32, #tpu.memory_space<vmem>>, vector<1x240xf32>,
    %158 = vector.extract_strided_slice %147 {offsets = [16, 0], sizes = [1, 240], strides = [1, 1]} : vector<32x240xf32> to vector<1x240xf32>
    %c1_131 = arith.constant 1 : index
    %c0_132 = arith.constant 0 : index
    %159 = vector.load %arg15[%c1_131, %c0_132] : memref<8x1280xf32, #tpu.memory_space<vmem>>, vector<1x240xf32>
    tpu.vector_store %arg15[%c1_131, %c0_132], %158 {strides = array<i32>} : memref<8x1280xf32, #tpu.memory_space<vmem>>, vector<1x240xf32>,
    %160 = vector.extract_strided_slice %147 {offsets = [18, 0], sizes = [1, 240], strides = [1, 1]} : vector<32x240xf32> to vector<1x240xf32>
    %c1_133 = arith.constant 1 : index
    %c256_134 = arith.constant 256 : index
    %161 = vector.load %arg15[%c1_133, %c256_134] : memref<8x1280xf32, #tpu.memory_space<vmem>>, vector<1x240xf32>
    tpu.vector_store %arg15[%c1_133, %c256_134], %160 {strides = array<i32>} : memref<8x1280xf32, #tpu.memory_space<vmem>>, vector<1x240xf32>,
    %162 = vector.extract_strided_slice %147 {offsets = [20, 0], sizes = [1, 240], strides = [1, 1]} : vector<32x240xf32> to vector<1x240xf32>
    %c1_135 = arith.constant 1 : index
    %c512_136 = arith.constant 512 : index
    %163 = vector.load %arg15[%c1_135, %c512_136] : memref<8x1280xf32, #tpu.memory_space<vmem>>, vector<1x240xf32>
    tpu.vector_store %arg15[%c1_135, %c512_136], %162 {strides = array<i32>} : memref<8x1280xf32, #tpu.memory_space<vmem>>, vector<1x240xf32>,
    %164 = vector.extract_strided_slice %147 {offsets = [22, 0], sizes = [1, 240], strides = [1, 1]} : vector<32x240xf32> to vector<1x240xf32>
    %c1_137 = arith.constant 1 : index
    %c768_138 = arith.constant 768 : index
    %165 = vector.load %arg15[%c1_137, %c768_138] : memref<8x1280xf32, #tpu.memory_space<vmem>>, vector<1x240xf32>
    tpu.vector_store %arg15[%c1_137, %c768_138], %164 {strides = array<i32>} : memref<8x1280xf32, #tpu.memory_space<vmem>>, vector<1x240xf32>,
    %166 = vector.extract_strided_slice %147 {offsets = [24, 0], sizes = [1, 240], strides = [1, 1]} : vector<32x240xf32> to vector<1x240xf32>
    %c1_139 = arith.constant 1 : index
    %c1024_140 = arith.constant 1024 : index
    %167 = vector.load %arg15[%c1_139, %c1024_140] : memref<8x1280xf32, #tpu.memory_space<vmem>>, vector<1x240xf32>
    tpu.vector_store %arg15[%c1_139, %c1024_140], %166 {strides = array<i32>} : memref<8x1280xf32, #tpu.memory_space<vmem>>, vector<1x240xf32>,
    %c0_141 = arith.constant 0 : index
    %c0_142 = arith.constant 0 : index
    %168 = vector.load %arg15[%c0_141, %c0_142] : memref<8x1280xf32, #tpu.memory_space<vmem>>, vector<8x1280xf32>
    %169 = arith.truncf %168 : vector<8x1280xf32> to vector<8x1280xbf16>
    %c0_143 = arith.constant 0 : index
    %c0_144 = arith.constant 0 : index
    %170 = vector.load %arg5[%c0_143, %c0_144] : memref<1280x128xbf16, #tpu.memory_space<vmem>>, vector<1280x128xbf16>
    %cst_145 = arith.constant dense<0.000000e+00> : vector<8x128xf32>
    %171 = tpu.matmul %169, %170, %cst_145 {dimension_numbers = #tpu.dot_dimension_numbers<[1], [0], [0], [1], [0, 0, 1, 1], [], []>} : vector<8x1280xbf16>, vector<1280x128xbf16>, vector<8x128xf32> -> vector<8x128xf32>
    %c0_146 = arith.constant 0 : index
    %c0_147 = arith.constant 0 : index
    %172 = vector.load %arg6[%c0_146, %c0_147] : memref<1x128xf32, #tpu.memory_space<vmem>>, vector<1x128xf32>
    %173 = vector.broadcast %172 : vector<1x128xf32> to vector<8x128xf32>
    %174 = arith.addf %171, %173 : vector<8x128xf32>
    %cst_148 = arith.constant 0.000000e+00 : f32
    %175 = vector.broadcast %cst_148 : f32 to vector<8x128xf32>
    %176 = arith.maximumf %174, %175 : vector<8x128xf32>
    %177 = arith.truncf %176 : vector<8x128xf32> to vector<8x128xbf16>
    %c0_149 = arith.constant 0 : index
    %c0_150 = arith.constant 0 : index
    %178 = vector.load %arg7[%c0_149, %c0_150] : memref<128x128xbf16, #tpu.memory_space<vmem>>, vector<128x128xbf16>
    %cst_151 = arith.constant dense<0.000000e+00> : vector<8x128xf32>
    %179 = tpu.matmul %177, %178, %cst_151 {dimension_numbers = #tpu.dot_dimension_numbers<[1], [0], [0], [1], [0, 0, 1, 1], [], []>} : vector<8x128xbf16>, vector<128x128xbf16>, vector<8x128xf32> -> vector<8x128xf32>
    %c0_152 = arith.constant 0 : index
    %c0_153 = arith.constant 0 : index
    %180 = vector.load %arg8[%c0_152, %c0_153] : memref<1x128xf32, #tpu.memory_space<vmem>>, vector<1x128xf32>
    %181 = vector.broadcast %180 : vector<1x128xf32> to vector<8x128xf32>
    %182 = arith.addf %179, %181 : vector<8x128xf32>
    %cst_154 = arith.constant 0.000000e+00 : f32
    %183 = vector.broadcast %cst_154 : f32 to vector<8x128xf32>
    %184 = arith.maximumf %182, %183 : vector<8x128xf32>
    %185 = arith.truncf %184 : vector<8x128xf32> to vector<8x128xbf16>
    %c0_155 = arith.constant 0 : index
    %c0_156 = arith.constant 0 : index
    %186 = vector.load %arg9[%c0_155, %c0_156] : memref<128x128xbf16, #tpu.memory_space<vmem>>, vector<128x128xbf16>
    %cst_157 = arith.constant dense<0.000000e+00> : vector<8x128xf32>
    %187 = tpu.matmul %185, %186, %cst_157 {dimension_numbers = #tpu.dot_dimension_numbers<[1], [0], [0], [1], [0, 0, 1, 1], [], []>} : vector<8x128xbf16>, vector<128x128xbf16>, vector<8x128xf32> -> vector<8x128xf32>
    %c0_158 = arith.constant 0 : index
    %c0_159 = arith.constant 0 : index
    %188 = vector.load %arg10[%c0_158, %c0_159] : memref<1x128xf32, #tpu.memory_space<vmem>>, vector<1x128xf32>
    %189 = vector.broadcast %188 : vector<1x128xf32> to vector<8x128xf32>
    %190 = arith.addf %187, %189 : vector<8x128xf32>
    %c0_160 = arith.constant 0 : index
    %c0_161 = arith.constant 0 : index
    %191 = vector.load %arg11[%c0_160, %c0_161] : memref<8x128xf32, #tpu.memory_space<vmem>>, vector<8x128xf32>
    tpu.vector_store %arg11[%c0_160, %c0_161], %190 {strides = array<i32>} : memref<8x128xf32, #tpu.memory_space<vmem>>, vector<8x128xf32>,
    return
  }
}

</mosaic_0001>

<bundles_post_ra>
// kernel: net_forward.1
= control target key start
LH: loop header
LB: loop body
LE: loop exit
PB: predicated region body
PF: predicated region fallthrough
CT: control target
= control target key end

     0   :  { %16 = vsyncpa [#allocation7], 0  ;;  %s7121_s0 = inlined_call_operand.vmem [shape: f32[72,128], index: 0, kind: input, shape index: {}]   ;;  %s7122_s1 = inlined_call_operand.hbm [shape: bf16[5,128,256], index: 1, kind: input, shape index: {}]   ;;  %s7123_s2 = inlined_call_operand.vmem [shape: f32[1,256], index: 2, kind: input, shape index: {}]   ;;  %s7124_s3 = inlined_call_operand.vmem [shape: bf16[5,256,256], index: 3, kind: input, shape index: {}]   ;;  %s7125_s4 = inlined_call_operand.vmem [shape: f32[1,256], index: 4, kind: input, shape index: {}]   ;;  %s7126_s5 = inlined_call_operand.hbm [shape: bf16[1280,128], index: 5, kind: input, shape index: {}]   ;;  %s7127_s6 = inlined_call_operand.vmem [shape: f32[1,128], index: 6, kind: input, shape index: {}]   ;;  %s7128_s7 = inlined_call_operand.vmem [shape: bf16[128,128], index: 7, kind: input, shape index: {}]   ;;  %s7129_s8 = inlined_call_operand.vmem [shape: f32[1,128], index: 8, kind: input, shape index: {}]   ;;  %s7130_s9 = inlined_call_operand.vmem [shape: bf16[128,128], index: 9, kind: input, shape index: {}]   ;;  %s7131_s10 = inlined_call_operand.vmem [shape: f32[1,128], index: 10, kind: input, shape index: {}]   ;;  %s7132_s11 = inlined_call_operand.vmem [shape: f32[8,128], index: 11, kind: output, shape index: {}]  }
   0x1   :  { %17 = vsyncpa [#allocation9], 0  ;;  %s5666_s17 = smov [#allocation6]  }
   0x2   :  { %s25_s18 = sshll.u32 %s5666_s17, 4  ;;  %s26_s18 = int_to_ptr.vmem [resolvable:$true] %s25_s18 }
   0x3   :  { %s5630_s19 = scalar_lea.vmem %s26_s18, 10240  ;;  %p5635_p1 = scmp.lt.s32.totalorder %s26_s18, %s26_s18 }
   0x4   :  { %p5631_p0 = scmp.ne.s32.totalorder %s26_s18, %s5630_s19  ;;  %p5636_p2 = scmp.lt.s32.totalorder %s5630_s19, %s5630_s19 }
   0x6   :  { %p5637_p3 = por %p5636_p2, %p5635_p1 }
   0x8   :  { %p5638_p4 = pnand %p5637_p3, %p5631_p0 }
   0xa   :  { %5641 = shalt.err (!%p5638_p4)
}
   0xb   :  { %s5667_s20 = smov 128   ;;  %s5668_s21 = smov 8  }
   0xc   :  { %31 = dma.hbm_to_vmem [thread:$0]  %s7122_s1, 10240, %s26_s18, [#allocation7], %s5667_s20, %s5667_s20, %s5668_s21  }
   0xd   :  { %s5669_s24 = smov [#allocation8]  }
   0xe   :  { %s43_s25 = sshll.u32 %s5669_s24, 4  ;;  %s44_s25 = int_to_ptr.vmem [resolvable:$true] %s43_s25 }
   0xf   :  { %s5650_s26 = scalar_lea.vmem %s44_s25, 10240  ;;  %p5655_p6 = scmp.lt.s32.totalorder %s44_s25, %s44_s25 }
  0x10   :  { %p5651_p5 = scmp.ne.s32.totalorder %s44_s25, %s5650_s26  ;;  %p5656_p7 = scmp.lt.s32.totalorder %s5650_s26, %s5650_s26 }
  0x12   :  { %p5657_p8 = por %p5656_p7, %p5655_p6 }
  0x14   :  { %p5658_p9 = pnand %p5657_p8, %p5651_p5 }
  0x16   :  { %5661 = shalt.err (!%p5658_p9)
}
  0x17   :  { %s5670_s27 = smov 64   ;;  %s5671_s28 = smov 4  }
  0x18   :  { %49 = dma.hbm_to_vmem [thread:$0]  %s7126_s5, 10240, %s44_s25, [#allocation9], %s5670_s27, %s5670_s27, %s5671_s28  }
  0x19   :  { %5662 = dma.done.wait [#allocation7], 10240  }
  0x1a   :  { %5663 = vsyncadd [#allocation7], 4294957056 }
  0x1b   :  { %5664 = dma.done.wait [#allocation9], 10240  }
  0x1c   :  { %5665 = vsyncadd [#allocation9], 4294957056  ;;  %v5672_v0 = vmov 0   ;;  %v5165_v1 = vld [vmem:[#allocation6 + $0xf4] ss:$8 sps:$4 sm:$0xff]   ;;  %v143_v33 = vld [vmem:[%s7121_s0 + $0x1] sm:$0xff] }
  0x1d   :  { %284 = vmatprep.mubr.bf16.mxu0 %v5672_v0  ;;  %437 = vmatprep.mubr.bf16.mxu1 %v5672_v0  ;;  %v5167_v2 = vld [vmem:[#allocation6 + $0x74] ss:$8 sps:$4 sm:$0xff]   ;;  %v5169_v3 = vld [vmem:[#allocation6 + $0xf0] ss:$8 sps:$4 sm:$0xff]   ;;  %v5171_v5 = vld [vmem:[#allocation6 + $0xe4] ss:$8 sps:$4 sm:$0xff]  }
  0x1e   :  { %252 = vmatprep.subr.bf16.mxu0 %v5165_v1  ;;  %v5170_v4 = vld [vmem:[#allocation6 + $0x70] ss:$8 sps:$4 sm:$0xff]   ;;  %405 = vmatprep.subr.bf16.mxu1 %v5167_v2  ;;  %v5173_v6 = vld [vmem:[#allocation6 + $0x64] ss:$8 sps:$4 sm:$0xff]   ;;  %v5175_v7 = vld [vmem:[#allocation6 + $0xe0] ss:$8 sps:$4 sm:$0xff]  }
  0x1f   :  { %253 = vmatpush1.bf16.msra.mxu0 %v5169_v3  ;;  %406 = vmatpush1.bf16.msra.mxu1 %v5170_v4  ;;  %v5176_v8 = vld [vmem:[#allocation6 + $0x60] ss:$8 sps:$4 sm:$0xff]   ;;  %v5177_v9 = vld [vmem:[#allocation6 + $0xd4] ss:$8 sps:$4 sm:$0xff]   ;;  %v5181_v11 = vld [vmem:[#allocation6 + $0xd0] ss:$8 sps:$4 sm:$0xff]  }
  0x20   :  { %254 = vmatprep.subr.bf16.mxu0 %v5171_v5  ;;  %407 = vmatprep.subr.bf16.mxu1 %v5173_v6  ;;  %v5179_v10 = vld [vmem:[#allocation6 + $0x54] ss:$8 sps:$4 sm:$0xff]   ;;  %v5182_v12 = vld [vmem:[#allocation6 + $0x50] ss:$8 sps:$4 sm:$0xff]   ;;  %v5183_v13 = vld [vmem:[#allocation6 + $0xc4] ss:$8 sps:$4 sm:$0xff]  }
  0x21   :  { %v5185_v14 = vld [vmem:[#allocation6 + $0x44] ss:$8 sps:$4 sm:$0xff]   ;;  %v5187_v15 = vld [vmem:[#allocation6 + $0xc0] ss:$8 sps:$4 sm:$0xff]   ;;  %v5189_v17 = vld [vmem:[#allocation6 + $0xb4] ss:$8 sps:$4 sm:$0xff]  }
  0x22   :  { %v5188_v16 = vld [vmem:[#allocation6 + $0x40] ss:$8 sps:$4 sm:$0xff]   ;;  %v5191_v18 = vld [vmem:[#allocation6 + $0x34] ss:$8 sps:$4 sm:$0xff]   ;;  %v5193_v19 = vld [vmem:[#allocation6 + $0xb0] ss:$8 sps:$4 sm:$0xff]  }
  0x23   :  { %255 = vmatpush1.bf16.msra.mxu0 %v5175_v7  ;;  %408 = vmatpush1.bf16.msra.mxu1 %v5176_v8  ;;  %v5194_v20 = vld [vmem:[#allocation6 + $0x30] ss:$8 sps:$4 sm:$0xff]   ;;  %v5195_v21 = vld [vmem:[#allocation6 + $0xa4] ss:$8 sps:$4 sm:$0xff]   ;;  %v5199_v23 = vld [vmem:[#allocation6 + $0xa0] ss:$8 sps:$4 sm:$0xff]  }
  0x24   :  { %256 = vmatprep.subr.bf16.mxu0 %v5177_v9  ;;  %409 = vmatprep.subr.bf16.mxu1 %v5179_v10  ;;  %v5197_v22 = vld [vmem:[#allocation6 + $0x24] ss:$8 sps:$4 sm:$0xff]   ;;  %v5200_v24 = vld [vmem:[#allocation6 + $0x20] ss:$8 sps:$4 sm:$0xff]   ;;  %v5201_v25 = vld [vmem:[#allocation6 + $0x94] ss:$8 sps:$4 sm:$0xff]  }
  0x25   :  { %v5203_v26 = vld [vmem:[#allocation6 + $0x14] ss:$8 sps:$4 sm:$0xff]   ;;  %v5205_v27 = vld [vmem:[#allocation6 + $0x90] ss:$8 sps:$4 sm:$0xff]   ;;  %v5207_v29 = vld [vmem:[#allocation6 + $0x84] ss:$8 sps:$4 sm:$0xff]  }
  0x26   :  { %v5206_v28 = vld [vmem:[#allocation6 + $0x10] ss:$8 sps:$4 sm:$0xff]   ;;  %v5209_v30 = vld [vmem:[#allocation6 + $0x4] ss:$8 sps:$4 sm:$0xff]   ;;  %v5211_v31 = vld [vmem:[#allocation6 + $0x80] ss:$8 sps:$4 sm:$0xff]  }
  0x27   :  { %257 = vmatpush1.bf16.msra.mxu0 %v5181_v11  ;;  %410 = vmatpush1.bf16.msra.mxu1 %v5182_v12  ;;  %v5212_v32 = vld [vmem:[#allocation6] ss:$8 sps:$4 sm:$0xff]   ;;  %v5215_v37 = vld [vmem:[#allocation6 + $0x174] ss:$8 sps:$4 sm:$0xff]   ;;  %v5213_v41 = vld [vmem:[#allocation6 + $0x170] ss:$8 sps:$4 sm:$0xff]  }
  0x28   :  { %258 = vmatprep.subr.bf16.mxu0 %v5183_v13  ;;  %411 = vmatprep.subr.bf16.mxu1 %v5185_v14  ;;  %v144_v34 = vld [vmem:[%s7121_s0 + $0x9] sm:$0xff]  ;;  %v115_v35 = vld [vmem:[%s7121_s0] sm:$0xff]  ;;  %v5218_v38 = vld [vmem:[#allocation6 + $0x1f4] ss:$8 sps:$4 sm:$0xff]   ;;  %vm1184_vm0 = vcmask 1046528   ;;  %s5674_s28 = smov 120  }
  0x29   :  { %v116_v36 = vld [vmem:[%s7121_s0 + $0x8] sm:$0xff]  ;;  %v151_v39 = vpack.c.bf16 %v144_v34, %v143_v33  ;;  %v5216_v42 = vld [vmem:[#allocation6 + $0x1f0] ss:$8 sps:$4 sm:$0xff]   ;;  %v5227_v51 = vld [vmem:[#allocation6 + $0x154] ss:$8 sps:$4 sm:$0xff]   ;;  %vm1299_vm1 = vcmask 982016  }
  0x2a   :  { %v123_v40 = vpack.c.bf16 %v116_v36, %v115_v35  ;;  %v5221_v43 = vld [vmem:[#allocation6 + $0x164] ss:$8 sps:$4 sm:$0xff]   ;;  %v5219_v45 = vld [vmem:[#allocation6 + $0x160] ss:$8 sps:$4 sm:$0xff]   ;;  %v145_v47 = vld [vmem:[%s7121_s0 + $0x11] sm:$0xff]  ;;  %vm2896_vm5 = vcmask 1045504  }
  0x2b   :  { %259 = vmatpush1.bf16.msra.mxu0 %v5187_v15  ;;  %412 = vmatpush1.bf16.msra.mxu1 %v5188_v16  ;;  %v5224_v44 = vld [vmem:[#allocation6 + $0x1e4] ss:$8 sps:$4 sm:$0xff]   ;;  %v5222_v46 = vld [vmem:[#allocation6 + $0x1e0] ss:$8 sps:$4 sm:$0xff]   ;;  %v117_v49 = vld [vmem:[%s7121_s0 + $0x10] sm:$0xff]  ;;  %vm3254_vm6 = vcmask 916480  }
  0x2c   :  { %260 = vmatprep.subr.bf16.mxu0 %v5189_v17  ;;  %413 = vmatprep.subr.bf16.mxu1 %v5191_v18  ;;  %v146_v48 = vld [vmem:[%s7121_s0 + $0x19] sm:$0xff]  ;;  %v5233_v57 = vld [vmem:[#allocation6 + $0x144] ss:$8 sps:$4 sm:$0xff]   ;;  %v149_v12 = vld [vmem:[%s7121_s0 + $0x31] sm:$0xff]  ;;  %vm1788_vm3 = vsmask.f32 7424 }
  0x2d   :  { %v118_v50 = vld [vmem:[%s7121_s0 + $0x18] sm:$0xff]  ;;  %v152_v53 = vpack.c.bf16 %v146_v48, %v145_v47  ;;  %v5236_v58 = vld [vmem:[#allocation6 + $0x1c4] ss:$8 sps:$4 sm:$0xff]   ;;  %v5231_v59 = vld [vmem:[#allocation6 + $0x140] ss:$8 sps:$4 sm:$0xff]   ;;  %vm5677_vm8 = vmmov 0  }
  0x2e   :  { %v5230_v52 = vld [vmem:[#allocation6 + $0x1d4] ss:$8 sps:$4 sm:$0xff]   ;;  %v124_v54 = vpack.c.bf16 %v118_v50, %v117_v49  ;;  %v5225_v55 = vld [vmem:[#allocation6 + $0x150] ss:$8 sps:$4 sm:$0xff]   ;;  %v5234_v60 = vld [vmem:[#allocation6 + $0x1c0] ss:$8 sps:$4 sm:$0xff]  }
  0x2f   :  { %261 = vmatpush1.bf16.msra.mxu0 %v5193_v19  ;;  %414 = vmatpush1.bf16.msra.mxu1 %v5194_v20  ;;  %v5228_v56 = vld [vmem:[#allocation6 + $0x1d0] ss:$8 sps:$4 sm:$0xff]   ;;  %v147_v61 = vld [vmem:[%s7121_s0 + $0x21] sm:$0xff]  ;;  %v5239_v2 = vld [vmem:[#allocation6 + $0x134] ss:$8 sps:$4 sm:$0xff]  }
  0x30   :  { %262 = vmatprep.subr.bf16.mxu0 %v5195_v21  ;;  %415 = vmatprep.subr.bf16.mxu1 %v5197_v22  ;;  %v148_v62 = vld [vmem:[%s7121_s0 + $0x29] sm:$0xff]  ;;  %v119_v63 = vld [vmem:[%s7121_s0 + $0x20] sm:$0xff]  ;;  %v5242_v3 = vld [vmem:[#allocation6 + $0x1b4] ss:$8 sps:$4 sm:$0xff]   ;;  %vm2583_vm4 = vsmask.f32 6400 }
  0x31   :  { %v120_v1 = vld [vmem:[%s7121_s0 + $0x28] sm:$0xff]  ;;  %v153_v4 = vpack.c.bf16 %v148_v62, %v147_v61  ;;  %v5237_v6 = vld [vmem:[#allocation6 + $0x130] ss:$8 sps:$4 sm:$0xff]   ;;  %v5251_v16 = vld [vmem:[#allocation6 + $0x114] ss:$8 sps:$4 sm:$0xff]  }
  0x32   :  { %v125_v5 = vpack.c.bf16 %v120_v1, %v119_v63  ;;  %v5240_v7 = vld [vmem:[#allocation6 + $0x1b0] ss:$8 sps:$4 sm:$0xff]   ;;  %v5245_v8 = vld [vmem:[#allocation6 + $0x124] ss:$8 sps:$4 sm:$0xff]   ;;  %v5243_v10 = vld [vmem:[#allocation6 + $0x120] ss:$8 sps:$4 sm:$0xff]  }
  0x33   :  { %263 = vmatpush1.bf16.msra.mxu0 %v5199_v23  ;;  %416 = vmatpush1.bf16.msra.mxu1 %v5200_v24  ;;  %v5248_v9 = vld [vmem:[#allocation6 + $0x1a4] ss:$8 sps:$4 sm:$0xff]   ;;  %v5246_v11 = vld [vmem:[#allocation6 + $0x1a0] ss:$8 sps:$4 sm:$0xff]   ;;  %v121_v14 = vld [vmem:[%s7121_s0 + $0x30] sm:$0xff] }
  0x34   :  { %264 = vmatprep.subr.bf16.mxu0 %v5201_v25  ;;  %417 = vmatprep.subr.bf16.mxu1 %v5203_v26  ;;  %v150_v13 = vld [vmem:[%s7121_s0 + $0x39] sm:$0xff]  ;;  %v5257_v22 = vld [vmem:[#allocation6 + $0x104] ss:$8 sps:$4 sm:$0xff]  }
  0x35   :  { %v122_v15 = vld [vmem:[%s7121_s0 + $0x38] sm:$0xff]  ;;  %v154_v18 = vpack.c.bf16 %v150_v13, %v149_v12  ;;  %v5260_v23 = vld [vmem:[#allocation6 + $0x184] ss:$8 sps:$4 sm:$0xff]   ;;  %v5255_v24 = vld [vmem:[#allocation6 + $0x100] ss:$8 sps:$4 sm:$0xff]  }
  0x36   :  { %v5254_v17 = vld [vmem:[#allocation6 + $0x194] ss:$8 sps:$4 sm:$0xff]   ;;  %v126_v19 = vpack.c.bf16 %v122_v15, %v121_v14  ;;  %v5249_v20 = vld [vmem:[#allocation6 + $0x110] ss:$8 sps:$4 sm:$0xff]   ;;  %v5258_v25 = vld [vmem:[#allocation6 + $0x180] ss:$8 sps:$4 sm:$0xff]  }
  0x37   :  { %265 = vmatpush1.bf16.msra.mxu0 %v5205_v27  ;;  %418 = vmatpush1.bf16.msra.mxu1 %v5206_v28  ;;  %v5252_v21 = vld [vmem:[#allocation6 + $0x190] ss:$8 sps:$4 sm:$0xff]   ;;  %v478_v26 = vld [vmem:[%s7121_s0 + $0x2] sm:$0xff]  ;;  %v5275_v50 = vld [vmem:[#allocation6 + $0x234] ss:$8 sps:$4 sm:$0xff]   ;;  %v5673_v15 = vmov 0.0  }
  0x38   :  { %266 = vmatprep.subr.bf16.mxu0 %v5207_v29  ;;  %419 = vmatprep.subr.bf16.mxu1 %v5209_v30  ;;  %v479_v27 = vld [vmem:[%s7121_s0 + $0xa] sm:$0xff]  ;;  %v5263_v30 = vld [vmem:[#allocation6 + $0x274] ss:$8 sps:$4 sm:$0xff]   ;;  %83 = vst [vmem:[#allocation2 + $0x68] sm:$0xff] %v5673_v15  ;;  %84 = vst [vmem:[#allocation2 + $0x60] sm:$0xff] %v5673_v15 }
  0x39   :  { %v676_v28 = vld [vmem:[%s7121_s0 + $0x3] sm:$0xff]  ;;  %v677_v29 = vld [vmem:[%s7121_s0 + $0xb] sm:$0xff]  ;;  %v880_v12 = vld [vmem:[%s7121_s0 + $0x34] sm:$0xff]  ;;  %85 = vst [vmem:[#allocation3] sm:$0xff] %v5673_v15 }
  0x3a   :  { %v5261_v33 = vld [vmem:[#allocation6 + $0x270] ss:$8 sps:$4 sm:$0xff]   ;;  %v5266_v34 = vld [vmem:[#allocation6 + $0x264] ss:$8 sps:$4 sm:$0xff]   ;;  %v5264_v35 = vld [vmem:[#allocation6 + $0x260] ss:$8 sps:$4 sm:$0xff]  }
  0x3b   :  { %267 = vmatpush1.bf16.msra.mxu0 %v5211_v31  ;;  %420 = vmatpush1.bf16.msra.mxu1 %v5212_v32  ;;  %v486_v31 = vpack.c.bf16 %v479_v27, %v478_v26  ;;  %v684_v32 = vpack.c.bf16 %v677_v29, %v676_v28  ;;  %v480_v36 = vld [vmem:[%s7121_s0 + $0x12] sm:$0xff]  ;;  %v483_v47 = vld [vmem:[%s7121_s0 + $0x2a] sm:$0xff]  ;;  %v881_v13 = vld [vmem:[%s7121_s0 + $0x3c] sm:$0xff]  ;;  %86 = vst [vmem:[#allocation3 + $0x8] sm:$0xff] %v5673_v15 }
  0x3c   :  { %587 = vmatprep.subr.bf16.mxu0 %v5215_v37  ;;  %785 = vmatprep.subr.bf16.mxu1 %v5218_v38  ;;  %v481_v37 = vld [vmem:[%s7121_s0 + $0x1a] sm:$0xff]  ;;  %v680_v48 = vld [vmem:[%s7121_s0 + $0x23] sm:$0xff]  ;;  %v681_v49 = vld [vmem:[%s7121_s0 + $0x2b] sm:$0xff]  ;;  %v885_v14 = vpack.c.bf16 %v881_v13, %v880_v12  ;;  %87 = vst [vmem:[#allocation3 + $0x10] sm:$0xff] %v5673_v15 }
  0x3d   :  { %v678_v38 = vld [vmem:[%s7121_s0 + $0x13] sm:$0xff]  ;;  %v5284_v1 = vld [vmem:[#allocation6 + $0x204] ss:$8 sps:$4 sm:$0xff]   ;;  %88 = vst [vmem:[#allocation3 + $0x18] sm:$0xff] %v5673_v15  ;;  %89 = vst [vmem:[#allocation3 + $0x20] sm:$0xff] %v5673_v15 }
  0x3e   :  { %285 = vmatmul.mubr.bf16.vlgmr.msra.gmra.mxu0 %v151_v39  ;;  %438 = vmatmul.mubr.bf16.vlgmr.msra.gmra.mxu1 %v123_v40  ;;  %v679_v39 = vld [vmem:[%s7121_s0 + $0x1b] sm:$0xff]  ;;  %90 = vst [vmem:[#allocation3 + $0x28] sm:$0xff] %v5673_v15  ;;  %91 = vst [vmem:[#allocation3 + $0x30] sm:$0xff] %v5673_v15 }
  0x3f   :  { %588 = vmatpush1.bf16.msra.mxu0 %v5213_v41  ;;  %786 = vmatpush1.bf16.msra.mxu1 %v5216_v42  ;;  %v5269_v40 = vld [vmem:[#allocation6 + $0x254] ss:$8 sps:$4 sm:$0xff]   ;;  %v5267_v41 = vld [vmem:[#allocation6 + $0x250] ss:$8 sps:$4 sm:$0xff]   ;;  %v487_v42 = vpack.c.bf16 %v481_v37, %v480_v36  ;;  %92 = vst [vmem:[#allocation3 + $0x38] sm:$0xff] %v5673_v15  ;;  %93 = vst [vmem:[#allocation3 + $0x40] sm:$0xff] %v5673_v15 }
  0x40   :  { %589 = vmatprep.subr.bf16.mxu0 %v5221_v43  ;;  %787 = vmatprep.subr.bf16.mxu1 %v5224_v44  ;;  %v685_v43 = vpack.c.bf16 %v679_v39, %v678_v38  ;;  %v5272_v44 = vld [vmem:[#allocation6 + $0x244] ss:$8 sps:$4 sm:$0xff]   ;;  %v5279_v61 = vld [vmem:[#allocation6 + $0x210] ss:$8 sps:$4 sm:$0xff]   ;;  %94 = vst [vmem:[#allocation3 + $0x48] sm:$0xff] %v5673_v15  ;;  %103 = vst [vmem:[#allocation4 + $0x30] sm:$0xff] %v5673_v15 }
  0x41   :  { %294 = vmatprep.mubr.bf16.mxu0 %v5672_v0  ;;  %447 = vmatprep.mubr.bf16.mxu1 %v5672_v0  ;;  %104 = vst [vmem:[#allocation4 + $0x18] sm:$0xff] %v5673_v15  ;;  %105 = vst [vmem:[#allocation5] sm:$0xff] %v5673_v15  ;;  %v5294_v26 = vld [vmem:[%s7124_s3 + $0x40] ss:$8 sps:$4 sm:$0xff]   ;;  %v5299_v27 = vld [vmem:[%s7124_s3 + $0x34] ss:$8 sps:$4 sm:$0xff]  }
  0x42   :  { %106 = vst [vmem:[#allocation5 + $0x8] sm:$0xff] %v5673_v15  ;;  %107 = vst [vmem:[#allocation5 + $0x10] sm:$0xff] %v5673_v15  ;;  %v5300_v36 = vld [vmem:[%s7124_s3 + $0x20] ss:$8 sps:$4 sm:$0xff]   ;;  %v5308_v37 = vld [vmem:[%s7124_s3 + $0x14] ss:$8 sps:$4 sm:$0xff]  }
  0x43   :  { %590 = vmatpush1.bf16.msra.mxu0 %v5219_v45  ;;  %788 = vmatpush1.bf16.msra.mxu1 %v5222_v46  ;;  %v5270_v45 = vld [vmem:[#allocation6 + $0x240] ss:$8 sps:$4 sm:$0xff]   ;;  %108 = vst [vmem:[#allocation5 + $0x18] sm:$0xff] %v5673_v15  ;;  %109 = vst [vmem:[#allocation5 + $0x20] sm:$0xff] %v5673_v15 }
  0x44   :  { %591 = vmatprep.subr.bf16.mxu0 %v5227_v51  ;;  %789 = vmatprep.subr.bf16.mxu1 %v5230_v52  ;;  %v482_v46 = vld [vmem:[%s7121_s0 + $0x22] sm:$0xff]  ;;  %v5273_v51 = vld [vmem:[#allocation6 + $0x230] ss:$8 sps:$4 sm:$0xff]   ;;  %110 = vst [vmem:[#allocation5 + $0x28] sm:$0xff] %v5673_v15  ;;  %111 = vst [vmem:[#allocation5 + $0x30] sm:$0xff] %v5673_v15 }
  0x45   :  { %v488_v52 = vpack.c.bf16 %v483_v47, %v482_v46  ;;  %112 = vst [vmem:[#allocation5 + $0x38] sm:$0xff] %v5673_v15  ;;  %113 = vst [vmem:[#allocation5 + $0x40] sm:$0xff] %v5673_v15 }
  0x46   :  { %295 = vmatmul.mubr.bf16.gmra.mxu0 %v152_v53  ;;  %448 = vmatmul.mubr.bf16.gmra.mxu1 %v124_v54  ;;  %v686_v53 = vpack.c.bf16 %v681_v49, %v680_v48  ;;  %v5278_v54 = vld [vmem:[#allocation6 + $0x224] ss:$8 sps:$4 sm:$0xff]   ;;  %114 = vst [vmem:[#allocation5 + $0x48] sm:$0xff] %v5673_v15 }
  0x47   :  { %592 = vmatpush1.bf16.msra.mxu0 %v5225_v55  ;;  %790 = vmatpush1.bf16.msra.mxu1 %v5228_v56  ;;  %v5276_v55 = vld [vmem:[#allocation6 + $0x220] ss:$8 sps:$4 sm:$0xff]   ;;  %v484_v56 = vld [vmem:[%s7121_s0 + $0x32] sm:$0xff] }
  0x48   :  { %593 = vmatprep.subr.bf16.mxu0 %v5233_v57  ;;  %791 = vmatprep.subr.bf16.mxu1 %v5236_v58  ;;  %v485_v57 = vld [vmem:[%s7121_s0 + $0x3a] sm:$0xff] }
  0x49   :  { %304 = vmatprep.mubr.bf16.mxu0 %v5672_v0  ;;  %457 = vmatprep.mubr.bf16.mxu1 %v5672_v0  ;;  %v682_v58 = vld [vmem:[%s7121_s0 + $0x33] sm:$0xff]  ;;  %v489_v62 = vpack.c.bf16 %v485_v57, %v484_v56 }
  0x4b   :  { %594 = vmatpush1.bf16.msra.mxu0 %v5231_v59  ;;  %792 = vmatpush1.bf16.msra.mxu1 %v5234_v60  ;;  %v683_v59 = vld [vmem:[%s7121_s0 + $0x3b] sm:$0xff] }
  0x4c   :  { %595 = vmatprep.subr.bf16.mxu0 %v5239_v2  ;;  %793 = vmatprep.subr.bf16.mxu1 %v5242_v3  ;;  %v5281_v60 = vld [vmem:[#allocation6 + $0x214] ss:$8 sps:$4 sm:$0xff]   ;;  %v687_v63 = vpack.c.bf16 %v683_v59, %v682_v58  ;;  %v5282_v2 = vld [vmem:[#allocation6 + $0x200] ss:$8 sps:$4 sm:$0xff]  }
  0x4d   :  { %v874_v3 = vld [vmem:[%s7121_s0 + $0x4] sm:$0xff] }
  0x4e   :  { %305 = vmatmul.mubr.bf16.gmra.mxu0 %v153_v4  ;;  %458 = vmatmul.mubr.bf16.gmra.mxu1 %v125_v5  ;;  %v875_v4 = vld [vmem:[%s7121_s0 + $0xc] sm:$0xff] }
  0x4f   :  { %596 = vmatpush1.bf16.msra.mxu0 %v5237_v6  ;;  %794 = vmatpush1.bf16.msra.mxu1 %v5240_v7  ;;  %v882_v5 = vpack.c.bf16 %v875_v4, %v874_v3  ;;  %v876_v6 = vld [vmem:[%s7121_s0 + $0x14] sm:$0xff]  ;;  %v877_v7 = vld [vmem:[%s7121_s0 + $0x1c] sm:$0xff] }
  0x50   :  { %597 = vmatprep.subr.bf16.mxu0 %v5245_v8  ;;  %795 = vmatprep.subr.bf16.mxu1 %v5248_v9  ;;  %v883_v8 = vpack.c.bf16 %v877_v7, %v876_v6  ;;  %v878_v9 = vld [vmem:[%s7121_s0 + $0x24] sm:$0xff] }
  0x51   :  { %314 = vmatprep.mubr.bf16.mxu0 %v5672_v0  ;;  %467 = vmatprep.mubr.bf16.mxu1 %v5672_v0 }
  0x53   :  { %598 = vmatpush1.bf16.msra.mxu0 %v5243_v10  ;;  %796 = vmatpush1.bf16.msra.mxu1 %v5246_v11  ;;  %v879_v10 = vld [vmem:[%s7121_s0 + $0x2c] sm:$0xff] }
  0x54   :  { %599 = vmatprep.subr.bf16.mxu0 %v5251_v16  ;;  %797 = vmatprep.subr.bf16.mxu1 %v5254_v17  ;;  %v884_v11 = vpack.c.bf16 %v879_v10, %v878_v9  ;;  %v5287_v16 = vld [vmem:[%s7124_s3 + $0x74] ss:$8 sps:$4 sm:$0xff]   ;;  %v5290_v17 = vld [vmem:[%s7124_s3 + $0x64] ss:$8 sps:$4 sm:$0xff]  }
  0x56   :  { %315 = vmatmul.mubr.bf16.gmra.mxu0 %v154_v18  ;;  %468 = vmatmul.mubr.bf16.gmra.mxu1 %v126_v19  ;;  %v5288_v18 = vld [vmem:[%s7124_s3 + $0x60] ss:$8 sps:$4 sm:$0xff]   ;;  %v5293_v19 = vld [vmem:[%s7124_s3 + $0x54] ss:$8 sps:$4 sm:$0xff]  }
  0x57   :  { %600 = vmatpush1.bf16.msra.mxu0 %v5249_v20  ;;  %798 = vmatpush1.bf16.msra.mxu1 %v5252_v21  ;;  %v5303_v20 = vld [vmem:[%s7124_s3 + $0x170] ss:$8 sps:$4 sm:$0xff]   ;;  %v5305_v21 = vld [vmem:[%s7124_s3 + $0x174] ss:$8 sps:$4 sm:$0xff]  }
  0x58   :  { %601 = vmatprep.subr.bf16.mxu0 %v5257_v22  ;;  %799 = vmatprep.subr.bf16.mxu1 %v5260_v23  ;;  %v5311_v22 = vld [vmem:[%s7124_s3 + $0x164] ss:$8 sps:$4 sm:$0xff]   ;;  %v5291_v23 = vld [vmem:[%s7124_s3 + $0x50] ss:$8 sps:$4 sm:$0xff]  }
  0x59   :  { %619 = vmatprep.mubr.bf16.mxu0 %v5672_v0  ;;  %817 = vmatprep.mubr.bf16.mxu1 %v5672_v0 }
  0x5b   :  { %602 = vmatpush1.bf16.msra.mxu0 %v5255_v24  ;;  %800 = vmatpush1.bf16.msra.mxu1 %v5258_v25  ;;  %v5309_v24 = vld [vmem:[%s7124_s3 + $0x160] ss:$8 sps:$4 sm:$0xff]   ;;  %v5296_v25 = vld [vmem:[%s7124_s3 + $0x44] ss:$8 sps:$4 sm:$0xff]  }
  0x5c   :  { %983 = vmatprep.subr.bf16.mxu0 %v5263_v30  ;;  %1993 = vmatprep.subr.bf16.mxu1 %v5305_v21  ;;  %v5297_v30 = vld [vmem:[%s7124_s3 + $0x30] ss:$8 sps:$4 sm:$0xff]  }
  0x5e   :  { %620 = vmatmul.mubr.bf16.vlgmr.msra.gmra.mxu0 %v486_v31  ;;  %818 = vmatmul.mubr.bf16.vlgmr.msra.gmra.mxu1 %v684_v32  ;;  %v5302_v31 = vld [vmem:[%s7124_s3 + $0x24] ss:$8 sps:$4 sm:$0xff]  }
  0x5f   :  { %984 = vmatpush1.bf16.msra.mxu0 %v5261_v33  ;;  %629 = vmatprep.mubr.bf16.mxu0 %v5672_v0 }
  0x60   :  { %985 = vmatprep.subr.bf16.mxu0 %v5266_v34  ;;  %827 = vmatprep.mubr.bf16.mxu1 %v5672_v0 }
  0x61   :  { %1994 = vmatpush1.bf16.msra.mxu1 %v5303_v20 }
  0x62   :  { %1995 = vmatprep.subr.bf16.mxu1 %v5311_v22 }
  0x63   :  { %986 = vmatpush1.bf16.msra.mxu0 %v5264_v35 }
  0x64   :  { %987 = vmatprep.subr.bf16.mxu0 %v5269_v40 }
  0x65   :  { %1996 = vmatpush1.bf16.msra.mxu1 %v5309_v24 }
  0x66   :  { %630 = vmatmul.mubr.bf16.gmra.mxu0 %v487_v42  ;;  %828 = vmatmul.mubr.bf16.gmra.mxu1 %v685_v43  ;;  %v5306_v42 = vld [vmem:[%s7124_s3 + $0x10] ss:$8 sps:$4 sm:$0xff]  }
  0x67   :  { %988 = vmatpush1.bf16.msra.mxu0 %v5267_v41  ;;  %639 = vmatprep.mubr.bf16.mxu0 %v5672_v0 }
  0x68   :  { %989 = vmatprep.subr.bf16.mxu0 %v5272_v44  ;;  %837 = vmatprep.mubr.bf16.mxu1 %v5672_v0 }
  0x6b   :  { %990 = vmatpush1.bf16.msra.mxu0 %v5270_v45 }
  0x6c   :  { %991 = vmatprep.subr.bf16.mxu0 %v5275_v50 }
  0x6e   :  { %640 = vmatmul.mubr.bf16.gmra.mxu0 %v488_v52  ;;  %838 = vmatmul.mubr.bf16.gmra.mxu1 %v686_v53 }
  0x6f   :  { %992 = vmatpush1.bf16.msra.mxu0 %v5273_v51  ;;  %649 = vmatprep.mubr.bf16.mxu0 %v5672_v0 }
  0x70   :  { %993 = vmatprep.subr.bf16.mxu0 %v5278_v54  ;;  %847 = vmatprep.mubr.bf16.mxu1 %v5672_v0 }
  0x73   :  { %994 = vmatpush1.bf16.msra.mxu0 %v5276_v55 }
  0x74   :  { %995 = vmatprep.subr.bf16.mxu0 %v5281_v60 }
  0x76   :  { %650 = vmatmul.mubr.bf16.gmra.mxu0 %v489_v62  ;;  %848 = vmatmul.mubr.bf16.gmra.mxu1 %v687_v63 }
  0x77   :  { %996 = vmatpush1.bf16.msra.mxu0 %v5279_v61  ;;  %1015 = vmatprep.mubr.bf16.mxu0 %v5672_v0 }
  0x78   :  { %997 = vmatprep.subr.bf16.mxu0 %v5284_v1 }
  0x7b   :  { %998 = vmatpush1.bf16.msra.mxu0 %v5282_v2 }
  0x7c   :  { %2206 = vmatprep.subr.bf16.mxu0 %v5287_v16 }
  0x7e   :  { %1016 = vmatmul.mubr.bf16.vlgmr.msra.gmra.mxu0 %v882_v5 }
  0x7f   :  { %1025 = vmatprep.mubr.bf16.mxu0 %v5672_v0 }
  0x86   :  { %1026 = vmatmul.mubr.bf16.gmra.mxu0 %v883_v8 }
  0x87   :  { %1035 = vmatprep.mubr.bf16.mxu0 %v5672_v0 }
  0x8e   :  { %1036 = vmatmul.mubr.bf16.gmra.mxu0 %v884_v11 }
  0x8f   :  { %1045 = vmatprep.mubr.bf16.mxu0 %v5672_v0  ;;  %v5285_v0 = vld [vmem:[%s7124_s3 + $0x70] ss:$8 sps:$4 sm:$0xff]  }
  0x90   :  { %2207 = vmatpush1.bf16.msra.mxu0 %v5285_v0 }
  0x91   :  { %2208 = vmatprep.subr.bf16.mxu0 %v5290_v17  ;;  %v7133_v17 = vlaneseq }
  0x93   :  { %v6015_v21 = vshrl.u32 %v7133_v17, 7 }
  0x94   :  { %2209 = vmatpush1.bf16.msra.mxu0 %v5288_v18 }
  0x95   :  { %2210 = vmatprep.subr.bf16.mxu0 %v5293_v19 }
  0x96   :  { %1046 = vmatmul.mubr.bf16.gmra.mxu0 %v885_v14 }
  0x98   :  { %2211 = vmatpush1.bf16.msra.mxu0 %v5291_v23 }
  0x99   :  { %2212 = vmatprep.subr.bf16.mxu0 %v5296_v25 }
  0x9c   :  { %2213 = vmatpush1.bf16.msra.mxu0 %v5294_v26 }
  0x9d   :  { %2214 = vmatprep.subr.bf16.mxu0 %v5299_v27 }
  0xa0   :  { %2215 = vmatpush1.bf16.msra.mxu0 %v5297_v30  ;;  %v1076_v30 = vsub.s32 0, %v6015_v21 }
  0xa1   :  { %2216 = vmatprep.subr.bf16.mxu0 %v5302_v31 }
  0xa4   :  { %2217 = vmatpush1.bf16.msra.mxu0 %v5300_v36  ;;  %v1072_v36 = vld [vmem:[%s7123_s2] sm:$0x3] }
  0xa5   :  { %2218 = vmatprep.subr.bf16.mxu0 %v5308_v37 }
  0xa8   :  { %2219 = vmatpush1.bf16.msra.mxu0 %v5306_v42 }
  0xfe   :  { %v5923_v28 = vpop.f32.mrf.mxu0  ;;  %v5925_v29 = vpop.f32.mrf.mxu1 }
  0xff   :  { %v440_v23 = vadd.f32 %v5925_v29, %v5923_v28  ;;  %v1080_v28 = vsub.s32 1, %v6015_v21 }
 0x100   :  { %v5933_v32 = vpop.f32.mrf.mxu0  ;;  %v441_v33 = vpop.f32.mrf.mxu1 }
 0x101   :  { %v442_v26 = vadd.f32 %v441_v33, %v5933_v32 }
 0x102   :  { %v5935_v34 = vpop.f32.mrf.mxu0  ;;  %v5937_v35 = vpop.f32.mrf.mxu1 }
 0x103   :  { %v444_v37 = vadd.f32 %v5937_v35, %v5935_v34 }
 0x104   :  { %v5945_v38 = vpop.f32.mrf.mxu0  ;;  %v5947_v39 = vpop.f32.mrf.mxu1 }
 0x105   :  { %v446_v32 = vadd.f32 %v5947_v39, %v5945_v38 }
 0x106   :  { %v5949_v40 = vpop.f32.mrf.mxu0  ;;  %v5951_v41 = vpop.f32.mrf.mxu1 }
 0x108   :  { %v5956_v43 = vpop.f32.mrf.mxu0  ;;  %v5958_v44 = vpop.f32.mrf.mxu1 }
 0x109   :  { %v452_v38 = vadd.f32 %v5958_v44, %v5956_v43 }
 0x10a   :  { %v5960_v45 = vpop.f32.mrf.mxu0  ;;  %v5962_v46 = vpop.f32.mrf.mxu1 }
 0x10c   :  { %v5964_v47 = vpop.f32.mrf.mxu0  ;;  %v5966_v48 = vpop.f32.mrf.mxu1 }
 0x10e   :  { %v5968_v49 = vpop.f32.mrf.mxu0  ;;  %v5970_v50 = vpop.f32.mrf.mxu1 }
 0x110   :  { %v5972_v51 = vpop.f32.mrf.mxu0  ;;  %v5974_v52 = vpop.f32.mrf.mxu1 }
 0x112   :  { %v5976_v53 = vpop.f32.mrf.mxu0  ;;  %v5978_v54 = vpop.f32.mrf.mxu1 }
 0x114   :  { %v5980_v55 = vpop.f32.mrf.mxu0  ;;  %v5982_v56 = vpop.f32.mrf.mxu1 }
 0x116   :  { %v5984_v57 = vpop.f32.mrf.mxu0  ;;  %v5986_v58 = vpop.f32.mrf.mxu1 }
 0x118   :  { %v5988_v59 = vpop.f32.mrf.mxu0  ;;  %v5990_v60 = vpop.f32.mrf.mxu1 }
 0x11a   :  { %v5992_v61 = vpop.f32.mrf.mxu0  ;;  %v5994_v62 = vpop.f32.mrf.mxu1 }
 0x11c   :  { %v5996_v63 = vpop.f32.mrf.mxu0  ;;  %v5998_v1 = vpop.f32.mrf.mxu1 }
 0x11e   :  { %v621_v2 = vpop.f32.mrf.mxu0  ;;  %v819_v3 = vpop.f32.mrf.mxu1 }
 0x11f   :  { %v660_v27 = vadd.f32 %v621_v2, %v440_v23  ;;  %v6043_v23 = vrot.slane %v1072_v36, %v1076_v30 }
 0x120   :  { %v623_v4 = vpop.f32.mrf.mxu0  ;;  %v821_v5 = vpop.f32.mrf.mxu1 }
 0x121   :  { %v661_v42 = vadd.f32 %v623_v4, %v442_v26  ;;  %v858_v33 = vadd.f32 %v819_v3, %v660_v27 }
 0x122   :  { %v625_v6 = vpop.f32.mrf.mxu0  ;;  %v823_v8 = vpop.f32.mrf.mxu1 }
 0x123   :  { %v662_v2 = vadd.f32 %v625_v6, %v444_v37  ;;  %v859_v35 = vadd.f32 %v821_v5, %v661_v42 }
 0x124   :  { %v627_v7 = vpop.f32.mrf.mxu0  ;;  %v825_v10 = vpop.f32.mrf.mxu1 }
 0x125   :  { %v663_v4 = vadd.f32 %v627_v7, %v446_v32  ;;  %v860_v27 = vadd.f32 %v823_v8, %v662_v2 }
 0x126   :  { %v631_v9 = vpop.f32.mrf.mxu0  ;;  %v829_v13 = vpop.f32.mrf.mxu1 }
 0x127   :  { %v861_v42 = vadd.f32 %v825_v10, %v663_v4  ;;  %v460_v10 = vadd.f32 %v5970_v50, %v5968_v49  ;;  %v462_v49 = vadd.f32 %v5974_v52, %v5972_v51  ;;  %v464_v50 = vadd.f32 %v5978_v54, %v5976_v53  ;;  %v5320_v4 = vld [vmem:[%s7124_s3 + $0xf4] ss:$8 sps:$4 sm:$0xff]   ;;  %v5318_v54 = vld [vmem:[%s7124_s3 + $0xf0] ss:$8 sps:$4 sm:$0xff]  }
 0x128   :  { %v633_v11 = vpop.f32.mrf.mxu0  ;;  %v6004_v0 = vpop.f32.mrf.mxu1 }
 0x129   :  { %v665_v5 = vadd.f32 %v633_v11, %v452_v38 }
 0x12a   :  { %v635_v12 = vpop.f32.mrf.mxu0  ;;  %v6010_v19 = vpop.f32.mrf.mxu1 }
 0x12c   :  { %v6000_v14 = vpop.f32.mrf.mxu0  ;;  %v6021_v24 = vpop.f32.mrf.mxu1 }
 0x12e   :  { %v6002_v15 = vpop.f32.mrf.mxu0  ;;  %v6035_v29 = vpop.f32.mrf.mxu1 }
 0x130   :  { %v6006_v16 = vpop.f32.mrf.mxu0  ;;  %v6053_v3 = vpop.f32.mrf.mxu1 }
 0x132   :  { %v6008_v18 = vpop.f32.mrf.mxu0 }
 0x133   :  { %v670_v38 = vadd.f32 %v6008_v18, %v464_v50  ;;  %v5332_v50 = vld [vmem:[%s7124_s3 + $0xd4] ss:$8 sps:$4 sm:$0xff]  }
 0x134   :  { %v6012_v20 = vpop.f32.mrf.mxu0 }
 0x136   :  { %v6017_v22 = vpop.f32.mrf.mxu0 }
 0x138   :  { %v6023_v25 = vpop.f32.mrf.mxu0 }
 0x139   :  { %7135 = vst [vmem:[#allocation12_spill] sm:$0xff] %v6023_v25  ;;  %v6049_v25 = vrot.slane %v1072_v36, %v1080_v28  ;;  %v5314_v36 = vld [vmem:[%s7124_s3 + $0x4] ss:$8 sps:$4 sm:$0xff]  }
 0x13a   :  { %v6027_v31 = vpop.f32.mrf.mxu0  ;;  %2220 = vmatprep.subr.bf16.mxu0 %v5314_v36 }
 0x13b   :  { %7136 = vst [vmem:[#allocation13_spill] sm:$0xff] %v6027_v31  ;;  %v450_v31 = vadd.f32 %v5951_v41, %v5949_v40  ;;  %v454_v41 = vadd.f32 %v5962_v46, %v5960_v45  ;;  %v5317_v45 = vld [vmem:[%s7124_s3 + $0x154] ss:$8 sps:$4 sm:$0xff]   ;;  %v456_v46 = vadd.f32 %v5966_v48, %v5964_v47 }
 0x13c   :  { %v6037_v17 = vpop.f32.mrf.mxu0  ;;  %1997 = vmatprep.subr.bf16.mxu1 %v5317_v45 }
 0x13d   :  { %v664_v39 = vadd.f32 %v631_v9, %v450_v31  ;;  %v5312_v9 = vld [vmem:[%s7124_s3] ss:$8 sps:$4 sm:$0xff]   ;;  %v843_v31 = vpop.f32.mrf.mxu1  ;;  %v666_v2 = vadd.f32 %v635_v12, %v454_v41  ;;  %v466_v12 = vadd.f32 %v5982_v56, %v5980_v55  ;;  %v5323_v55 = vld [vmem:[%s7124_s3 + $0x144] ss:$8 sps:$4 sm:$0xff]   ;;  %v470_v56 = vadd.f32 %v5986_v58, %v5984_v57 }
 0x13e   :  { %v1017_v34 = vpop.f32.mrf.mxu0  ;;  %2221 = vmatpush1.bf16.msra.mxu0 %v5312_v9  ;;  %v472_v58 = vadd.f32 %v5990_v60, %v5988_v59 }
 0x13f   :  { %v1056_v26 = vadd.f32 %v1017_v34, %v858_v33  ;;  %v862_v11 = vadd.f32 %v829_v13, %v664_v39  ;;  %v5315_v33 = vld [vmem:[%s7124_s3 + $0x150] ss:$8 sps:$4 sm:$0xff]   ;;  %v863_v13 = vadd.f32 %v6004_v0, %v665_v5  ;;  %v669_v0 = vadd.f32 %v6006_v16, %v462_v49  ;;  %v845_v39 = vpop.f32.mrf.mxu1  ;;  %2222 = vmatprep.subr.bf16.mxu0 %v5320_v4 }
 0x140   :  { %v1019_v6 = vpop.f32.mrf.mxu0  ;;  %1998 = vmatpush1.bf16.msra.mxu1 %v5315_v33  ;;  %v6130_v16 = vadd.f32 %v5998_v1, %v5996_v63  ;;  %v671_v18 = vadd.f32 %v6012_v20, %v466_v12  ;;  %v5329_v63 = vld [vmem:[%s7124_s3 + $0x134] ss:$8 sps:$4 sm:$0xff]   ;;  %v5330_v4 = vld [vmem:[%s7124_s3 + $0xd0] ss:$8 sps:$4 sm:$0xff]  }
 0x141   :  { %v6056_v37 = vadd.f32 %v6043_v23, %v1056_v26  ;;  %v1057_v40 = vadd.f32 %v1019_v6, %v859_v35  ;;  %v667_v26 = vadd.f32 %v6000_v14, %v456_v46  ;;  %v668_v14 = vadd.f32 %v6002_v15, %v460_v10  ;;  %1999 = vmatprep.subr.bf16.mxu1 %v5323_v55  ;;  %v5327_v46 = vld [vmem:[%s7124_s3 + $0x130] ss:$8 sps:$4 sm:$0xff]  }
 0x142   :  { %v1021_v7 = vpop.f32.mrf.mxu0  ;;  %2223 = vmatpush2.bf16.msra.mxu0 %v5318_v54  ;;  %v6126_v15 = vadd.f32 %v5994_v62, %v5992_v61  ;;  %v5324_v62 = vld [vmem:[%s7124_s3 + $0xe0] ss:$8 sps:$4 sm:$0xff]   ;;  %v867_v20 = vadd.f32 %v6053_v3, %v669_v0  ;;  %v672_v3 = vadd.f32 %v6017_v22, %v470_v56 }
 0x143   :  { %v1100_v43 = vmax.f32 %v6056_v37, 0.0  ;;  %v6065_v44 = vadd.f32 %v6049_v25, %v1057_v40  ;;  %v1058_v8 = vadd.f32 %v1021_v7, %v860_v27  ;;  %v5321_v27 = vld [vmem:[%s7124_s3 + $0x140] ss:$8 sps:$4 sm:$0xff]   ;;  %v864_v40 = vadd.f32 %v6010_v19, %v666_v2  ;;  %v5326_v7 = vld [vmem:[%s7124_s3 + $0xe4] ss:$8 sps:$4 sm:$0xff]  }
 0x144   :  { %v1023_v32 = vpop.f32.mrf.mxu0  ;;  %2000 = vmatpush1.bf16.msra.mxu1 %v5321_v27  ;;  %v865_v36 = vadd.f32 %v6021_v24, %v667_v26  ;;  %v866_v1 = vadd.f32 %v6035_v29, %v668_v14  ;;  %v849_v24 = vpop.f32.mrf.mxu1  ;;  %2224 = vmatprep.subr.bf16.mxu0 %v5326_v7  ;;  %v5335_v26 = vld [vmem:[%s7124_s3 + $0x124] ss:$8 sps:$4 sm:$0xff]  }
 0x145   :  { %1116 = vst [vmem:[#allocation2] sm:$0xff] %v1100_v43  ;;  %v1101_v34 = vmax.f32 %v6065_v44, 0.0  ;;  %v6084_v47 = vadd.f32 %v6043_v23, %v1058_v8  ;;  %v1059_v48 = vadd.f32 %v1023_v32, %v861_v42  ;;  %v868_v42 = vadd.f32 %v843_v31, %v670_v38  ;;  %2001 = vmatprep.subr.bf16.mxu1 %v5329_v63  ;;  %v5333_v38 = vld [vmem:[%s7124_s3 + $0x120] ss:$8 sps:$4 sm:$0xff]   ;;  %v5341_v63 = vld [vmem:[%s7124_s3 + $0x114] ss:$8 sps:$4 sm:$0xff]  }
 0x146   :  { %v1027_v35 = vpop.f32.mrf.mxu0  ;;  %2225 = vmatpush2.bf16.msra.mxu0 %v5324_v62  ;;  %v869_v31 = vadd.f32 %v845_v39, %v671_v18  ;;  %v5336_v62 = vld [vmem:[%s7124_s3 + $0xc0] ss:$8 sps:$4 sm:$0xff]  }
 0x147   :  { %1117 = vst [vmem:[#allocation2 + $0x38] sm:$0xff] %v1101_v34  ;;  %v1102_v51 = vmax.f32 %v6084_v47, 0.0  ;;  %v6101_v52 = vadd.f32 %v6049_v25, %v1059_v48  ;;  %v1060_v53 = vadd.f32 %v1027_v35, %v862_v11  ;;  %2226 = vmatprep.subr.bf16.mxu0 %v5332_v50  ;;  %v5338_v47 = vld [vmem:[%s7124_s3 + $0xc4] ss:$8 sps:$4 sm:$0xff]   ;;  %v5342_v50 = vld [vmem:[%s7124_s3 + $0xb0] ss:$8 sps:$4 sm:$0xff]  }
 0x148   :  { %v1029_v6 = vpop.f32.mrf.mxu0  ;;  %2002 = vmatpush1.bf16.msra.mxu1 %v5327_v46  ;;  %v5339_v46 = vld [vmem:[%s7124_s3 + $0x110] ss:$8 sps:$4 sm:$0xff]  }
 0x149   :  { %v1103_v41 = vmax.f32 %v6101_v52, 0.0  ;;  %v6120_v5 = vadd.f32 %v6043_v23, %v1060_v53  ;;  %v1061_v57 = vadd.f32 %v1029_v6, %v863_v13  ;;  %v1186_v45 = vrot.slane %v1102_v51, 1  ;;  %v851_v53 = vpop.f32.mrf.mxu1  ;;  %2003 = vmatprep.subr.bf16.mxu1 %v5335_v26 }
 0x14a   :  { %v1031_v19 = vpop.f32.mrf.mxu0  ;;  %2227 = vmatpush2.bf16.msra.mxu0 %v5330_v4 }
 0x14b   :  { %v1104_v59 = vmax.f32 %v6120_v5, 0.0  ;;  %v6139_v60 = vadd.f32 %v6049_v25, %v1061_v57  ;;  %v1062_v61 = vadd.f32 %v1031_v19, %v864_v40  ;;  %v1189_v49 = vrot.slane %v1103_v41, 1  ;;  %2228 = vmatprep.subr.bf16.mxu0 %v5338_v47 }
 0x14c   :  { %v1033_v8 = vpop.f32.mrf.mxu0  ;;  %v1148_v9 = vld [vmem:[#allocation2] sm:$0xfe]  ;;  %2004 = vmatpush1.bf16.msra.mxu1 %v5333_v38 }
 0x14d   :  { %v1105_v10 = vmax.f32 %v6139_v60, 0.0  ;;  %v6156_v11 = vadd.f32 %v6043_v23, %v1062_v61  ;;  %v1063_v29 = vadd.f32 %v1033_v8, %v865_v36  ;;  %v1185_v32 = vrot.slane %v1148_v9, 1  ;;  %2005 = vmatprep.subr.bf16.mxu1 %v5341_v63  ;;  %v5350_v38 = vld [vmem:[%s7124_s3 + $0xa4] ss:$8 sps:$4 sm:$0xff]  }
 0x14e   :  { %v1037_v33 = vpop.f32.mrf.mxu0  ;;  %v1191_v2 = vrot.slane %v1104_v59, 1  ;;  %v1149_v48 = vld [vmem:[#allocation2 + $0x38] sm:$0xfe]  ;;  %2229 = vmatpush2.bf16.msra.mxu0 %v5336_v62 }
 0x14f   :  { %v1106_v12 = vmax.f32 %v6156_v11, 0.0  ;;  %v6168_v13 = vadd.f32 %v6049_v25, %v1063_v29  ;;  %v1064_v22 = vadd.f32 %v1037_v33, %v866_v1  ;;  %v1187_v35 = vsel %vm1184_vm0, %v1185_v32, %v1186_v45  ;;  %v7138_v1 = vld [vmem:[#allocation13_spill] sm:$0xff]  ;;  %v5344_v33 = vld [vmem:[%s7124_s3 + $0xb4] ss:$8 sps:$4 sm:$0xff]   ;;  %v5351_v62 = vld [vmem:[%s7124_s3 + $0x1f0] ss:$8 sps:$4 sm:$0xff]  }
 0x150   :  { %v1039_v54 = vpop.f32.mrf.mxu0  ;;  %v6179_v55 = vmax.f32 %v1100_v43, %v1187_v35  ;;  %v1192_v56 = vsel %vm1184_vm0, %v1186_v45, %v1191_v2  ;;  %v1188_v14 = vrot.slane %v1149_v48, 1  ;;  %v1193_v0 = vrot.slane %v1105_v10, 1  ;;  %v7137_v43 = vld [vmem:[#allocation12_spill] sm:$0xff]  ;;  %2006 = vmatpush1.bf16.msra.mxu1 %v5339_v46  ;;  %2230 = vmatprep.subr.bf16.mxu0 %v5344_v33 }
 0x151   :  { %v1107_v39 = vmax.f32 %v6168_v13, 0.0  ;;  %v6189_v6 = vadd.f32 %v6043_v23, %v1064_v22  ;;  %v1065_v27 = vadd.f32 %v1039_v54, %v867_v20  ;;  %v6193_v37 = vmax.f32 %v1102_v51, %v1192_v56  ;;  %v5347_v22 = vld [vmem:[%s7124_s3 + $0x104] ss:$8 sps:$4 sm:$0xff]   ;;  %v5345_v54 = vld [vmem:[%s7124_s3 + $0x100] ss:$8 sps:$4 sm:$0xff]  }
 0x152   :  { %v673_v40 = vadd.f32 %v7137_v43, %v472_v58  ;;  %v1041_v57 = vpop.f32.mrf.mxu0  ;;  %1267 = vrot.lane.b32.xlu0 %v6179_v55, %s5674_s28  ;;  %v1190_v18 = vsel %vm1184_vm0, %v1188_v14, %v1189_v49  ;;  %v1194_v19 = vsel %vm1184_vm0, %v1189_v49, %v1193_v0  ;;  %v1195_v7 = vrot.slane %v1106_v12, 1  ;;  %2007 = vmatprep.subr.bf16.mxu1 %v5347_v22  ;;  %v5359_v46 = vld [vmem:[%s7124_s3 + $0x1e4] ss:$8 sps:$4 sm:$0xff]  }
 0x153   :  { %v870_v51 = vadd.f32 %v849_v24, %v672_v3  ;;  %v1108_v58 = vmax.f32 %v6189_v6, 0.0  ;;  %v6207_v36 = vadd.f32 %v6049_v25, %v1065_v27  ;;  %v1066_v61 = vadd.f32 %v1041_v57, %v868_v42  ;;  %1271 = vrot.lane.b32.xlu1 %v6193_v37, %s5674_s28  ;;  %v853_v24 = vpop.f32.mrf.mxu1  ;;  %2231 = vmatpush2.bf16.msra.mxu0 %v5342_v50  ;;  %v5362_v33 = vld [vmem:[%s7124_s3 + $0x84] ss:$8 sps:$4 sm:$0xff]   ;;  %v5363_v50 = vld [vmem:[%s7124_s3 + $0x1d0] ss:$8 sps:$4 sm:$0xff]  }
 0x154   :  { %v674_v20 = vadd.f32 %v7138_v1, %v6126_v15  ;;  %v1043_v8 = vpop.f32.mrf.mxu0  ;;  %v6221_v9 = vmax.f32 %v1101_v34, %v1190_v18  ;;  %v6225_v42 = vmax.f32 %v1103_v41, %v1194_v19  ;;  %v1197_v45 = vrot.slane %v1107_v39, 1  ;;  %2008 = vmatpush1.bf16.msra.mxu1 %v5345_v54  ;;  %v5348_v18 = vld [vmem:[%s7124_s3 + $0xa0] ss:$8 sps:$4 sm:$0xff]   ;;  %v5353_v19 = vld [vmem:[%s7124_s3 + $0x1f4] ss:$8 sps:$4 sm:$0xff]   ;;  %2232 = vmatprep.subr.bf16.mxu0 %v5350_v38 }
 0x155   :  { %v1109_v15 = vmax.f32 %v6207_v36, 0.0  ;;  %v6234_v29 = vadd.f32 %v6043_v23, %v1066_v61  ;;  %v1067_v44 = vadd.f32 %v1043_v8, %v869_v31  ;;  %v1196_v34 = vsel %vm1184_vm0, %v1191_v2, %v1195_v7  ;;  %v855_v4 = vpop.f32.mrf.mxu1  ;;  %2009 = vmatprep.subr.bf16.mxu1 %v5353_v19  ;;  %v5369_v54 = vld [vmem:[%s7124_s3 + $0x1c0] ss:$8 sps:$4 sm:$0xff]   ;;  %v5401_v19 = vld [vmem:[%s7124_s3 + $0x274] ss:$8 sps:$4 sm:$0xff]  }
 0x156   :  { %v871_v52 = vadd.f32 %v851_v53, %v673_v40  ;;  %v1047_v41 = vpop.f32.mrf.mxu0  ;;  %1269 = vrot.lane.b32.xlu0 %v6221_v9, %s5674_s28  ;;  %v1198_v32 = vsel %vm1184_vm0, %v1193_v0, %v1197_v45  ;;  %v1199_v3 = vrot.slane %v1108_v58, 1  ;;  %v675_v31 = vadd.f32 %v6037_v17, %v6130_v16  ;;  %v5381_v38 = vld [vmem:[%s7124_s3 + $0x1a0] ss:$8 sps:$4 sm:$0xff]  }
 0x157   :  { %v1110_v2 = vmax.f32 %v6234_v29, 0.0  ;;  %v6249_v48 = vadd.f32 %v6049_v25, %v1067_v44  ;;  %v1068_v49 = vadd.f32 %v1047_v41, %v870_v51  ;;  %1273 = vrot.lane.b32.xlu1 %v6225_v42, %s5674_s28  ;;  %v872_v35 = vadd.f32 %v853_v24, %v674_v20  ;;  %2233 = vmatpush2.bf16.msra.mxu0 %v5348_v18  ;;  %v5395_v18 = vld [vmem:[%s7124_s3 + $0x184] ss:$8 sps:$4 sm:$0xff]  }
 0x158   :  { %v1049_v17 = vpop.f32.mrf.mxu0  ;;  %v6261_v16 = vmax.f32 %v1104_v59, %v1196_v34  ;;  %v6265_v26 = vmax.f32 %v1105_v10, %v1198_v32  ;;  %v1201_v53 = vrot.slane %v1109_v15, 1  ;;  %v1200_v59 = vsel %vm1184_vm0, %v1195_v7, %v1199_v3  ;;  %2010 = vmatpush2.bf16.msra.mxu1 %v5351_v62 }
 0x159   :  { %v1111_v56 = vmax.f32 %v6249_v48, 0.0  ;;  %v6274_v14 = vadd.f32 %v6043_v23, %v1068_v49  ;;  %v1069_v5 = vadd.f32 %v1049_v17, %v871_v52  ;;  %v1203_v0 = vrot.slane %v1110_v2, 1  ;;  %2011 = vmatprep.subr.bf16.mxu1 %v5359_v46  ;;  %v5368_v17 = vld [vmem:[%s7124_s3 + $0x374] ss:$8 sps:$4 sm:$0xff]   ;;  %v5371_v48 = vld [vmem:[%s7124_s3 + $0x1c4] ss:$8 sps:$4 sm:$0xff]  }
 0x15a   :  { %v1051_v60 = vpop.f32.mrf.mxu0  ;;  %1275 = vrot.lane.b32.xlu0 %v6261_v16, %s5674_s28  ;;  %v1202_v10 = vsel %vm1184_vm0, %v1197_v45, %v1201_v53  ;;  %v873_v27 = vadd.f32 %v855_v4, %v675_v31  ;;  %v6299_v47 = vmax.f32 %v1106_v12, %v1200_v59  ;;  %v5354_v45 = vld [vmem:[%s7124_s3 + $0x90] ss:$8 sps:$4 sm:$0xff]   ;;  %v5365_v31 = vld [vmem:[%s7124_s3 + $0x1d4] ss:$8 sps:$4 sm:$0xff]  }
 0x15b   :  { %v1112_v43 = vmax.f32 %v6274_v14, 0.0  ;;  %v6287_v40 = vadd.f32 %v6049_v25, %v1069_v5  ;;  %v1070_v57 = vadd.f32 %v1051_v60, %v872_v35  ;;  %1277 = vrot.lane.b32.xlu1 %v6265_v26, %s5674_s28  ;;  %v6303_v51 = vmax.f32 %v1107_v39, %v1202_v10  ;;  %v5356_v39 = vld [vmem:[%s7124_s3 + $0x94] ss:$8 sps:$4 sm:$0xff]  }
 0x15c   :  { %v1053_v7 = vpop.f32.mrf.mxu0  ;;  %v1205_v61 = vrot.slane %v1111_v56, 1  ;;  %v1204_v11 = vsel %vm1184_vm0, %v1199_v3, %v1203_v0  ;;  %2234 = vmatprep.subr.bf16.mxu0 %v5356_v39  ;;  %v1165_v3 = vld [vmem:[#allocation2 + $0x60] sm:$0x1]  ;;  %v5377_v60 = vld [vmem:[%s7124_s3 + $0x1b4] ss:$8 sps:$4 sm:$0xff]  }
 0x15d   :  { %v1113_v63 = vmax.f32 %v6287_v40, 0.0  ;;  %v1098_v1 = vadd.f32 %v6043_v23, %v1070_v57  ;;  %v1071_v20 = vadd.f32 %v1053_v7, %v873_v27  ;;  %v1207_v13 = vrot.slane %v1112_v43, 1  ;;  %2235 = vmatpush2.bf16.msra.mxu0 %v5354_v45  ;;  %v5383_v27 = vld [vmem:[%s7124_s3 + $0x1a4] ss:$8 sps:$4 sm:$0xff]   ;;  %v5389_v40 = vld [vmem:[%s7124_s3 + $0x194] ss:$8 sps:$4 sm:$0xff]  }
 0x15e   :  { %1279 = vrot.lane.b32.xlu0 %v6299_v47, %s5674_s28  ;;  %v1206_v12 = vsel %vm1184_vm0, %v1201_v53, %v1205_v61  ;;  %v6332_v44 = vmax.f32 %v1108_v58, %v1204_v11  ;;  %v1164_v58 = vld [vmem:[#allocation2 + $0x68] sm:$0x1]  ;;  %2236 = vmatprep.subr.bf16.mxu0 %v5362_v33  ;;  %v5675_v7 = vmov 1966171168   ;;  %v7139_v33 = vlaneseq }
 0x15f   :  { %v1114_v24 = vmax.f32 %v1098_v1, 0.0  ;;  %v1099_v23 = vadd.f32 %v6049_v25, %v1071_v20  ;;  %1281 = vrot.lane.b32.xlu1 %v6303_v51, %s5674_s28  ;;  %v1209_v8 = vrot.slane %v1113_v63, 1  ;;  %v5357_v25 = vld [vmem:[%s7124_s3 + $0x1e0] ss:$8 sps:$4 sm:$0xff]   ;;  %v6339_v52 = vmax.f32 %v1109_v15, %v1206_v12 }
 0x160   :  { %v1208_v41 = vsel %vm1184_vm0, %v1203_v0, %v1207_v13  ;;  %2012 = vmatpush2.bf16.msra.mxu1 %v5357_v25  ;;  %v5360_v15 = vld [vmem:[%s7124_s3 + $0x80] ss:$8 sps:$4 sm:$0xff]   ;;  %v1215_v4 = vrot.slane %v1164_v58, 1  ;;  %v5375_v0 = vld [vmem:[%s7124_s3 + $0x1b0] ss:$8 sps:$4 sm:$0xff]   ;;  %vm6443_vm2 = vcmp.lt.s32.totalorder %v7139_v33, 248 }
 0x161   :  { %v1115_v34 = vmax.f32 %v1099_v23, 0.0  ;;  %v1211_v32 = vrot.slane %v1114_v24, 1  ;;  %v1210_v6 = vsel %vm1184_vm0, %v1205_v61, %v1209_v8  ;;  %v6358_v49 = vmax.f32 %v1110_v2, %v1208_v41  ;;  %2013 = vmatprep.subr.bf16.mxu1 %v5365_v31  ;;  %2237 = vmatpush2.bf16.msra.mxu0 %v5360_v15  ;;  %v5393_v57 = vld [vmem:[%s7124_s3 + $0x180] ss:$8 sps:$4 sm:$0xff]  }
 0x162   :  { %1283 = vrot.lane.b32.xlu0 %v6332_v44, %s5674_s28  ;;  %v6365_v22 = vmax.f32 %v1111_v56, %v1210_v6  ;;  %v1217_v2 = vrot.slane %v1165_v3, 1  ;;  %2790 = vmatprep.subr.bf16.mxu0 %v5368_v17  ;;  %v1344_v61 = vunpack.c.l.s4 %v5675_v7  ;;  %vm7001_vm7 = vcmp.lt.s32.totalorder %v7139_v33, 240 }
 0x163   :  { %1285 = vrot.lane.b32.xlu1 %v6339_v52, %s5674_s28  ;;  %v1213_v36 = vrot.slane %v1115_v34, 1  ;;  %v1212_v35 = vsel %vm1184_vm0, %v1207_v13, %v1211_v32  ;;  %v1216_v5 = vsel %vm1184_vm0, %v1211_v32, %v1215_v4 }
 0x164   :  { %2014 = vmatpush2.bf16.msra.mxu1 %v5363_v50  ;;  %v6381_v53 = vmax.f32 %v1112_v43, %v1212_v35  ;;  %v6394_v14 = vmax.f32 %v1114_v24, %v1216_v5  ;;  %v5387_v43 = vld [vmem:[%s7124_s3 + $0x190] ss:$8 sps:$4 sm:$0xff]   ;;  %v1345_v1 = vunpack.c.0.s8 %v1344_v61 }
 0x165   :  { %v1214_v29 = vsel %vm1184_vm0, %v1209_v8, %v1213_v36  ;;  %2015 = vmatprep.subr.bf16.mxu1 %v5371_v48  ;;  %v1218_v59 = vsel %vm1184_vm0, %v1213_v36, %v1217_v2  ;;  %v5384_v36 = vld [vmem:[%s7124_s3 + $0x340] ss:$8 sps:$4 sm:$0xff]  }
 0x166   :  { %1287 = vrot.lane.b32.xlu0 %v6358_v49, %s5674_s28  ;;  %v6386_v56 = vmax.f32 %v1113_v63, %v1214_v29  ;;  %v6399_v10 = vmax.f32 %v1115_v34, %v1218_v59  ;;  %v6432_v39 = vsub.s32 %v1345_v1, %v6015_v21 }
 0x167   :  { %1289 = vrot.lane.b32.xlu1 %v6365_v22, %s5674_s28 }
 0x168   :  { %2016 = vmatpush2.bf16.msra.mxu1 %v5369_v54 }
 0x169   :  { %2017 = vmatprep.subr.bf16.mxu1 %v5377_v60 }
 0x16a   :  { %1291 = vrot.lane.b32.xlu0 %v6381_v53, %s5674_s28 }
 0x16b   :  { %1293 = vrot.lane.b32.xlu1 %v6386_v56, %s5674_s28 }
 0x16c   :  { %2018 = vmatpush2.bf16.msra.mxu1 %v5375_v0 }
 0x16d   :  { %2019 = vmatprep.subr.bf16.mxu1 %v5383_v27 }
 0x16e   :  { %1295 = vrot.lane.b32.xlu0 %v6394_v14, %s5674_s28 }
 0x16f   :  { %1297 = vrot.lane.b32.xlu1 %v6399_v10, %s5674_s28 }
 0x170   :  { %2020 = vmatpush2.bf16.msra.mxu1 %v5381_v38 }
 0x171   :  { %2021 = vmatprep.subr.bf16.mxu1 %v5389_v40 }
 0x174   :  { %2022 = vmatpush2.bf16.msra.mxu1 %v5387_v43 }
 0x175   :  { %2023 = vmatprep.subr.bf16.mxu1 %v5395_v18 }
 0x178   :  { %2024 = vmatpush2.bf16.msra.mxu1 %v5393_v57 }
 0x179   :  { %2481 = vmatprep.subr.bf16.mxu1 %v5401_v19 }
 0x1c4   :  { %v1268_v62 = vpop.permute.xlu0 %1267 }
 0x1c5   :  { %v1272_v63 = vpop.permute.xlu1 %1271 }
 0x1c8   :  { %v1270_v20 = vpop.permute.xlu0 %1269 }
 0x1c9   :  { %v1300_v11 = vsel %vm1299_vm1, %v1268_v62, %v1270_v20  ;;  %v1325_v12 = vmax.f32 %v6221_v9, %v1270_v20  ;;  %v1274_v13 = vpop.permute.xlu1 %1273 }
 0x1ca   :  { %v1324_v24 = vmax.f32 %v6179_v55, %v1300_v11  ;;  %v1301_v23 = vsel %vm1299_vm1, %v1272_v63, %v1274_v13  ;;  %v1327_v8 = vmax.f32 %v6225_v42, %v1274_v13 }
 0x1cb   :  { %v1326_v45 = vmax.f32 %v6193_v37, %v1301_v23 }
 0x1cc   :  { %v1342_v46 = vcombine.low %v1324_v24, %v1325_v12  ;;  %v1369_v25 = vcombine.high %v1324_v24, %v1325_v12  ;;  %v1276_v34 = vpop.permute.xlu0 %1275 }
 0x1cd   :  { %v1395_v41 = vcombine.low %v1326_v45, %v1327_v8  ;;  %v1419_v32 = vcombine.high %v1326_v45, %v1327_v8  ;;  %v1278_v6 = vpop.permute.xlu1 %1277 }
 0x1ce   :  { %v1349_v9 = vrot.slane %v1342_v46, %v6432_v39  ;;  %v1376_v58 = vrot.slane %v1369_v25, %v6432_v39  ;;  %v1302_v3 = vsel %vm1299_vm1, %v1276_v34, %v1278_v6  ;;  %v1329_v55 = vmax.f32 %v6265_v26, %v1278_v6 }
 0x1cf   :  { %v1402_v37 = vrot.slane %v1395_v41, %v6432_v39  ;;  %v1426_v42 = vrot.slane %v1419_v32, %v6432_v39  ;;  %v1328_v15 = vmax.f32 %v6261_v16, %v1302_v3 }
 0x1d0   :  { %v1356_v31 = vrot.slane %v1349_v9, %v6432_v39  ;;  %v1383_v50 = vrot.slane %v1376_v58, %v6432_v39  ;;  %v1280_v35 = vpop.permute.xlu0 %1279 }
 0x1d1   :  { %v1409_v4 = vrot.slane %v1402_v37, %v6432_v39  ;;  %v1433_v26 = vrot.slane %v1426_v42, %v6432_v39  ;;  %v1445_v29 = vcombine.low %v1328_v15, %v1329_v55  ;;  %v1469_v2 = vcombine.high %v1328_v15, %v1329_v55  ;;  %v1282_v17 = vpop.permute.xlu1 %1281 }
 0x1d2   :  { %1362 = vst.msk [vmem:[#allocation3] ss:$8 sm:$0x3] %vm6443_vm2, %v1356_v31  ;;  %v1364_v48 = vcombine.high %v1356_v31, %v1356_v31  ;;  %1386 = vst.msk [vmem:[#allocation3 + $0x2] ss:$8 sm:$0x3] %vm6443_vm2, %v1383_v50  ;;  %v1388_v16 = vcombine.high %v1383_v50, %v1383_v50  ;;  %v1303_v54 = vsel %vm1299_vm1, %v1280_v35, %v1282_v17 }
 0x1d3   :  { %v1331_v5 = vmax.f32 %v6303_v51, %v1282_v17  ;;  %1412 = vst.msk [vmem:[#allocation3 + $0x4] ss:$8 sm:$0x3] %vm6443_vm2, %v1409_v4  ;;  %v1414_v59 = vcombine.high %v1409_v4, %v1409_v4  ;;  %1436 = vst.msk [vmem:[#allocation3 + $0x6] ss:$8 sm:$0x3] %vm6443_vm2, %v1433_v26  ;;  %v1438_v60 = vcombine.high %v1433_v26, %v1433_v26 }
 0x1d4   :  { %v1452_v0 = vrot.slane %v1445_v29, %v6432_v39  ;;  %v1476_v38 = vrot.slane %v1469_v2, %v6432_v39  ;;  %1367 = vst.msk [vmem:[#allocation3 + $0x1] ss:$8 sm:$0x3] %vm6443_vm2, %v1364_v48  ;;  %1391 = vst.msk [vmem:[#allocation3 + $0x3] ss:$8 sm:$0x3] %vm6443_vm2, %v1388_v16  ;;  %v1330_v51 = vmax.f32 %v6299_v47, %v1303_v54  ;;  %v1284_v27 = vpop.permute.xlu0 %1283 }
 0x1d5   :  { %1417 = vst.msk [vmem:[#allocation3 + $0x5] ss:$8 sm:$0x3] %vm6443_vm2, %v1414_v59  ;;  %1441 = vst.msk [vmem:[#allocation3 + $0x7] ss:$8 sm:$0x3] %vm6443_vm2, %v1438_v60  ;;  %v1286_v57 = vpop.permute.xlu1 %1285 }
 0x1d6   :  { %v1459_v43 = vrot.slane %v1452_v0, %v6432_v39  ;;  %v1483_v40 = vrot.slane %v1476_v38, %v6432_v39  ;;  %v1495_v18 = vcombine.low %v1330_v51, %v1331_v5  ;;  %v1304_v19 = vsel %vm1299_vm1, %v1284_v27, %v1286_v57  ;;  %v5366_v38 = vld [vmem:[%s7124_s3 + $0x370] ss:$8 sps:$4 sm:$0xff]  }
 0x1d7   :  { %v1333_v7 = vmax.f32 %v6339_v52, %v1286_v57  ;;  %v1332_v62 = vmax.f32 %v6332_v44, %v1304_v19 }
 0x1d8   :  { %1462 = vst.msk [vmem:[#allocation3 + $0x10] ss:$8 sm:$0x3] %vm6443_vm2, %v1459_v43  ;;  %v1464_v47 = vcombine.high %v1459_v43, %v1459_v43  ;;  %1486 = vst.msk [vmem:[#allocation3 + $0x12] ss:$8 sm:$0x3] %vm6443_vm2, %v1483_v40  ;;  %v1488_v61 = vcombine.high %v1483_v40, %v1483_v40  ;;  %v1502_v63 = vrot.slane %v1495_v18, %v6432_v39  ;;  %v1288_v1 = vpop.permute.xlu0 %1287 }
 0x1d9   :  { %v1521_v52 = vcombine.low %v1332_v62, %v1333_v7  ;;  %v1545_v20 = vcombine.high %v1332_v62, %v1333_v7  ;;  %v1290_v11 = vpop.permute.xlu1 %1289  ;;  %v5374_v43 = vld [vmem:[%s7124_s3 + $0x364] ss:$8 sps:$4 sm:$0xff]   ;;  %v1748_v18 = vld [vmem:[#allocation3 + $0x48] sm:$0x1] }
 0x1da   :  { %1467 = vst.msk [vmem:[#allocation3 + $0x11] ss:$8 sm:$0x3] %vm6443_vm2, %v1464_v47  ;;  %1491 = vst.msk [vmem:[#allocation3 + $0x13] ss:$8 sm:$0x3] %vm6443_vm2, %v1488_v61  ;;  %v1509_v12 = vrot.slane %v1502_v63, %v6432_v39  ;;  %v1305_v13 = vsel %vm1299_vm1, %v1288_v1, %v1290_v11  ;;  %v1335_v24 = vmax.f32 %v6365_v22, %v1290_v11 }
 0x1db   :  { %v1528_v44 = vrot.slane %v1521_v52, %v6432_v39  ;;  %v1552_v23 = vrot.slane %v1545_v20, %v6432_v39  ;;  %v1334_v8 = vmax.f32 %v6358_v49, %v1305_v13  ;;  %v5372_v47 = vld [vmem:[%s7124_s3 + $0x360] ss:$8 sps:$4 sm:$0xff]   ;;  %v5380_v1 = vld [vmem:[%s7124_s3 + $0x354] ss:$8 sps:$4 sm:$0xff]   ;;  %v1754_v20 = vpack.c.bf16 %v1748_v18, %v1748_v18  ;;  %v5399_v18 = vld [vmem:[%s7124_s3 + $0x270] ss:$8 sps:$4 sm:$0xff]  }
 0x1dc   :  { %1512 = vst.msk [vmem:[#allocation3 + $0x14] ss:$8 sm:$0x3] %vm6443_vm2, %v1509_v12  ;;  %v1514_v45 = vcombine.high %v1509_v12, %v1509_v12  ;;  %v1292_v46 = vpop.permute.xlu0 %1291  ;;  %v1696_v16 = vld [vmem:[#allocation3 + $0x8] sm:$0xff]  ;;  %v1695_v5 = vld [vmem:[#allocation3] sm:$0xff] }
 0x1dd   :  { %v1535_v25 = vrot.slane %v1528_v44, %v6432_v39  ;;  %v1559_v34 = vrot.slane %v1552_v23, %v6432_v39  ;;  %v1571_v41 = vcombine.low %v1334_v8, %v1335_v24  ;;  %v1595_v32 = vcombine.high %v1334_v8, %v1335_v24  ;;  %v1294_v6 = vpop.permute.xlu1 %1293  ;;  %v1740_v7 = vld [vmem:[#allocation3 + $0x8] sm:$0xfe]  ;;  %v1739_v62 = vld [vmem:[#allocation3] sm:$0xfe]  ;;  %v5386_v44 = vld [vmem:[%s7124_s3 + $0x344] ss:$8 sps:$4 sm:$0xff]  }
 0x1de   :  { %1517 = vst.msk [vmem:[#allocation3 + $0x15] ss:$8 sm:$0x3] %vm6443_vm2, %v1514_v45  ;;  %v1306_v22 = vsel %vm1299_vm1, %v1292_v46, %v1294_v6  ;;  %v1337_v9 = vmax.f32 %v6386_v56, %v1294_v6  ;;  %v2543_v11 = vld [vmem:[#allocation3 + $0x8] sm:$0xf8]  ;;  %v6572_v8 = vshll.u32 %v1754_v20, 16 }
 0x1df   :  { %1538 = vst.msk [vmem:[#allocation3 + $0x20] ss:$8 sm:$0x3] %vm6443_vm2, %v1535_v25  ;;  %v1540_v49 = vcombine.high %v1535_v25, %v1535_v25  ;;  %1562 = vst.msk [vmem:[#allocation3 + $0x22] ss:$8 sm:$0x3] %vm6443_vm2, %v1559_v34  ;;  %v1564_v58 = vcombine.high %v1559_v34, %v1559_v34  ;;  %v1578_v3 = vrot.slane %v1571_v41, %v6432_v39 }
 0x1e0   :  { %v1602_v55 = vrot.slane %v1595_v32, %v6432_v39  ;;  %v1336_v37 = vmax.f32 %v6381_v53, %v1306_v22  ;;  %v1296_v42 = vpop.permute.xlu0 %1295  ;;  %v5378_v12 = vld [vmem:[%s7124_s3 + $0x350] ss:$8 sps:$4 sm:$0xff]   ;;  %v5392_v45 = vld [vmem:[%s7124_s3 + $0x334] ss:$8 sps:$4 sm:$0xff]   ;;  %v1827_v22 = vrot.slane %v6572_v8, 1 }
 0x1e1   :  { %1543 = vst.msk [vmem:[#allocation3 + $0x21] ss:$8 sm:$0x3] %vm6443_vm2, %v1540_v49  ;;  %1567 = vst.msk [vmem:[#allocation3 + $0x23] ss:$8 sm:$0x3] %vm6443_vm2, %v1564_v58  ;;  %v1585_v56 = vrot.slane %v1578_v3, %v6432_v39  ;;  %v1298_v31 = vpop.permute.xlu1 %1297 }
 0x1e2   :  { %v1609_v15 = vrot.slane %v1602_v55, %v6432_v39  ;;  %v1621_v50 = vcombine.low %v1336_v37, %v1337_v9  ;;  %v1645_v35 = vcombine.high %v1336_v37, %v1337_v9  ;;  %v1307_v4 = vsel %vm1299_vm1, %v1296_v42, %v1298_v31  ;;  %v1747_v46 = vld [vmem:[#allocation3 + $0x40] sm:$0x1]  ;;  %v2259_v9 = vld [vmem:[#allocation3] sm:$0xfc] }
 0x1e3   :  { %v1339_v26 = vmax.f32 %v6399_v10, %v1298_v31  ;;  %1588 = vst.msk [vmem:[#allocation3 + $0x24] ss:$8 sm:$0x3] %vm6443_vm2, %v1585_v56  ;;  %v1590_v53 = vcombine.high %v1585_v56, %v1585_v56  ;;  %v1338_v2 = vmax.f32 %v6394_v14, %v1307_v4  ;;  %v1753_v37 = vpack.c.bf16 %v1747_v46, %v1747_v46  ;;  %v5398_v4 = vld [vmem:[%s7124_s3 + $0x324] ss:$8 sps:$4 sm:$0xff]  }
 0x1e4   :  { %1612 = vst.msk [vmem:[#allocation3 + $0x26] ss:$8 sm:$0x3] %vm6443_vm2, %v1609_v15  ;;  %v1614_v29 = vcombine.high %v1609_v15, %v1609_v15  ;;  %v1628_v17 = vrot.slane %v1621_v50, %v6432_v39  ;;  %v1652_v48 = vrot.slane %v1645_v35, %v6432_v39  ;;  %v2852_v50 = vld [vmem:[#allocation3 + $0x8] sm:$0xf0] }
 0x1e5   :  { %1593 = vst.msk [vmem:[#allocation3 + $0x25] ss:$8 sm:$0x3] %vm6443_vm2, %v1590_v53  ;;  %v1671_v10 = vcombine.low %v1338_v2, %v1339_v26  ;;  %v6529_v54 = vld [vmem:[#allocation3 + $0x18] sm:$0xff]  ;;  %v6531_v59 = vld [vmem:[#allocation3 + $0x10] sm:$0xff] }
 0x1e6   :  { %1617 = vst.msk [vmem:[#allocation3 + $0x27] ss:$8 sm:$0x3] %vm6443_vm2, %v1614_v29  ;;  %v1635_v60 = vrot.slane %v1628_v17, %v6432_v39  ;;  %v1659_v14 = vrot.slane %v1652_v48, %v6432_v39  ;;  %v1704_v0 = vpack.c.bf16 %v6529_v54, %v1696_v16  ;;  %v1703_v51 = vpack.c.bf16 %v6531_v59, %v1695_v5  ;;  %v5390_v35 = vld [vmem:[%s7124_s3 + $0x330] ss:$8 sps:$4 sm:$0xff]  }
 0x1e7   :  { %v1678_v27 = vrot.slane %v1671_v10, %v6432_v39  ;;  %v1750_v61 = vpack.c.bf16 %v6529_v54, %v1740_v7  ;;  %v1749_v52 = vpack.c.bf16 %v6531_v59, %v1739_v62  ;;  %v2547_v24 = vpack.c.bf16 %v6529_v54, %v2543_v11  ;;  %v2851_v5 = vld [vmem:[#allocation3] sm:$0xf0]  ;;  %v5407_v11 = vld [vmem:[%s7124_s3 + $0x264] ss:$8 sps:$4 sm:$0xff]   ;;  %v5402_v8 = vld [vmem:[%s7124_s3 + $0x310] ss:$8 sps:$4 sm:$0xff]  }
 0x1e8   :  { %1638 = vst.msk [vmem:[#allocation3 + $0x30] ss:$8 sm:$0x3] %vm6443_vm2, %v1635_v60  ;;  %v1640_v40 = vcombine.high %v1635_v60, %v1635_v60  ;;  %1662 = vst.msk [vmem:[#allocation3 + $0x32] ss:$8 sm:$0x3] %vm6443_vm2, %v1659_v14  ;;  %v1664_v57 = vcombine.high %v1659_v14, %v1659_v14  ;;  %2238 = vmatprep.mubr.bf16.mxu0 %v1704_v0  ;;  %v2263_v42 = vpack.c.bf16 %v6531_v59, %v2259_v9 }
 0x1e9   :  { %v1685_v19 = vrot.slane %v1678_v27, %v6432_v39  ;;  %2239 = vmatmul.mubr.bf16.vlgmr.msra.gmra.mxu0 %v1703_v51  ;;  %v1804_v13 = vshll.u32 %v1750_v61, 16  ;;  %v1792_v23 = vshll.u32 %v1749_v52, 16  ;;  %v2597_v34 = vshrl.u32 %v2547_v24, 16  ;;  %v5404_v20 = vld [vmem:[%s7124_s3 + $0x314] ss:$8 sps:$4 sm:$0xff]  }
 0x1ea   :  { %1643 = vst.msk [vmem:[#allocation3 + $0x31] ss:$8 sm:$0x3] %vm6443_vm2, %v1640_v40  ;;  %1667 = vst.msk [vmem:[#allocation3 + $0x33] ss:$8 sm:$0x3] %vm6443_vm2, %v1664_v57  ;;  %2791 = vmatpush1.bf16.msra.mxu0 %v5366_v38  ;;  %v2856_v2 = vpack.c.bf16 %v6529_v54, %v2852_v50  ;;  %v2855_v38 = vpack.c.bf16 %v6531_v59, %v2851_v5 }
 0x1eb   :  { %1688 = vst.msk [vmem:[#allocation3 + $0x34] ss:$8 sm:$0x3] %vm6443_vm2, %v1685_v19  ;;  %v1690_v63 = vcombine.high %v1685_v19, %v1685_v19  ;;  %2792 = vmatprep.subr.bf16.mxu0 %v5374_v43  ;;  %v1806_v25 = vrot.slane %v1804_v13, 1  ;;  %v2600_v41 = vshll.u32 %v2547_v24, 16  ;;  %v1794_v6 = vrot.slane %v1792_v23, 1 }
 0x1ec   :  { %v1802_v55 = vshrl.u32 %v1750_v61, 16  ;;  %v1790_v31 = vshrl.u32 %v1749_v52, 16  ;;  %v2599_v53 = vrot.slane %v2597_v34, 1  ;;  %v2307_v60 = vrot.slane %v2263_v42, 1  ;;  %v5396_v57 = vld [vmem:[%s7124_s3 + $0x320] ss:$8 sps:$4 sm:$0xff]  }
 0x1ed   :  { %1693 = vst.msk [vmem:[#allocation3 + $0x35] ss:$8 sm:$0x3] %vm6443_vm2, %v1690_v63  ;;  %v1700_v32 = vld [vmem:[#allocation3 + $0x28] sm:$0xff]  ;;  %v1699_v58 = vld [vmem:[#allocation3 + $0x20] sm:$0xff]  ;;  %v2602_v29 = vrot.slane %v2600_v41, 2 }
 0x1ee   :  { %2793 = vmatpush1.bf16.msra.mxu0 %v5372_v47  ;;  %v1807_v26 = vor.u32 %v1806_v25, %v1802_v55  ;;  %v1795_v48 = vor.u32 %v1794_v6, %v1790_v31  ;;  %v2900_v47 = vrot.slane %v2856_v2, 2  ;;  %v2897_v23 = vrot.slane %v2855_v38, 2  ;;  %v5410_v46 = vld [vmem:[%s7124_s3 + $0x304] ss:$8 sps:$4 sm:$0xff]   ;;  %v5413_v25 = vld [vmem:[%s7124_s3 + $0x254] ss:$8 sps:$4 sm:$0xff]  }
 0x1ef   :  { %2794 = vmatprep.subr.bf16.mxu0 %v5380_v1  ;;  %v2603_v19 = vor.u32 %v2602_v29, %v2599_v53  ;;  %v2260_v34 = vld [vmem:[#allocation3 + $0x8] sm:$0xfc]  ;;  %v5408_v9 = vld [vmem:[%s7124_s3 + $0x300] ss:$8 sps:$4 sm:$0xff]   ;;  %v5431_v2 = vld [vmem:[%s7124_s3 + $0x224] ss:$8 sps:$4 sm:$0xff]  }
 0x1f0   :  { %v5414_v31 = vld [vmem:[%s7124_s3 + $0x3f0] ss:$8 sps:$4 sm:$0xff]   ;;  %v5417_v50 = vld [vmem:[%s7124_s3 + $0x240] ss:$8 sps:$4 sm:$0xff]   ;;  %v5428_v29 = vld [vmem:[%s7124_s3 + $0x3d4] ss:$8 sps:$4 sm:$0xff]  }
 0x1f1   :  { %v5423_v53 = vld [vmem:[%s7124_s3 + $0x230] ss:$8 sps:$4 sm:$0xff]   ;;  %v5437_v5 = vld [vmem:[%s7124_s3 + $0x214] ss:$8 sps:$4 sm:$0xff]  }
 0x1f2   :  { %2795 = vmatpush1.bf16.msra.mxu0 %v5378_v12  ;;  %v1817_v12 = vshll.u32 %v1753_v37, 16  ;;  %v5419_v37 = vld [vmem:[%s7124_s3 + $0x244] ss:$8 sps:$4 sm:$0xff]   ;;  %v5435_v38 = vld [vmem:[%s7124_s3 + $0x210] ss:$8 sps:$4 sm:$0xff]  }
 0x1f3   :  { %2796 = vmatprep.subr.bf16.mxu0 %v5386_v44 }
 0x1f4   :  { %v1702_v49 = vld [vmem:[#allocation3 + $0x38] sm:$0xff]  ;;  %v1701_v3 = vld [vmem:[#allocation3 + $0x30] sm:$0xff]  ;;  %v1819_v6 = vrot.slane %v1817_v12, 1 }
 0x1f5   :  { %v6582_v56 = vpack.c.bf16 %v1702_v49, %v1700_v32  ;;  %v6584_v15 = vpack.c.bf16 %v1701_v3, %v1699_v58  ;;  %v5411_v49 = vld [vmem:[%s7124_s3 + $0x250] ss:$8 sps:$4 sm:$0xff]   ;;  %v5416_v3 = vld [vmem:[%s7124_s3 + $0x3f4] ss:$8 sps:$4 sm:$0xff]   ;;  %v5455_v12 = vld [vmem:[%s7124_s3 + $0x2e4] ss:$8 sps:$4 sm:$0xff]  }
 0x1f6   :  { %2797 = vmatpush1.bf16.msra.mxu0 %v5384_v36  ;;  %v5405_v36 = vld [vmem:[%s7124_s3 + $0x260] ss:$8 sps:$4 sm:$0xff]  }
 0x1f7   :  { %2248 = vmatprep.mubr.bf16.mxu0 %v6582_v56  ;;  %2798 = vmatprep.subr.bf16.mxu0 %v5392_v45  ;;  %v1809_v17 = vshll.u32 %v6582_v56, 16  ;;  %v1797_v16 = vshll.u32 %v6584_v15, 16  ;;  %v1821_v10 = vshrl.u32 %v6582_v56, 16  ;;  %v2308_v14 = vrot.slane %v6584_v15, 1 }
 0x1f8   :  { %2249 = vmatmul.mubr.bf16.gmra.mxu0 %v6584_v15  ;;  %v2901_v0 = vrot.slane %v6582_v56, 2  ;;  %v2898_v61 = vrot.slane %v6584_v15, 2  ;;  %v1813_v45 = vshrl.u32 %v6584_v15, 16  ;;  %v2311_v58 = vrot.slane %v6582_v56, 1 }
 0x1f9   :  { %v1811_v51 = vrot.slane %v1809_v17, 1  ;;  %v1799_v27 = vrot.slane %v1797_v16, 1  ;;  %v2604_v43 = vrot.slane %v1821_v10, 1  ;;  %v2605_v40 = vrot.slane %v1809_v17, 2  ;;  %v5426_v17 = vld [vmem:[%s7124_s3 + $0x3d0] ss:$8 sps:$4 sm:$0xff]  }
 0x1fa   :  { %2799 = vmatpush1.bf16.msra.mxu0 %v5390_v35  ;;  %v6612_v7 = vsel %vm1184_vm0, %v2307_v60, %v2308_v14  ;;  %v6631_v44 = vsel %vm2896_vm5, %v2900_v47, %v2901_v0  ;;  %v6649_v41 = vsel %vm2896_vm5, %v2897_v23, %v2898_v61  ;;  %v5422_v35 = vld [vmem:[%s7124_s3 + $0x3e4] ss:$8 sps:$4 sm:$0xff]   ;;  %v5432_v60 = vld [vmem:[%s7124_s3 + $0x3c0] ss:$8 sps:$4 sm:$0xff]   ;;  %v2542_v47 = vld [vmem:[#allocation3] sm:$0xf8] }
 0x1fb   :  { %2800 = vmatprep.subr.bf16.mxu0 %v5398_v4  ;;  %v1812_v62 = vsel %vm1788_vm3, %v1807_v26, %v1811_v51  ;;  %v1800_v63 = vsel %vm1788_vm3, %v1795_v48, %v1799_v27  ;;  %v1823_v1 = vor.u32 %v1821_v10, %v1811_v51  ;;  %v6617_v52 = vor.u32 %v2605_v40, %v2604_v43  ;;  %v5425_v4 = vld [vmem:[%s7124_s3 + $0x234] ss:$8 sps:$4 sm:$0xff]   ;;  %v5420_v26 = vld [vmem:[%s7124_s3 + $0x3e0] ss:$8 sps:$4 sm:$0xff]   ;;  %v5434_v10 = vld [vmem:[%s7124_s3 + $0x3c4] ss:$8 sps:$4 sm:$0xff]  }
 0x1fc   :  { %2025 = vmatprep.mubr.bf16.mxu1 %v1812_v62  ;;  %v1815_v32 = vor.u32 %v1813_v45, %v1799_v27  ;;  %v5429_v48 = vld [vmem:[%s7124_s3 + $0x220] ss:$8 sps:$4 sm:$0xff]   ;;  %v5440_v51 = vld [vmem:[%s7124_s3 + $0x3b4] ss:$8 sps:$4 sm:$0xff]   ;;  %v5443_v27 = vld [vmem:[%s7124_s3 + $0x204] ss:$8 sps:$4 sm:$0xff]  }
 0x1fd   :  { %2026 = vmatmul.mubr.bf16.vlgmr.msra.gmra.mxu1 %v1800_v63  ;;  %v1828_v13 = vsel %vm1788_vm3, %v1823_v1, %v1827_v22  ;;  %v2607_v24 = vsel %vm2583_vm4, %v2603_v19, %v6617_v52  ;;  %v2264_v22 = vpack.c.bf16 %v6529_v54, %v2260_v34  ;;  %v5438_v43 = vld [vmem:[%s7124_s3 + $0x3b0] ss:$8 sps:$4 sm:$0xff]   ;;  %v5441_v40 = vld [vmem:[%s7124_s3 + $0x200] ss:$8 sps:$4 sm:$0xff]   ;;  %v5449_v19 = vld [vmem:[%s7124_s3 + $0x2f4] ss:$8 sps:$4 sm:$0xff]  }
 0x1fe   :  { %2801 = vmatpush1.bf16.msra.mxu0 %v5396_v57  ;;  %2482 = vmatpush1.bf16.msra.mxu1 %v5399_v18  ;;  %v1820_v54 = vsel %vm1788_vm3, %v1815_v32, %v1819_v6  ;;  %v2545_v57 = vld [vmem:[#allocation3 + $0x48] sm:$0x7]  ;;  %v5446_v18 = vld [vmem:[%s7124_s3 + $0x3a4] ss:$8 sps:$4 sm:$0xff]   ;;  %v5444_v63 = vld [vmem:[%s7124_s3 + $0x3a0] ss:$8 sps:$4 sm:$0xff]  }
 0x1ff   :  { %2035 = vmatprep.mubr.bf16.mxu1 %v1828_v13  ;;  %2822 = vmatprep.mubr.bf16.mxu0 %v2607_v24  ;;  %v2310_v55 = vrot.slane %v2264_v22, 1  ;;  %v2549_v62 = vpack.c.bf16 %v2545_v57, %v2545_v57  ;;  %v5447_v1 = vld [vmem:[%s7124_s3 + $0x2f0] ss:$8 sps:$4 sm:$0xff]   ;;  %v5461_v34 = vld [vmem:[%s7124_s3 + $0x2d4] ss:$8 sps:$4 sm:$0xff]   ;;  %v2592_v32 = vrot.slane %v1813_v45, 1 }
 0x200   :  { %2802 = vmatprep.subr.bf16.mxu0 %v5404_v20  ;;  %2483 = vmatprep.subr.bf16.mxu1 %v5407_v11  ;;  %v2546_v20 = vpack.c.bf16 %v6531_v59, %v2542_v47  ;;  %v5452_v11 = vld [vmem:[%s7124_s3 + $0x394] ss:$8 sps:$4 sm:$0xff]   ;;  %v2544_v23 = vld [vmem:[#allocation3 + $0x40] sm:$0x7]  ;;  %v5453_v59 = vld [vmem:[%s7124_s3 + $0x2e0] ss:$8 sps:$4 sm:$0xff]  }
 0x201   :  { %v2312_v42 = vsel %vm1184_vm0, %v2310_v55, %v2311_v58  ;;  %v2618_v13 = vshrl.u32 %v2549_v62, 16  ;;  %v2621_v24 = vshll.u32 %v2549_v62, 16  ;;  %v2593_v6 = vrot.slane %v1797_v16, 2  ;;  %v5464_v16 = vld [vmem:[%s7124_s3 + $0x2c4] ss:$8 sps:$4 sm:$0xff]  }
 0x202   :  { %2803 = vmatpush1.bf16.msra.mxu0 %v5402_v8  ;;  %2484 = vmatpush1.bf16.msra.mxu1 %v5405_v36  ;;  %v5450_v8 = vld [vmem:[%s7124_s3 + $0x390] ss:$8 sps:$4 sm:$0xff]   ;;  %v2585_v36 = vshrl.u32 %v2546_v20, 16  ;;  %v2548_v22 = vpack.c.bf16 %v2544_v23, %v2544_v23  ;;  %v5474_v57 = vld [vmem:[%s7124_s3 + $0x280] ss:$8 sps:$4 sm:$0xff]  }
 0x203   :  { %2804 = vmatprep.subr.bf16.mxu0 %v5410_v46  ;;  %2485 = vmatprep.subr.bf16.mxu1 %v5413_v25  ;;  %v2588_v46 = vshll.u32 %v2546_v20, 16  ;;  %v5458_v25 = vld [vmem:[%s7124_s3 + $0x384] ss:$8 sps:$4 sm:$0xff]   ;;  %v2594_v45 = vor.u32 %v2593_v6, %v2592_v32  ;;  %v2261_v47 = vld [vmem:[#allocation3 + $0x40] sm:$0x3] }
 0x204   :  { %v2587_v55 = vrot.slane %v2585_v36, 1  ;;  %v5477_v62 = vld [vmem:[%s7124_s3 + $0x470] ss:$8 sps:$4 sm:$0xff]   ;;  %v5486_v23 = vld [vmem:[%s7124_s3 + $0x440] ss:$8 sps:$4 sm:$0xff]  }
 0x205   :  { %2036 = vmatmul.mubr.bf16.gmra.mxu1 %v1820_v54  ;;  %v5459_v54 = vld [vmem:[%s7124_s3 + $0x2d0] ss:$8 sps:$4 sm:$0xff]   ;;  %v5497_v36 = vld [vmem:[%s7124_s3 + $0x414] ss:$8 sps:$4 sm:$0xff]  }
 0x206   :  { %2805 = vmatpush1.bf16.msra.mxu0 %v5408_v9  ;;  %2486 = vmatpush1.bf16.msra.mxu1 %v5411_v49  ;;  %v2620_v9 = vrot.slane %v2618_v13, 1  ;;  %v2623_v49 = vrot.slane %v2621_v24, 2  ;;  %v5503_v32 = vld [vmem:[%s7124_s3 + $0x4f4] ss:$8 sps:$4 sm:$0xff]   ;;  %v5501_v6 = vld [vmem:[%s7124_s3 + $0x4f0] ss:$8 sps:$4 sm:$0xff]  }
 0x207   :  { %2513 = vmatprep.mubr.bf16.mxu1 %v2312_v42  ;;  %2806 = vmatprep.subr.bf16.mxu0 %v5416_v3  ;;  %v5456_v3 = vld [vmem:[%s7124_s3 + $0x380] ss:$8 sps:$4 sm:$0xff]   ;;  %v2609_v42 = vshrl.u32 %v2548_v22, 16 }
 0x208   :  { %2487 = vmatprep.subr.bf16.mxu1 %v5419_v37  ;;  %v2590_v37 = vrot.slane %v2588_v46, 2  ;;  %v5495_v46 = vld [vmem:[%s7124_s3 + $0x410] ss:$8 sps:$4 sm:$0xff]  }
 0x20a   :  { %2807 = vmatpush2.bf16.msra.mxu0 %v5414_v31  ;;  %2488 = vmatpush1.bf16.msra.mxu1 %v5417_v50  ;;  %v2612_v31 = vshll.u32 %v2548_v22, 16  ;;  %v2624_v50 = vor.u32 %v2623_v49, %v2620_v9  ;;  %v5506_v22 = vld [vmem:[%s7124_s3 + $0x4e4] ss:$8 sps:$4 sm:$0xff]   ;;  %v5504_v9 = vld [vmem:[%s7124_s3 + $0x4e0] ss:$8 sps:$4 sm:$0xff]  }
 0x20b   :  { %2808 = vmatprep.subr.bf16.mxu0 %v5422_v35  ;;  %2489 = vmatprep.subr.bf16.mxu1 %v5425_v4  ;;  %v2591_v35 = vor.u32 %v2590_v37, %v2587_v55  ;;  %v5462_v4 = vld [vmem:[%s7124_s3 + $0x2c0] ss:$8 sps:$4 sm:$0xff]   ;;  %v5509_v49 = vld [vmem:[%s7124_s3 + $0x4d4] ss:$8 sps:$4 sm:$0xff]  }
 0x20c   :  { %v5510_v55 = vld [vmem:[%s7124_s3 + $0x4c0] ss:$8 sps:$4 sm:$0xff]   ;;  %v5515_v37 = vld [vmem:[%s7124_s3 + $0x4b4] ss:$8 sps:$4 sm:$0xff]  }
 0x20e   :  { %2809 = vmatpush2.bf16.msra.mxu0 %v5420_v26  ;;  %2490 = vmatpush1.bf16.msra.mxu1 %v5423_v53  ;;  %v5467_v26 = vld [vmem:[%s7124_s3 + $0x2b4] ss:$8 sps:$4 sm:$0xff]   ;;  %v2595_v53 = vsel %vm2583_vm4, %v2591_v35, %v2594_v45  ;;  %v2854_v35 = vld [vmem:[#allocation3 + $0x48] sm:$0xf] }
 0x20f   :  { %2810 = vmatprep.subr.bf16.mxu0 %v5428_v29  ;;  %2491 = vmatprep.subr.bf16.mxu1 %v5431_v2  ;;  %v2611_v29 = vrot.slane %v2609_v42, 1  ;;  %v2614_v2 = vrot.slane %v2612_v31, 2  ;;  %v5516_v42 = vld [vmem:[%s7124_s3 + $0x4a0] ss:$8 sps:$4 sm:$0xff]   ;;  %v5521_v31 = vld [vmem:[%s7124_s3 + $0x494] ss:$8 sps:$4 sm:$0xff]  }
 0x212   :  { %2811 = vmatpush2.bf16.msra.mxu0 %v5426_v17  ;;  %2492 = vmatpush1.bf16.msra.mxu1 %v5429_v48  ;;  %v2625_v17 = vsel %vm2583_vm4, %v6617_v52, %v2624_v50  ;;  %v5465_v48 = vld [vmem:[%s7124_s3 + $0x2b0] ss:$8 sps:$4 sm:$0xff]   ;;  %v5473_v52 = vld [vmem:[%s7124_s3 + $0x294] ss:$8 sps:$4 sm:$0xff]  }
 0x213   :  { %2812 = vmatprep.subr.bf16.mxu0 %v5434_v10  ;;  %2493 = vmatprep.subr.bf16.mxu1 %v5437_v5  ;;  %v5470_v10 = vld [vmem:[%s7124_s3 + $0x2a4] ss:$8 sps:$4 sm:$0xff]   ;;  %v2615_v5 = vor.u32 %v2614_v2, %v2611_v29  ;;  %v5519_v50 = vld [vmem:[%s7124_s3 + $0x490] ss:$8 sps:$4 sm:$0xff]  }
 0x214   :  { %v2853_v2 = vld [vmem:[#allocation3 + $0x40] sm:$0xf] }
 0x216   :  { %2813 = vmatpush2.bf16.msra.mxu0 %v5432_v60  ;;  %2494 = vmatpush1.bf16.msra.mxu1 %v5435_v38  ;;  %v5468_v60 = vld [vmem:[%s7124_s3 + $0x2a0] ss:$8 sps:$4 sm:$0xff]   ;;  %v2616_v38 = vsel %vm2583_vm4, %v2594_v45, %v2615_v5  ;;  %v5518_v45 = vld [vmem:[%s7124_s3 + $0x4a4] ss:$8 sps:$4 sm:$0xff]  }
 0x217   :  { %2814 = vmatprep.subr.bf16.mxu0 %v5440_v51  ;;  %2495 = vmatprep.subr.bf16.mxu1 %v5443_v27  ;;  %v5471_v51 = vld [vmem:[%s7124_s3 + $0x290] ss:$8 sps:$4 sm:$0xff]  }
 0x218   :  { %v2262_v27 = vld [vmem:[#allocation3 + $0x48] sm:$0x3] }
 0x21a   :  { %2815 = vmatpush2.bf16.msra.mxu0 %v5438_v43  ;;  %2496 = vmatpush1.bf16.msra.mxu1 %v5441_v40  ;;  %v5476_v43 = vld [vmem:[%s7124_s3 + $0x284] ss:$8 sps:$4 sm:$0xff]   ;;  %v2266_v40 = vpack.c.bf16 %v2262_v27, %v2262_v27 }
 0x21b   :  { %2816 = vmatprep.subr.bf16.mxu0 %v5446_v18  ;;  %2497 = vmatprep.subr.bf16.mxu1 %v5449_v19  ;;  %v5479_v18 = vld [vmem:[%s7124_s3 + $0x474] ss:$8 sps:$4 sm:$0xff]  }
 0x21c   :  { %v2315_v19 = vrot.slane %v2266_v40, 1 }
 0x21e   :  { %2817 = vmatpush2.bf16.msra.mxu0 %v5444_v63  ;;  %2498 = vmatpush2.bf16.msra.mxu1 %v5447_v1  ;;  %v5482_v63 = vld [vmem:[%s7124_s3 + $0x464] ss:$8 sps:$4 sm:$0xff]   ;;  %v2265_v1 = vpack.c.bf16 %v2261_v47, %v2261_v47  ;;  %v2316_v20 = vsel %vm1184_vm0, %v2311_v58, %v2315_v19 }
 0x21f   :  { %2818 = vmatprep.subr.bf16.mxu0 %v5452_v11  ;;  %2499 = vmatprep.subr.bf16.mxu1 %v5455_v12  ;;  %v5480_v11 = vld [vmem:[%s7124_s3 + $0x460] ss:$8 sps:$4 sm:$0xff]   ;;  %v5485_v12 = vld [vmem:[%s7124_s3 + $0x454] ss:$8 sps:$4 sm:$0xff]   ;;  %v5488_v58 = vld [vmem:[%s7124_s3 + $0x444] ss:$8 sps:$4 sm:$0xff]  }
 0x220   :  { %v2313_v13 = vrot.slane %v2265_v1, 1 }
 0x222   :  { %2819 = vmatpush2.bf16.msra.mxu0 %v5450_v8  ;;  %2500 = vmatpush2.bf16.msra.mxu1 %v5453_v59  ;;  %v2314_v24 = vsel %vm1184_vm0, %v2308_v14, %v2313_v13  ;;  %v5491_v8 = vld [vmem:[%s7124_s3 + $0x434] ss:$8 sps:$4 sm:$0xff]   ;;  %v5489_v59 = vld [vmem:[%s7124_s3 + $0x430] ss:$8 sps:$4 sm:$0xff]   ;;  %v5494_v14 = vld [vmem:[%s7124_s3 + $0x424] ss:$8 sps:$4 sm:$0xff]  }
 0x223   :  { %2820 = vmatprep.subr.bf16.mxu0 %v5458_v25  ;;  %2501 = vmatprep.subr.bf16.mxu1 %v5461_v34  ;;  %v5500_v25 = vld [vmem:[%s7124_s3 + $0x404] ss:$8 sps:$4 sm:$0xff]   ;;  %v5498_v34 = vld [vmem:[%s7124_s3 + $0x400] ss:$8 sps:$4 sm:$0xff]  }
 0x226   :  { %2821 = vmatpush2.bf16.msra.mxu0 %v5456_v3  ;;  %2502 = vmatpush2.bf16.msra.mxu1 %v5459_v54  ;;  %v5507_v3 = vld [vmem:[%s7124_s3 + $0x4d0] ss:$8 sps:$4 sm:$0xff]   ;;  %v5512_v54 = vld [vmem:[%s7124_s3 + $0x4c4] ss:$8 sps:$4 sm:$0xff]  }
 0x227   :  { %2503 = vmatprep.subr.bf16.mxu1 %v5464_v16  ;;  %v5513_v16 = vld [vmem:[%s7124_s3 + $0x4b0] ss:$8 sps:$4 sm:$0xff]  }
 0x229   :  { %2823 = vmatmul.mubr.bf16.vlgmr.msra.gmra.mxu0 %v2595_v53  ;;  %v5522_v53 = vld [vmem:[%s7124_s3 + $0x480] ss:$8 sps:$4 sm:$0xff]  }
 0x22a   :  { %2832 = vmatprep.mubr.bf16.mxu0 %v2625_v17  ;;  %2504 = vmatpush2.bf16.msra.mxu1 %v5462_v4  ;;  %v5524_v4 = vld [vmem:[%s7124_s3 + $0x484] ss:$8 sps:$4 sm:$0xff]   ;;  %v2857_v17 = vpack.c.bf16 %v2853_v2, %v2853_v2 }
 0x22b   :  { %2505 = vmatprep.subr.bf16.mxu1 %v5467_v26  ;;  %v2858_v26 = vpack.c.bf16 %v2854_v35, %v2854_v35 }
 0x22d   :  { %v2905_v29 = vrot.slane %v2858_v26, 2 }
 0x22e   :  { %2506 = vmatpush2.bf16.msra.mxu1 %v5465_v48 }
 0x22f   :  { %2507 = vmatprep.subr.bf16.mxu1 %v5470_v10  ;;  %v2906_v48 = vsel %vm2896_vm5, %v2901_v0, %v2905_v29  ;;  %v2903_v10 = vrot.slane %v2857_v17, 2 }
 0x231   :  { %2833 = vmatmul.mubr.bf16.gmra.mxu0 %v2616_v38  ;;  %v2904_v5 = vsel %vm2896_vm5, %v2898_v61, %v2903_v10  ;;  %v5527_v38 = vld [vmem:[#allocation8 + $0x38] sm:$0xff]  }
 0x232   :  { %2508 = vmatpush2.bf16.msra.mxu1 %v5468_v60  ;;  %v5525_v60 = vld [vmem:[#allocation8 + $0x78] sm:$0xff]  }
 0x233   :  { %2509 = vmatprep.subr.bf16.mxu1 %v5473_v52  ;;  %v5526_v52 = vld [vmem:[#allocation8 + $0x178] sm:$0xff]   ;;  %4985 = vmatprep.subr.bf16.mxu0 %v5525_v60 }
 0x234   :  { %4986 = vmatpush3.bf16.msra.mxu0 %v5527_v38 }
 0x236   :  { %2510 = vmatpush2.bf16.msra.mxu1 %v5471_v51  ;;  %v5528_v51 = vld [vmem:[#allocation8 + $0x138] sm:$0xff]  }
 0x237   :  { %2511 = vmatprep.subr.bf16.mxu1 %v5476_v43 }
 0x23a   :  { %2512 = vmatpush2.bf16.msra.mxu1 %v5474_v57 }
 0x23b   :  { %3071 = vmatprep.subr.bf16.mxu1 %v5479_v18 }
 0x23d   :  { %2514 = vmatmul.mubr.bf16.vlgmr.msra.gmra.mxu1 %v6612_v7  ;;  %v5483_v7 = vld [vmem:[%s7124_s3 + $0x450] ss:$8 sps:$4 sm:$0xff]  }
 0x23e   :  { %2523 = vmatprep.mubr.bf16.mxu1 %v2316_v20  ;;  %3072 = vmatpush1.bf16.msra.mxu1 %v5477_v62 }
 0x23f   :  { %3073 = vmatprep.subr.bf16.mxu1 %v5482_v63 }
 0x242   :  { %3074 = vmatpush1.bf16.msra.mxu1 %v5480_v11 }
 0x243   :  { %3075 = vmatprep.subr.bf16.mxu1 %v5485_v12 }
 0x245   :  { %2524 = vmatmul.mubr.bf16.gmra.mxu1 %v2314_v24 }
 0x246   :  { %3076 = vmatpush1.bf16.msra.mxu1 %v5483_v7  ;;  %3103 = vmatprep.mubr.bf16.mxu1 %v6631_v44  ;;  %v5492_v44 = vld [vmem:[%s7124_s3 + $0x420] ss:$8 sps:$4 sm:$0xff]  }
 0x247   :  { %3077 = vmatprep.subr.bf16.mxu1 %v5488_v58 }
 0x24a   :  { %3078 = vmatpush1.bf16.msra.mxu1 %v5486_v23 }
 0x24b   :  { %3079 = vmatprep.subr.bf16.mxu1 %v5491_v8 }
 0x24e   :  { %3080 = vmatpush1.bf16.msra.mxu1 %v5489_v59 }
 0x24f   :  { %3081 = vmatprep.subr.bf16.mxu1 %v5494_v14 }
 0x252   :  { %3082 = vmatpush1.bf16.msra.mxu1 %v5492_v44 }
 0x253   :  { %3083 = vmatprep.subr.bf16.mxu1 %v5497_v36 }
 0x256   :  { %3084 = vmatpush1.bf16.msra.mxu1 %v5495_v46 }
 0x257   :  { %3085 = vmatprep.subr.bf16.mxu1 %v5500_v25 }
 0x25a   :  { %3086 = vmatpush1.bf16.msra.mxu1 %v5498_v34  ;;  %v3132_v34 = vld [vmem:[%s7125_s4] sm:$0x3]  ;;  %s5676_s4 = smov 112  }
 0x25b   :  { %3087 = vmatprep.subr.bf16.mxu1 %v5503_v32 }
 0x25e   :  { %3088 = vmatpush2.bf16.msra.mxu1 %v5501_v6 }
 0x25f   :  { %3089 = vmatprep.subr.bf16.mxu1 %v5506_v22 }
 0x262   :  { %3090 = vmatpush2.bf16.msra.mxu1 %v5504_v9 }
 0x263   :  { %3091 = vmatprep.subr.bf16.mxu1 %v5509_v49 }
 0x266   :  { %3092 = vmatpush2.bf16.msra.mxu1 %v5507_v3 }
 0x267   :  { %3093 = vmatprep.subr.bf16.mxu1 %v5512_v54  ;;  %v6916_v54 = vrot.slane %v3132_v34, %v1076_v30 }
 0x26a   :  { %3094 = vmatpush2.bf16.msra.mxu1 %v5510_v55 }
 0x26b   :  { %3095 = vmatprep.subr.bf16.mxu1 %v5515_v37 }
 0x26e   :  { %3096 = vmatpush2.bf16.msra.mxu1 %v5513_v16 }
 0x26f   :  { %3097 = vmatprep.subr.bf16.mxu1 %v5518_v45 }
 0x272   :  { %3098 = vmatpush2.bf16.msra.mxu1 %v5516_v42 }
 0x273   :  { %3099 = vmatprep.subr.bf16.mxu1 %v5521_v31 }
 0x276   :  { %3100 = vmatpush2.bf16.msra.mxu1 %v5519_v50  ;;  %v6920_v50 = vrot.slane %v3132_v34, %v1080_v28  ;;  %v5534_v34 = vld [vmem:[#allocation8 + $0x168] sm:$0xff]  }
 0x277   :  { %3101 = vmatprep.subr.bf16.mxu1 %v5524_v4 }
 0x27a   :  { %3102 = vmatpush2.bf16.msra.mxu1 %v5522_v53 }
 0x27b   :  { %5029 = vmatprep.subr.bf16.mxu1 %v5526_v52 }
 0x27d   :  { %3104 = vmatmul.mubr.bf16.vlgmr.msra.gmra.mxu1 %v6649_v41 }
 0x27e   :  { %3113 = vmatprep.mubr.bf16.mxu1 %v2906_v48  ;;  %5030 = vmatpush3.bf16.msra.mxu1 %v5528_v51 }
 0x285   :  { %3114 = vmatmul.mubr.bf16.gmra.mxu1 %v2904_v5 }
 0x2a9   :  { %v2240_v0 = vpop.f32.mrf.mxu0 }
 0x2ab   :  { %v2242_v57 = vpop.f32.mrf.mxu0 }
 0x2ad   :  { %v2244_v15 = vpop.f32.mrf.mxu0 }
 0x2af   :  { %v2246_v61 = vpop.f32.mrf.mxu0 }
 0x2b8   :  { %v2250_v62 = vpop.f32.mrf.mxu0 }
 0x2ba   :  { %v2252_v1 = vpop.f32.mrf.mxu0 }
 0x2bc   :  { %v2254_v11 = vpop.f32.mrf.mxu0 }
 0x2bd   :  { %v2027_v41 = vpop.f32.mrf.mxu1 }
 0x2be   :  { %v2256_v13 = vpop.f32.mrf.mxu0  ;;  %v2241_v14 = vadd.f32 %v2240_v0, %v2027_v41  ;;  %v5529_v41 = vld [vmem:[#allocation8 + $0x70] sm:$0xff]  }
 0x2bf   :  { %v2029_v27 = vpop.f32.mrf.mxu1  ;;  %4987 = vmatprep.subr.bf16.mxu0 %v5529_v41 }
 0x2c0   :  { %v2243_v36 = vadd.f32 %v2242_v57, %v2029_v27  ;;  %v5530_v27 = vld [vmem:[#allocation8 + $0x170] sm:$0xff]  }
 0x2c1   :  { %v2031_v56 = vpop.f32.mrf.mxu1  ;;  %5031 = vmatprep.subr.bf16.mxu1 %v5530_v27 }
 0x2c2   :  { %v2245_v32 = vadd.f32 %v2244_v15, %v2031_v56 }
 0x2c3   :  { %v2033_v43 = vpop.f32.mrf.mxu1 }
 0x2c4   :  { %v2247_v9 = vadd.f32 %v2246_v61, %v2033_v43 }
 0x2c5   :  { %v2037_v40 = vpop.f32.mrf.mxu1 }
 0x2c6   :  { %v2251_v55 = vadd.f32 %v2250_v62, %v2037_v40 }
 0x2c7   :  { %v2039_v18 = vpop.f32.mrf.mxu1 }
 0x2c8   :  { %v2253_v35 = vadd.f32 %v2252_v1, %v2039_v18 }
 0x2c9   :  { %v2041_v19 = vpop.f32.mrf.mxu1 }
 0x2ca   :  { %v2255_v30 = vadd.f32 %v2254_v11, %v2041_v19 }
 0x2cb   :  { %v2043_v47 = vpop.f32.mrf.mxu1 }
 0x2cc   :  { %v2257_v52 = vadd.f32 %v2256_v13, %v2043_v47  ;;  %v5531_v13 = vld [vmem:[#allocation8 + $0x30] sm:$0xff]  }
 0x2cd   :  { %4988 = vmatpush3.bf16.msra.mxu0 %v5531_v13 }
 0x2e9   :  { %v2824_v58 = vpop.f32.mrf.mxu0 }
 0x2eb   :  { %v2826_v23 = vpop.f32.mrf.mxu0 }
 0x2ed   :  { %v2828_v59 = vpop.f32.mrf.mxu0 }
 0x2ef   :  { %v2830_v25 = vpop.f32.mrf.mxu0 }
 0x2f1   :  { %v2834_v37 = vpop.f32.mrf.mxu0 }
 0x2f3   :  { %v2836_v17 = vpop.f32.mrf.mxu0 }
 0x2f5   :  { %v2838_v57 = vpop.f32.mrf.mxu0 }
 0x2fd   :  { %v2515_v63 = vpop.f32.mrf.mxu1 }
 0x2fe   :  { %v2534_v46 = vadd.f32 %v2515_v63, %v2241_v14 }
 0x2ff   :  { %v2517_v20 = vpop.f32.mrf.mxu1 }
 0x300   :  { %v2535_v6 = vadd.f32 %v2517_v20, %v2243_v36  ;;  %v2843_v3 = vadd.f32 %v2824_v58, %v2534_v46  ;;  %v2840_v58 = vpop.f32.mrf.mxu0 }
 0x301   :  { %v2519_v12 = vpop.f32.mrf.mxu1 }
 0x302   :  { %v2536_v49 = vadd.f32 %v2519_v12, %v2245_v32  ;;  %v2844_v31 = vadd.f32 %v2826_v23, %v2535_v6 }
 0x303   :  { %v2521_v7 = vpop.f32.mrf.mxu1 }
 0x304   :  { %v2537_v45 = vadd.f32 %v2521_v7, %v2247_v9  ;;  %v2845_v2 = vadd.f32 %v2828_v59, %v2536_v49  ;;  %v5532_v7 = vld [vmem:[#allocation8 + $0x130] sm:$0xff]   ;;  %v5535_v49 = vld [vmem:[#allocation8 + $0x28] sm:$0xff]  }
 0x305   :  { %v2525_v24 = vpop.f32.mrf.mxu1  ;;  %5032 = vmatpush3.bf16.msra.mxu1 %v5532_v7  ;;  %v5550_v7 = vld [vmem:[#allocation8 + $0x148] sm:$0xff]  }
 0x306   :  { %v2538_v4 = vadd.f32 %v2525_v24, %v2251_v55  ;;  %v2846_v28 = vadd.f32 %v2830_v25, %v2537_v45  ;;  %v5533_v25 = vld [vmem:[#allocation8 + $0x68] sm:$0xff]   ;;  %5033 = vmatprep.subr.bf16.mxu1 %v5534_v34 }
 0x307   :  { %v2527_v8 = vpop.f32.mrf.mxu1  ;;  %4989 = vmatprep.subr.bf16.mxu0 %v5533_v25 }
 0x308   :  { %v2539_v48 = vadd.f32 %v2527_v8, %v2253_v35  ;;  %v2847_v51 = vadd.f32 %v2834_v37, %v2538_v4  ;;  %4990 = vmatpush3.bf16.msra.mxu0 %v5535_v49  ;;  %v5537_v35 = vld [vmem:[#allocation8 + $0x60] sm:$0xff]  }
 0x309   :  { %v2529_v44 = vpop.f32.mrf.mxu1  ;;  %v5538_v4 = vld [vmem:[#allocation8 + $0x160] sm:$0xff]   ;;  %4991 = vmatprep.subr.bf16.mxu0 %v5537_v35 }
 0x30a   :  { %v2540_v56 = vadd.f32 %v2529_v44, %v2255_v30  ;;  %v2848_v15 = vadd.f32 %v2836_v17, %v2539_v48  ;;  %v5539_v30 = vld [vmem:[#allocation8 + $0x20] sm:$0xff]   ;;  %v3184_v48 = vld [vmem:[#allocation4 + $0x30] sm:$0x1] }
 0x30b   :  { %v2531_v22 = vpop.f32.mrf.mxu1  ;;  %v5540_v17 = vld [vmem:[#allocation8 + $0x120] sm:$0xff]   ;;  %v3210_v27 = vrot.slane %v3184_v48, 1 }
 0x30c   :  { %v2541_v19 = vadd.f32 %v2531_v22, %v2257_v52  ;;  %v2849_v12 = vadd.f32 %v2838_v57, %v2540_v56  ;;  %4992 = vmatpush3.bf16.msra.mxu0 %v5539_v30  ;;  %v5541_v52 = vld [vmem:[#allocation8 + $0x58] sm:$0xff]  }
 0x30d   :  { %v5543_v56 = vld [vmem:[#allocation8 + $0x18] sm:$0xff]   ;;  %4993 = vmatprep.subr.bf16.mxu0 %v5541_v52 }
 0x30e   :  { %v2850_v14 = vadd.f32 %v2840_v58, %v2541_v19  ;;  %v5545_v19 = vld [vmem:[#allocation8 + $0x50] sm:$0xff]   ;;  %v5551_v58 = vld [vmem:[#allocation8 + $0x8] sm:$0xff]  }
 0x310   :  { %4994 = vmatpush3.bf16.msra.mxu0 %v5543_v56 }
 0x311   :  { %4995 = vmatprep.subr.bf16.mxu0 %v5545_v19 }
 0x33d   :  { %v3105_v16 = vpop.f32.mrf.mxu1 }
 0x33e   :  { %v3124_v42 = vadd.f32 %v3105_v16, %v2843_v3  ;;  %v5536_v3 = vld [vmem:[#allocation8 + $0x128] sm:$0xff]  }
 0x33f   :  { %v3107_v26 = vpop.f32.mrf.mxu1  ;;  %5034 = vmatpush3.bf16.msra.mxu1 %v5536_v3 }
 0x340   :  { %v6923_v53 = vadd.f32 %v6916_v54, %v3124_v42  ;;  %v3125_v29 = vadd.f32 %v3107_v26, %v2844_v31  ;;  %5035 = vmatprep.subr.bf16.mxu1 %v5538_v4 }
 0x341   :  { %v3109_v10 = vpop.f32.mrf.mxu1 }
 0x342   :  { %v3152_v5 = vmax.f32 %v6923_v53, 0.0  ;;  %v6927_v60 = vadd.f32 %v6920_v50, %v3125_v29  ;;  %v3126_v21 = vadd.f32 %v3109_v10, %v2845_v2 }
 0x343   :  { %v3111_v38 = vpop.f32.mrf.mxu1  ;;  %5036 = vmatpush3.bf16.msra.mxu1 %v5540_v17 }
 0x344   :  { %3160 = vst [vmem:[#allocation4 + $0x8] sm:$0xff] %v3152_v5  ;;  %v3153_v43 = vmax.f32 %v6927_v60, 0.0  ;;  %v6931_v0 = vadd.f32 %v6916_v54, %v3126_v21  ;;  %v3127_v40 = vadd.f32 %v3111_v38, %v2846_v28  ;;  %v3185_v28 = vld [vmem:[#allocation4 + $0x18] sm:$0x1] }
 0x345   :  { %v3115_v18 = vpop.f32.mrf.mxu1  ;;  %v5542_v38 = vld [vmem:[#allocation8 + $0x158] sm:$0xff]  }
 0x346   :  { %3161 = vst [vmem:[#allocation4 + $0x48] sm:$0xff] %v3153_v43  ;;  %v3154_v61 = vmax.f32 %v6931_v0, 0.0  ;;  %v6935_v47 = vadd.f32 %v6920_v50, %v3127_v40  ;;  %v3128_v62 = vadd.f32 %v3115_v18, %v2847_v51  ;;  %v3212_v18 = vrot.slane %v3185_v28, 1  ;;  %5037 = vmatprep.subr.bf16.mxu1 %v5542_v38 }
 0x347   :  { %v3117_v63 = vpop.f32.mrf.mxu1 }
 0x348   :  { %v3155_v1 = vmax.f32 %v6935_v47, 0.0  ;;  %v3148_v20 = vadd.f32 %v6916_v54, %v3128_v62  ;;  %v3129_v11 = vadd.f32 %v3117_v63, %v2848_v15  ;;  %v3197_v46 = vrot.slane %v3154_v61, 1  ;;  %v5546_v62 = vld [vmem:[#allocation8 + $0x150] sm:$0xff]  }
 0x349   :  { %v3119_v24 = vpop.f32.mrf.mxu1 }
 0x34a   :  { %v3156_v23 = vmax.f32 %v3148_v20, 0.0  ;;  %v3149_v8 = vadd.f32 %v6920_v50, %v3129_v11  ;;  %v3130_v59 = vadd.f32 %v3119_v24, %v2849_v12  ;;  %v3200_v37 = vrot.slane %v3155_v1, 1  ;;  %v5547_v20 = vld [vmem:[#allocation8 + $0x10] sm:$0xff]   ;;  %v5552_v24 = vld [vmem:[#allocation8 + $0x108] sm:$0xff]  }
 0x34b   :  { %v3121_v44 = vpop.f32.mrf.mxu1  ;;  %v3176_v36 = vld [vmem:[#allocation4 + $0x8] sm:$0xfe]  ;;  %v5548_v11 = vld [vmem:[#allocation8 + $0x110] sm:$0xff]   ;;  %4996 = vmatpush3.bf16.msra.mxu0 %v5547_v20 }
 0x34c   :  { %v3157_v32 = vmax.f32 %v3149_v8, 0.0  ;;  %v6943_v6 = vadd.f32 %v6916_v54, %v3130_v59  ;;  %v3131_v22 = vadd.f32 %v3121_v44, %v2850_v14  ;;  %v3196_v9 = vrot.slane %v3176_v36, 1  ;;  %v5554_v8 = vld [vmem:[#allocation8 + $0x140] sm:$0xff]   ;;  %v5557_v14 = vld [vmem:[#allocation8 + $0xf8] sm:$0xff]  }
 0x34d   :  { %v3177_v55 = vld [vmem:[#allocation4 + $0x48] sm:$0xfe]  ;;  %v3202_v29 = vrot.slane %v3156_v23, 1  ;;  %v5556_v59 = vld [vmem:[#allocation8 + $0x100] sm:$0xff]   ;;  %v5558_v44 = vld [vmem:[#allocation8 + $0x278] sm:$0xff]  }
 0x34e   :  { %v3158_v16 = vmax.f32 %v6943_v6, 0.0  ;;  %v6949_v45 = vadd.f32 %v6920_v50, %v3131_v22  ;;  %v3198_v42 = vsel %vm1184_vm0, %v3196_v9, %v3197_v46  ;;  %v3199_v31 = vrot.slane %v3177_v55, 1 }
 0x34f   :  { %v6952_v54 = vmax.f32 %v3152_v5, %v3198_v42  ;;  %v3204_v5 = vrot.slane %v3157_v32, 1  ;;  %v3203_v41 = vsel %vm1184_vm0, %v3197_v46, %v3202_v29 }
 0x350   :  { %v3159_v26 = vmax.f32 %v6949_v45, 0.0  ;;  %v3201_v53 = vsel %vm1184_vm0, %v3199_v31, %v3200_v37  ;;  %v3206_v2 = vrot.slane %v3158_v16, 1  ;;  %v6973_v15 = vmax.f32 %v3154_v61, %v3203_v41  ;;  %v5549_v61 = vld [vmem:[#allocation8 + $0x48] sm:$0xff]  }
 0x351   :  { %3238 = vrot.lane.b32.xlu0 %v6952_v54, %s5676_s4  ;;  %v6958_v50 = vmax.f32 %v3153_v43, %v3201_v53  ;;  %v5544_v43 = vld [vmem:[#allocation8 + $0x118] sm:$0xff]   ;;  %v3205_v57 = vsel %vm1184_vm0, %v3200_v37, %v3204_v5  ;;  %4997 = vmatprep.subr.bf16.mxu0 %v5549_v61  ;;  %v5583_v31 = vld [vmem:[#allocation8 + $0x88] sm:$0xff]  }
 0x352   :  { %v3207_v10 = vsel %vm1184_vm0, %v3202_v29, %v3206_v2  ;;  %v3208_v60 = vrot.slane %v3159_v26, 1  ;;  %5038 = vmatpush3.bf16.msra.mxu1 %v5544_v43  ;;  %v3211_v63 = vsel %vm1184_vm0, %v3206_v2, %v3210_v27  ;;  %v6980_v12 = vmax.f32 %v3155_v1, %v3205_v57  ;;  %4998 = vmatpush3.bf16.msra.mxu0 %v5551_v58  ;;  %v5555_v1 = vld [vmem:[#allocation8] sm:$0xff]   ;;  %v5561_v58 = vld [vmem:[#allocation8 + $0xf0] sm:$0xff]  }
 0x353   :  { %3240 = vrot.lane.b32.xlu1 %v6958_v50, %s5676_s4  ;;  %v6963_v21 = vmax.f32 %v3156_v23, %v3207_v10  ;;  %5039 = vmatprep.subr.bf16.mxu1 %v5546_v62  ;;  %v6985_v0 = vmax.f32 %v3158_v16, %v3211_v63  ;;  %v5553_v23 = vld [vmem:[#allocation8 + $0x40] sm:$0xff]  }
 0x354   :  { %v3209_v51 = vsel %vm1184_vm0, %v3204_v5, %v3208_v60  ;;  %v3213_v13 = vsel %vm1184_vm0, %v3208_v60, %v3212_v18  ;;  %4999 = vmatprep.subr.bf16.mxu0 %v5553_v23  ;;  %v5562_v23 = vld [vmem:[#allocation8 + $0x270] sm:$0xff]  }
 0x355   :  { %3246 = vrot.lane.b32.xlu0 %v6963_v21, %s5676_s4  ;;  %v3227_v40 = vmax.f32 %v3157_v32, %v3209_v51  ;;  %v6989_v47 = vmax.f32 %v3159_v26, %v3213_v13 }
 0x356   :  { %5040 = vmatpush3.bf16.msra.mxu1 %v5548_v11  ;;  %5000 = vmatpush3.bf16.msra.mxu0 %v5555_v1  ;;  %v5566_v1 = vld [vmem:[#allocation8 + $0x268] sm:$0xff]  }
 0x357   :  { %3248 = vrot.lane.b32.xlu1 %v3227_v40, %s5676_s4  ;;  %5041 = vmatprep.subr.bf16.mxu1 %v5550_v7 }
 0x358   :  { %5007 = vmatprep.subr.bf16.mxu0 %v5557_v14 }
 0x359   :  { %3242 = vrot.lane.b32.xlu0 %v6973_v15, %s5676_s4 }
 0x35a   :  { %5042 = vmatpush3.bf16.msra.mxu1 %v5552_v24 }
 0x35b   :  { %3244 = vrot.lane.b32.xlu1 %v6980_v12, %s5676_s4  ;;  %5043 = vmatprep.subr.bf16.mxu1 %v5554_v8  ;;  %v5564_v8 = vld [vmem:[#allocation8 + $0x230] sm:$0xff]  }
 0x35d   :  { %3250 = vrot.lane.b32.xlu0 %v6985_v0, %s5676_s4 }
 0x35e   :  { %5044 = vmatpush3.bf16.msra.mxu1 %v5556_v59 }
 0x35f   :  { %3252 = vrot.lane.b32.xlu1 %v6989_v47, %s5676_s4  ;;  %5073 = vmatprep.subr.bf16.mxu1 %v5558_v44  ;;  %v5567_v44 = vld [vmem:[#allocation8 + $0xa8] sm:$0xff]  }
 0x3c3   :  { %v3239_v36 = vpop.permute.xlu0 %3238 }
 0x3c5   :  { %v3241_v46 = vpop.permute.xlu1 %3240 }
 0x3c6   :  { %v3255_v25 = vsel %vm3254_vm6, %v3239_v36, %v3241_v46  ;;  %v3268_v34 = vmax.f32 %v6958_v50, %v3241_v46  ;;  %v5568_v36 = vld [vmem:[#allocation8 + $0x228] sm:$0xff]   ;;  %v5569_v46 = vld [vmem:[#allocation8 + $0xe0] sm:$0xff]  }
 0x3c7   :  { %v3267_v32 = vmax.f32 %v6952_v54, %v3255_v25  ;;  %v3247_v6 = vpop.permute.xlu0 %3246  ;;  %v5570_v25 = vld [vmem:[#allocation8 + $0x260] sm:$0xff]  }
 0x3c9   :  { %v3277_v22 = vcombine.low %v3267_v32, %v3268_v34  ;;  %v3302_v9 = vcombine.high %v3267_v32, %v3268_v34  ;;  %v3249_v49 = vpop.permute.xlu1 %3248  ;;  %v5571_v34 = vld [vmem:[#allocation8 + $0xa0] sm:$0xff]  }
 0x3ca   :  { %v3257_v3 = vsel %vm3254_vm6, %v3247_v6, %v3249_v49  ;;  %v3272_v55 = vmax.f32 %v3227_v40, %v3249_v49  ;;  %v5572_v32 = vld [vmem:[#allocation8 + $0x220] sm:$0xff]   ;;  %v5573_v6 = vld [vmem:[#allocation8 + $0xd8] sm:$0xff]  }
 0x3cb   :  { %v3284_v37 = vrot.slane %v3277_v22, %v6432_v39  ;;  %v3309_v16 = vrot.slane %v3302_v9, %v6432_v39  ;;  %v3271_v45 = vmax.f32 %v6963_v21, %v3257_v3  ;;  %v3243_v42 = vpop.permute.xlu0 %3242  ;;  %v5574_v22 = vld [vmem:[#allocation8 + $0x258] sm:$0xff]   ;;  %v5577_v3 = vld [vmem:[#allocation8 + $0xd0] sm:$0xff]  }
 0x3cc   :  { %v5575_v9 = vld [vmem:[#allocation8 + $0x98] sm:$0xff]  }
 0x3cd   :  { %v3291_v54 = vrot.slane %v3284_v37, %v6432_v39  ;;  %v3316_v35 = vrot.slane %v3309_v16, %v6432_v39  ;;  %v3349_v4 = vcombine.low %v3271_v45, %v3272_v55  ;;  %v3373_v26 = vcombine.high %v3271_v45, %v3272_v55  ;;  %v3245_v53 = vpop.permute.xlu1 %3244  ;;  %v5576_v49 = vld [vmem:[#allocation8 + $0x218] sm:$0xff]   ;;  %v5578_v55 = vld [vmem:[#allocation8 + $0x250] sm:$0xff]   ;;  %v5581_v45 = vld [vmem:[#allocation8 + $0xc8] sm:$0xff]  }
 0x3ce   :  { %v3256_v29 = vsel %vm3254_vm6, %v3243_v42, %v3245_v53  ;;  %v3270_v2 = vmax.f32 %v6980_v12, %v3245_v53  ;;  %v5559_v12 = vld [vmem:[#allocation8 + $0xb8] sm:$0xff]   ;;  %v5579_v37 = vld [vmem:[#allocation8 + $0x90] sm:$0xff]   ;;  %v5582_v42 = vld [vmem:[#allocation8 + $0x248] sm:$0xff]  }
 0x3cf   :  { %3295 = vst.msk [vmem:[#allocation5] ss:$8 sm:$0x3] %vm7001_vm7, %v3291_v54  ;;  %v3297_v30 = vcombine.high %v3291_v54, %v3291_v54  ;;  %3319 = vst.msk [vmem:[#allocation5 + $0x20] ss:$8 sm:$0x3] %vm7001_vm7, %v3316_v35  ;;  %v3321_v33 = vcombine.high %v3316_v35, %v3316_v35  ;;  %v3356_v17 = vrot.slane %v3349_v4, %v6432_v39  ;;  %v3251_v60 = vpop.permute.xlu0 %3250 }
 0x3d0   :  { %v3380_v50 = vrot.slane %v3373_v26, %v6432_v39  ;;  %v3269_v48 = vmax.f32 %v6973_v15, %v3256_v29  ;;  %v5580_v16 = vld [vmem:[#allocation8 + $0x210] sm:$0xff]   ;;  %v5584_v54 = vld [vmem:[#allocation8 + $0x208] sm:$0xff]   ;;  %v5585_v35 = vld [vmem:[#allocation8 + $0xc0] sm:$0xff]  }
 0x3d1   :  { %3300 = vst.msk [vmem:[#allocation5 + $0x10] ss:$8 sm:$0x3] %vm7001_vm7, %v3297_v30  ;;  %3324 = vst.msk [vmem:[#allocation5 + $0x30] ss:$8 sm:$0x3] %vm7001_vm7, %v3321_v33  ;;  %v3363_v10 = vrot.slane %v3356_v17, %v6432_v39  ;;  %v3253_v21 = vpop.permute.xlu1 %3252 }
 0x3d2   :  { %v3387_v5 = vrot.slane %v3380_v50, %v6432_v39  ;;  %v3328_v28 = vcombine.low %v3269_v48, %v3270_v2  ;;  %v3258_v52 = vsel %vm3254_vm6, %v3251_v60, %v3253_v21  ;;  %v3274_v38 = vmax.f32 %v6989_v47, %v3253_v21  ;;  %v5565_v47 = vld [vmem:[#allocation8 + $0xe8] sm:$0xff]   ;;  %v5586_v4 = vld [vmem:[#allocation8 + $0x240] sm:$0xff]   ;;  %v5589_v29 = vld [vmem:[#allocation8 + $0x1f8] sm:$0xff]  }
 0x3d3   :  { %3366 = vst.msk [vmem:[#allocation5 + $0x1] ss:$8 sm:$0x3] %vm7001_vm7, %v3363_v10  ;;  %v3368_v51 = vcombine.high %v3363_v10, %v3363_v10  ;;  %v3273_v27 = vmax.f32 %v6985_v0, %v3258_v52  ;;  %v5560_v0 = vld [vmem:[#allocation8 + $0x238] sm:$0xff]   ;;  %v5587_v26 = vld [vmem:[#allocation8 + $0x80] sm:$0xff]   ;;  %v5591_v10 = vld [vmem:[#allocation8 + $0x1f0] sm:$0xff]  }
 0x3d4   :  { %3390 = vst.msk [vmem:[#allocation5 + $0x21] ss:$8 sm:$0x3] %vm7001_vm7, %v3387_v5  ;;  %v3392_v41 = vcombine.high %v3387_v5, %v3387_v5  ;;  %v3335_v56 = vrot.slane %v3328_v28, %v6432_v39  ;;  %v5588_v53 = vld [vmem:[#allocation8 + $0x200] sm:$0xff]   ;;  %v5590_v17 = vld [vmem:[#allocation8 + $0x1b8] sm:$0xff]   ;;  %v7041_v5 = vld [vmem:[#allocation2 + $0x68] sm:$0xff] }
 0x3d5   :  { %3371 = vst.msk [vmem:[#allocation5 + $0x11] ss:$8 sm:$0x3] %vm7001_vm7, %v3368_v51  ;;  %v3399_v43 = vcombine.low %v3273_v27, %v3274_v38  ;;  %v5592_v21 = vld [vmem:[#allocation8 + $0x1b0] sm:$0xff]   ;;  %v5593_v28 = vld [vmem:[#allocation8 + $0x1e8] sm:$0xff]   ;;  %v5595_v38 = vld [vmem:[#allocation8 + $0x1e0] sm:$0xff]  }
 0x3d6   :  { %3395 = vst.msk [vmem:[#allocation5 + $0x31] ss:$8 sm:$0x3] %vm7001_vm7, %v3392_v41  ;;  %v3342_v40 = vrot.slane %v3335_v56, %v6432_v39  ;;  %v5594_v52 = vld [vmem:[#allocation8 + $0x1a8] sm:$0xff]   ;;  %v5596_v51 = vld [vmem:[#allocation8 + $0x1a0] sm:$0xff]   ;;  %v5597_v41 = vld [vmem:[#allocation8 + $0x1d8] sm:$0xff]  }
 0x3d7   :  { %v3406_v57 = vrot.slane %v3399_v43, %v6432_v39  ;;  %v5598_v27 = vld [vmem:[#allocation8 + $0x198] sm:$0xff]   ;;  %v5599_v56 = vld [vmem:[#allocation8 + $0x1d0] sm:$0xff]  }
 0x3d8   :  { %3345 = vst.msk [vmem:[#allocation5 + $0x40] ss:$8 sm:$0x3] %vm7001_vm7, %v3342_v40  ;;  %v5600_v43 = vld [vmem:[#allocation8 + $0x190] sm:$0xff]   ;;  %v5601_v40 = vld [vmem:[#allocation8 + $0x1c8] sm:$0xff]  }
 0x3d9   :  { %v3413_v18 = vrot.slane %v3406_v57, %v6432_v39  ;;  %v5563_v39 = vld [vmem:[#allocation8 + $0xb0] sm:$0xff]   ;;  %v5602_v57 = vld [vmem:[#allocation8 + $0x188] sm:$0xff]  }
 0x3da   :  { %v3419_v15 = vld [vmem:[#allocation5 + $0x8] sm:$0xff]  ;;  %v3418_v62 = vld [vmem:[#allocation5] sm:$0xff] }
 0x3db   :  { %v3423_v19 = vld [vmem:[#allocation5 + $0x28] sm:$0xff]  ;;  %3416 = vst.msk [vmem:[#allocation5 + $0x41] ss:$8 sm:$0x3] %vm7001_vm7, %v3413_v18  ;;  %v3429_v63 = vpack.c.bf16 %v3419_v15, %v3419_v15  ;;  %v3428_v11 = vpack.c.bf16 %v3418_v62, %v3418_v62  ;;  %v3422_v13 = vld [vmem:[#allocation5 + $0x20] sm:$0xff]  ;;  %v5603_v18 = vld [vmem:[#allocation8 + $0x1c0] sm:$0xff]  }
 0x3dc   :  { %v3433_v20 = vpack.c.bf16 %v3423_v19, %v3423_v19  ;;  %v3432_v61 = vpack.c.bf16 %v3422_v13, %v3422_v13  ;;  %v3421_v7 = vld [vmem:[#allocation5 + $0x18] sm:$0xff]  ;;  %v3420_v2 = vld [vmem:[#allocation5 + $0x10] sm:$0xff]  ;;  %v5609_v13 = vld [vmem:[%s7128_s7 + $0x18] sm:$0xff]  }
 0x3dd   :  { %4117 = vmatprep.mubr.bf16.mxu0 %v3429_v63  ;;  %v3431_v24 = vpack.c.bf16 %v3421_v7, %v3421_v7  ;;  %v3425_v33 = vld [vmem:[#allocation5 + $0x38] sm:$0xff]  ;;  %v3430_v50 = vpack.c.bf16 %v3420_v2, %v3420_v2  ;;  %v5604_v15 = vld [vmem:[#allocation8 + $0x180] sm:$0xff]   ;;  %v5605_v63 = vld [vmem:[%s7128_s7 + $0x38] sm:$0xff]  }
 0x3de   :  { %4197 = vmatprep.mubr.bf16.mxu1 %v3433_v20  ;;  %4118 = vmatmul.mubr.bf16.vlgmr.msra.gmra.mxu0 %v3428_v11  ;;  %v3435_v60 = vpack.c.bf16 %v3425_v33, %v3425_v33  ;;  %v3424_v19 = vld [vmem:[#allocation5 + $0x30] sm:$0xff]  ;;  %v5606_v20 = vld [vmem:[%s7128_s7 + $0x30] sm:$0xff]   ;;  %v5607_v11 = vld [vmem:[%s7128_s7 + $0x28] sm:$0xff]  }
 0x3df   :  { %4198 = vmatmul.mubr.bf16.vlgmr.msra.gmra.mxu1 %v3432_v61  ;;  %5008 = vmatpush3.bf16.msra.mxu0 %v5559_v12  ;;  %v3434_v62 = vpack.c.bf16 %v3424_v19, %v3424_v19  ;;  %v5608_v12 = vld [vmem:[%s7128_s7 + $0x20] sm:$0xff]   ;;  %v5611_v61 = vld [vmem:[%s7128_s7 + $0x8] sm:$0xff]  }
 0x3e0   :  { %5074 = vmatpush3.bf16.msra.mxu1 %v5560_v0  ;;  %4157 = vmatprep.mubr.bf16.mxu0 %v3431_v24  ;;  %v5610_v0 = vld [vmem:[%s7128_s7 + $0x10] sm:$0xff]   ;;  %v5612_v7 = vld [vmem:[%s7128_s7] sm:$0xff]  }
 0x3e1   :  { %5009 = vmatprep.subr.bf16.mxu0 %v5561_v58  ;;  %5075 = vmatprep.subr.bf16.mxu1 %v5562_v23  ;;  %v5613_v58 = vld [vmem:[%s7130_s9 + $0x38] sm:$0xff]   ;;  %v5614_v24 = vld [vmem:[%s7130_s9 + $0x30] sm:$0xff]   ;;  %v5615_v23 = vld [vmem:[%s7130_s9 + $0x28] sm:$0xff]  }
 0x3e2   :  { %v3427_v59 = vld [vmem:[#allocation5 + $0x48] sm:$0xff]  ;;  %v3426_v30 = vld [vmem:[#allocation5 + $0x40] sm:$0xff] }
 0x3e3   :  { %5010 = vmatpush3.bf16.msra.mxu0 %v5563_v39  ;;  %v3437_v14 = vpack.c.bf16 %v3427_v59, %v3427_v59  ;;  %v3436_v48 = vpack.c.bf16 %v3426_v30, %v3426_v30  ;;  %v5616_v39 = vld [vmem:[%s7130_s9 + $0x20] sm:$0xff]  }
 0x3e4   :  { %5076 = vmatpush3.bf16.msra.mxu1 %v5564_v8  ;;  %5011 = vmatprep.subr.bf16.mxu0 %v5565_v47  ;;  %v5617_v8 = vld [vmem:[%s7130_s9 + $0x18] sm:$0xff]   ;;  %v5618_v47 = vld [vmem:[%s7130_s9 + $0x10] sm:$0xff]  }
 0x3e5   :  { %5077 = vmatprep.subr.bf16.mxu1 %v5566_v1  ;;  %4277 = vmatprep.mubr.bf16.mxu1 %v3437_v14 }
 0x3e7   :  { %5012 = vmatpush3.bf16.msra.mxu0 %v5567_v44 }
 0x3e8   :  { %5078 = vmatpush3.bf16.msra.mxu1 %v5568_v36  ;;  %5013 = vmatprep.subr.bf16.mxu0 %v5569_v46 }
 0x3e9   :  { %5079 = vmatprep.subr.bf16.mxu1 %v5570_v25 }
 0x3eb   :  { %5014 = vmatpush3.bf16.msra.mxu0 %v5571_v34 }
 0x3ec   :  { %5080 = vmatpush3.bf16.msra.mxu1 %v5572_v32  ;;  %5015 = vmatprep.subr.bf16.mxu0 %v5573_v6 }
 0x3ed   :  { %5081 = vmatprep.subr.bf16.mxu1 %v5574_v22 }
 0x3ef   :  { %5016 = vmatpush3.bf16.msra.mxu0 %v5575_v9 }
 0x3f0   :  { %5082 = vmatpush3.bf16.msra.mxu1 %v5576_v49  ;;  %5017 = vmatprep.subr.bf16.mxu0 %v5577_v3 }
 0x3f1   :  { %5083 = vmatprep.subr.bf16.mxu1 %v5578_v55 }
 0x3f3   :  { %5018 = vmatpush3.bf16.msra.mxu0 %v5579_v37 }
 0x3f4   :  { %5084 = vmatpush3.bf16.msra.mxu1 %v5580_v16  ;;  %5019 = vmatprep.subr.bf16.mxu0 %v5581_v45  ;;  %v4886_v45 = vld [vmem:[%s7127_s6] ss:$0 sm:$0xff] }
 0x3f5   :  { %5085 = vmatprep.subr.bf16.mxu1 %v5582_v42 }
 0x3f7   :  { %5020 = vmatpush3.bf16.msra.mxu0 %v5583_v31 }
 0x3f8   :  { %5086 = vmatpush3.bf16.msra.mxu1 %v5584_v54  ;;  %5021 = vmatprep.subr.bf16.mxu0 %v5585_v35 }
 0x3f9   :  { %5087 = vmatprep.subr.bf16.mxu1 %v5586_v4 }
 0x3fb   :  { %5022 = vmatpush3.bf16.msra.mxu0 %v5587_v26 }
 0x3fc   :  { %5088 = vmatpush3.bf16.msra.mxu1 %v5588_v53  ;;  %5051 = vmatprep.subr.bf16.mxu0 %v5589_v29 }
 0x3fd   :  { %5133 = vmatprep.subr.bf16.mxu1 %v7041_v5 }
 0x3fe   :  { %4158 = vmatmul.mubr.bf16.vlgmr.msra.gmra.mxu0 %v3430_v50 }
 0x3ff   :  { %4278 = vmatmul.mubr.bf16.vlgmr.msra.gmra.mxu1 %v3436_v48  ;;  %5052 = vmatpush3.bf16.msra.mxu0 %v5590_v17 }
 0x400   :  { %4237 = vmatprep.mubr.bf16.mxu0 %v3435_v60  ;;  %5053 = vmatprep.subr.bf16.mxu0 %v5591_v10  ;;  %v5619_v60 = vld [vmem:[%s7130_s9 + $0x8] sm:$0xff]  }
 0x401   :  { %5149 = vmatprep.mubr.msk.bf16.mxu1 %vm5677_vm8, %v7041_v5  ;;  %5134 = vmatpush3.bf16.msra.mxu1 %v5613_v58 }
 0x402   :  { %5135 = vmatprep.subr.bf16.mxu1 %v7041_v5 }
 0x403   :  { %5054 = vmatpush3.bf16.msra.mxu0 %v5592_v21  ;;  %v5620_v21 = vld [vmem:[%s7130_s9] sm:$0xff]  }
 0x404   :  { %5055 = vmatprep.subr.bf16.mxu0 %v5593_v28  ;;  %v4967_v28 = vld [vmem:[%s7129_s8] ss:$0 sm:$0xff] }
 0x405   :  { %5136 = vmatpush3.bf16.msra.mxu1 %v5614_v24 }
 0x406   :  { %5137 = vmatprep.subr.bf16.mxu1 %v7041_v5 }
 0x407   :  { %5056 = vmatpush3.bf16.msra.mxu0 %v5594_v52 }
 0x408   :  { %5057 = vmatprep.subr.bf16.mxu0 %v5595_v38 }
 0x409   :  { %5138 = vmatpush3.bf16.msra.mxu1 %v5615_v23 }
 0x40a   :  { %5139 = vmatprep.subr.bf16.mxu1 %v7041_v5 }
 0x40b   :  { %5058 = vmatpush3.bf16.msra.mxu0 %v5596_v51 }
 0x40c   :  { %5059 = vmatprep.subr.bf16.mxu0 %v5597_v41 }
 0x40d   :  { %5140 = vmatpush3.bf16.msra.mxu1 %v5616_v39 }
 0x40e   :  { %5141 = vmatprep.subr.bf16.mxu1 %v7041_v5 }
 0x40f   :  { %5060 = vmatpush3.bf16.msra.mxu0 %v5598_v27 }
 0x410   :  { %5061 = vmatprep.subr.bf16.mxu0 %v5599_v56 }
 0x411   :  { %5142 = vmatpush3.bf16.msra.mxu1 %v5617_v8 }
 0x412   :  { %5143 = vmatprep.subr.bf16.mxu1 %v7041_v5 }
 0x413   :  { %5062 = vmatpush3.bf16.msra.mxu0 %v5600_v43 }
 0x414   :  { %5063 = vmatprep.subr.bf16.mxu0 %v5601_v40  ;;  %v4976_v40 = vld [vmem:[%s7131_s10] ss:$0 sm:$0xff] }
 0x415   :  { %5144 = vmatpush3.bf16.msra.mxu1 %v5618_v47 }
 0x416   :  { %5145 = vmatprep.subr.bf16.mxu1 %v7041_v5 }
 0x417   :  { %5064 = vmatpush3.bf16.msra.mxu0 %v5602_v57 }
 0x418   :  { %5065 = vmatprep.subr.bf16.mxu0 %v5603_v18 }
 0x419   :  { %5146 = vmatpush3.bf16.msra.mxu1 %v5619_v60 }
 0x41a   :  { %5147 = vmatprep.subr.bf16.mxu1 %v7041_v5 }
 0x41b   :  { %5066 = vmatpush3.bf16.msra.mxu0 %v5604_v15 }
 0x41c   :  { %5113 = vmatprep.subr.bf16.mxu0 %v7041_v5 }
 0x41d   :  { %5148 = vmatpush3.bf16.msra.mxu1 %v5620_v21 }
 0x41e   :  { %4238 = vmatmul.mubr.bf16.vlgmr.msra.gmra.mxu0 %v3434_v62 }
 0x41f   :  { %5114 = vmatpush3.bf16.msra.mxu0 %v5605_v63  ;;  %5129 = vmatprep.mubr.msk.bf16.mxu0 %vm5677_vm8, %v7041_v5 }
 0x420   :  { %5115 = vmatprep.subr.bf16.mxu0 %v7041_v5 }
 0x423   :  { %5116 = vmatpush3.bf16.msra.mxu0 %v5606_v20 }
 0x424   :  { %5117 = vmatprep.subr.bf16.mxu0 %v7041_v5 }
 0x427   :  { %5118 = vmatpush3.bf16.msra.mxu0 %v5607_v11 }
 0x428   :  { %5119 = vmatprep.subr.bf16.mxu0 %v7041_v5 }
 0x42b   :  { %5120 = vmatpush3.bf16.msra.mxu0 %v5608_v12 }
 0x42c   :  { %5121 = vmatprep.subr.bf16.mxu0 %v7041_v5 }
 0x42f   :  { %5122 = vmatpush3.bf16.msra.mxu0 %v5609_v13 }
 0x430   :  { %5123 = vmatprep.subr.bf16.mxu0 %v7041_v5 }
 0x433   :  { %5124 = vmatpush3.bf16.msra.mxu0 %v5610_v0 }
 0x434   :  { %5125 = vmatprep.subr.bf16.mxu0 %v7041_v5 }
 0x437   :  { %5126 = vmatpush3.bf16.msra.mxu0 %v5611_v61 }
 0x438   :  { %5127 = vmatprep.subr.bf16.mxu0 %v7041_v5 }
 0x43b   :  { %5128 = vmatpush3.bf16.msra.mxu0 %v5612_v7 }
 0x49e   :  { %v5001_v1 = vpop.f32.mrf.mxu0 }
 0x49f   :  { %v5045_v59 = vpop.f32.mrf.mxu1 }
 0x4a0   :  { %v5002_v14 = vpop.f32.mrf.mxu0 }
 0x4a1   :  { %v5046_v44 = vpop.f32.mrf.mxu1  ;;  %v5003_v16 = vadd.f32 %v5002_v14, %v5001_v1 }
 0x4a2   :  { %v5004_v36 = vpop.f32.mrf.mxu0  ;;  %v5047_v4 = vadd.f32 %v5046_v44, %v5045_v59 }
 0x4a3   :  { %v5048_v46 = vpop.f32.mrf.mxu1  ;;  %v4120_v31 = vadd.f32 %v5003_v16, %v4886_v45 }
 0x4a4   :  { %v5005_v25 = vpop.f32.mrf.mxu0 }
 0x4a5   :  { %v5049_v34 = vpop.f32.mrf.mxu1 }
 0x4be   :  { %v5023_v32 = vpop.f32.mrf.mxu0 }
 0x4bf   :  { %v5089_v6 = vpop.f32.mrf.mxu1 }
 0x4c0   :  { %v5024_v22 = vpop.f32.mrf.mxu0 }
 0x4c1   :  { %v5090_v9 = vpop.f32.mrf.mxu1  ;;  %v5025_v42 = vadd.f32 %v5024_v22, %v5023_v32 }
 0x4c2   :  { %v5026_v49 = vpop.f32.mrf.mxu0  ;;  %v5091_v30 = vadd.f32 %v5090_v9, %v5089_v6 }
 0x4c3   :  { %v5092_v3 = vpop.f32.mrf.mxu1  ;;  %v4160_v54 = vadd.f32 %v5025_v42, %v4120_v31 }
 0x4c4   :  { %v5027_v55 = vpop.f32.mrf.mxu0 }
 0x4c5   :  { %v5093_v37 = vpop.f32.mrf.mxu1  ;;  %v4200_v53 = vadd.f32 %v5047_v4, %v4160_v54 }
 0x4de   :  { %v5067_v35 = vpop.f32.mrf.mxu0 }
 0x4e0   :  { %v5068_v26 = vpop.f32.mrf.mxu0 }
 0x4e1   :  { %v5069_v29 = vadd.f32 %v5068_v26, %v5067_v35 }
 0x4e2   :  { %v5070_v2 = vpop.f32.mrf.mxu0 }
 0x4e3   :  { %v4240_v33 = vadd.f32 %v5069_v29, %v4200_v53 }
 0x4e4   :  { %v5071_v17 = vpop.f32.mrf.mxu0 }
 0x4e5   :  { %v4280_v50 = vadd.f32 %v5091_v30, %v4240_v33 }
 0x4e7   :  { %v4285_v48 = vmax.f32 %v4280_v50, 0.0 }
 0x4e9   :  { %v4286_v10 = vpack.c.bf16 %v4285_v48, %v4285_v48 }
 0x4eb   :  { %5130 = vmatmul.mubr.bf16.vlgmr.msra.gmra.mxu0 %v4286_v10 }
 0x5ab   :  { %v4392_v52 = vpop.f32.mrf.mxu0 }
 0x5ac   :  { %v4393_v38 = vadd.f32 %v4967_v28, %v4392_v52 }
 0x5ad   :  { %v5131_v51 = vpop.f32.mrf.mxu0 }
 0x5ae   :  { %v4398_v41 = vmax.f32 %v4393_v38, 0.0 }
 0x5af   :  { %v4395_v27 = vpop.f32.mrf.mxu0 }
 0x5b0   :  { %v4399_v56 = vpack.c.bf16 %v4398_v41, %v4398_v41 }
 0x5b1   :  { %v5132_v43 = vpop.f32.mrf.mxu0 }
 0x5b2   :  { %5150 = vmatmul.mubr.bf16.vlgmr.msra.gmra.mxu1 %v4399_v56 }
 0x672   :  { %v4505_v57 = vpop.f32.mrf.mxu1 }
 0x673   :  { %v4506_v18 = vadd.f32 %v4976_v40, %v4505_v57 }
 0x674   :  { %v5151_v5 = vpop.f32.mrf.mxu1 }
 0x675   :  { %4511 = vst [vmem:[%s7132_s11] sm:$0xff] %v4506_v18 }
 0x676   :  { %v4508_v15 = vpop.f32.mrf.mxu1 }
 0x678   :  { %v5152_v19 = vpop.f32.mrf.mxu1 }
 0x679   :  { %4516 = vsyncpa [#allocation7], 1 }
 0x67a   :  { %4517 = vsyncpa [#allocation9], 1 }

</bundles_post_ra>
